<compile_context>
chip_gen: v5e
topology: v5e:2x2
jax: 0.10.0
libtpu: 0.0.40
codegen_flags: <defaults>
</compile_context>

<pallas_src>
import math
import functools

import jax
import jax.numpy as jnp
from jax.experimental import pallas as pl
from jax.experimental.pallas import tpu as pltpu


def _pick_tile(dim, preferred, align):
    """Largest tile <= preferred that divides `dim` and is a multiple of `align`;
    falls back to the full dimension (always a legal block size)."""
    t = min(preferred, dim)
    t = (t // align) * align
    while t >= align:
        if dim % t == 0:
            return t
        t -= align
    return dim


# ---------------------------------------------------------------------------
# Kernel 1: fused Q/K/V linear projections (torch nn.Linear semantics).
# Weights are pre-transposed in the wrapper to (in, out) so the kernel is a
# plain (tm, tk) @ (tk, tn) MXU contraction.  The attention scale is folded
# into Wq / bq before the call.
# ---------------------------------------------------------------------------
def _qkv_proj_kernel(share_x, *refs):
    if share_x:
        (x_ref, wq_ref, wk_ref, wv_ref,
         bq_ref, bk_ref, bv_ref,
         yq_ref, yk_ref, yv_ref,
         accq, acck, accv) = refs
    else:
        (xq_ref, xk_ref, xv_ref, wq_ref, wk_ref, wv_ref,
         bq_ref, bk_ref, bv_ref,
         yq_ref, yk_ref, yv_ref,
         accq, acck, accv) = refs

    kk = pl.program_id(2)

    @pl.when(kk == 0)
    def _init():
        accq[...] = jnp.zeros_like(accq)
        acck[...] = jnp.zeros_like(acck)
        accv[...] = jnp.zeros_like(accv)

    if share_x:
        xq = x_ref[...]
        xk = xq
        xv = xq
    else:
        xq = xq_ref[...]
        xk = xk_ref[...]
        xv = xv_ref[...]

    accq[...] += jnp.dot(xq, wq_ref[...], preferred_element_type=jnp.float32)
    acck[...] += jnp.dot(xk, wk_ref[...], preferred_element_type=jnp.float32)
    accv[...] += jnp.dot(xv, wv_ref[...], preferred_element_type=jnp.float32)

    @pl.when(kk == pl.num_programs(2) - 1)
    def _finalize():
        yq_ref[...] = (accq[...] + bq_ref[...]).astype(yq_ref.dtype)
        yk_ref[...] = (acck[...] + bk_ref[...]).astype(yk_ref.dtype)
        yv_ref[...] = (accv[...] + bv_ref[...]).astype(yv_ref.dtype)


def qkv_projection(xq, xk, xv, params, scale):
    """xq/xk/xv: (M, D). Returns (yq, yk, yv), each (M, D); yq pre-scaled by `scale`."""
    M, D = xq.shape
    share = (xq is xk) and (xk is xv)

    tm = _pick_tile(M, 256, 8)
    tn = _pick_tile(D, 256, 128)
    tk = _pick_tile(D, 2048, 128)     # big reduction tile: fewer grid steps
    grid = (M // tm, D // tn, D // tk)

    # One-time O(D^2) wrapper-side transpose / scale fold (negligible vs O(M*D^2)).
    wq_t = (params["wq"] * scale).T
    wk_t = params["wk"].T
    wv_t = params["wv"].T
    bq = (params["bq"] * scale).reshape(1, D)
    bk = params["bk"].reshape(1, D)
    bv = params["bv"].reshape(1, D)

    x_spec = pl.BlockSpec((tm, tk), lambda i, j, k: (i, k))
    w_spec = pl.BlockSpec((tk, tn), lambda i, j, k: (k, j))
    b_spec = pl.BlockSpec((1, tn), lambda i, j, k: (0, j))
    y_spec = pl.BlockSpec((tm, tn), lambda i, j, k: (i, j))

    if share:
        x_args = (xq,)
        x_specs = [x_spec]
    else:
        x_args = (xq, xk, xv)
        x_specs = [x_spec, x_spec, x_spec]

    out_sds = jax.ShapeDtypeStruct((M, D), xq.dtype)
    itemsize = jnp.dtype(xq.dtype).itemsize
    nx = 1 if share else 3
    cost = pl.CostEstimate(
        flops=int(3 * 2 * M * D * D),
        transcendentals=0,
        bytes_accessed=int(itemsize * (nx * M * D + 3 * D * D + 3 * D + 3 * M * D)),
    )

    return pl.pallas_call(
        functools.partial(_qkv_proj_kernel, share),
        out_shape=(out_sds, out_sds, out_sds),
        grid_spec=pltpu.PrefetchScalarGridSpec(
            num_scalar_prefetch=0,
            grid=grid,
            in_specs=x_specs + [w_spec, w_spec, w_spec, b_spec, b_spec, b_spec],
            out_specs=(y_spec, y_spec, y_spec),
            scratch_shapes=[pltpu.VMEM((tm, tn), jnp.float32)] * 3,
        ),
        compiler_params=pltpu.CompilerParams(
            dimension_semantics=("parallel", "parallel", "arbitrary"),
            vmem_limit_bytes=64 * 1024 * 1024),
        cost_estimate=cost,
    )(*x_args, wq_t, wk_t, wv_t, bq, bk, bv)


# ---------------------------------------------------------------------------
# Kernel 2: flash-style scaled dot-product attention over all heads.
# grid = (B, S//tq, S//tkv); the KV axis is the innermost "arbitrary" axis.
# Per-head running max/sum live in (head_num, tq, 1) scratch; the unnormalized
# output accumulates in a (tq, D) fp32 scratch (head h occupies its column
# block), so the final store is a single lane-dense (tq, D) write.
# The 1/sqrt(hd) scale is already folded into the Q projection.
# ---------------------------------------------------------------------------
def _mha_flash_kernel(q_ref, k_ref, v_ref, o_ref, m_sc, l_sc, acc_sc,
                      *, head_num, head_dim):
    ki = pl.program_id(2)

    @pl.when(ki == 0)
    def _init():
        m_sc[...] = jnp.full_like(m_sc, -jnp.inf)
        l_sc[...] = jnp.zeros_like(l_sc)
        acc_sc[...] = jnp.zeros_like(acc_sc)

    dn = (((1,), (1,)), ((), ()))   # contract head_dim of q with head_dim of k (no .T)
    for h in range(head_num):       # static unrolled loop over heads
        lo = h * head_dim
        hi = lo + head_dim
        qh = q_ref[:, lo:hi]        # (tq,  hd)  -- Ref slices, no full-block load
        kh = k_ref[:, lo:hi]        # (tkv, hd)
        vh = v_ref[:, lo:hi]        # (tkv, hd)

        s = jax.lax.dot_general(qh, kh, dn,
                                preferred_element_type=jnp.float32)      # (tq, tkv)
        m_prev = m_sc[h]                                                  # (tq, 1)
        m_new = jnp.maximum(m_prev, jnp.max(s, axis=-1, keepdims=True))
        alpha = jnp.exp(m_prev - m_new)
        p = jnp.exp(s - m_new)
        l_sc[h] = alpha * l_sc[h] + jnp.sum(p, axis=-1, keepdims=True)
        m_sc[h] = m_new
        acc_sc[:, lo:hi] = alpha * acc_sc[:, lo:hi] + jnp.dot(
            p.astype(vh.dtype), vh, preferred_element_type=jnp.float32)

    @pl.when(ki == pl.num_programs(2) - 1)
    def _finalize():
        for h in range(head_num):
            lo = h * head_dim
            hi = lo + head_dim
            inv = pl.reciprocal(l_sc[h], approx=False)
            acc_sc[:, lo:hi] = acc_sc[:, lo:hi] * inv
        o_ref[...] = acc_sc[...].astype(o_ref.dtype)      # single lane-dense store


def attention(yq, yk, yv, head_num):
    """yq/yk/yv: (B, S, D) projection outputs (heads along columns). Returns (B, S, D)."""
    B, S, D = yq.shape
    hd = D // head_num
    tq = _pick_tile(S, 256, 8)
    tkv = _pick_tile(S, 512, 128)   # falls back to full S for small sequences

    kern = functools.partial(_mha_flash_kernel, head_num=head_num, head_dim=hd)

    q_spec = pl.BlockSpec((None, tq, D), lambda b, qi, ki: (b, qi, 0))
    k_spec = pl.BlockSpec((None, tkv, D), lambda b, qi, ki: (b, ki, 0))
    v_spec = pl.BlockSpec((None, tkv, D), lambda b, qi, ki: (b, ki, 0))
    o_spec = pl.BlockSpec((None, tq, D), lambda b, qi, ki: (b, qi, 0))

    itemsize = jnp.dtype(yq.dtype).itemsize
    n_q_tiles = S // tq
    cost = pl.CostEstimate(
        flops=int(4 * B * S * S * D),
        transcendentals=int(B * head_num * S * S),
        bytes_accessed=int(itemsize * B * S * D * (2 + 2 * n_q_tiles)),
    )

    return pl.pallas_call(
        kern,
        out_shape=jax.ShapeDtypeStruct((B, S, D), yq.dtype),
        grid_spec=pltpu.PrefetchScalarGridSpec(
            num_scalar_prefetch=0,
            grid=(B, S // tq, S // tkv),
            in_specs=[q_spec, k_spec, v_spec],
            out_specs=o_spec,
            scratch_shapes=[
                pltpu.VMEM((head_num, tq, 1), jnp.float32),   # running max
                pltpu.VMEM((head_num, tq, 1), jnp.float32),   # running sum
                pltpu.VMEM((tq, D), jnp.float32),             # unnormalized output
            ],
        ),
        compiler_params=pltpu.CompilerParams(
            dimension_semantics=("parallel", "parallel", "arbitrary"),
            vmem_limit_bytes=64 * 1024 * 1024),
        cost_estimate=cost,
    )(yq, yk, yv)


# ---------------------------------------------------------------------------
# MultiHeadAttention forward
# ---------------------------------------------------------------------------
def multi_head_attention(params, q, k, v, head_num):
    B, S, D = q.shape
    hd = D // head_num
    scale = 1.0 / math.sqrt(hd)

    share = (q is k) and (k is v)
    if share:
        xq = xk = xv = q.reshape(B * S, D)
    else:
        xq = q.reshape(B * S, D)
        xk = k.reshape(B * S, D)
        xv = v.reshape(B * S, D)

    yq, yk, yv = qkv_projection(xq, xk, xv, params, scale)
    # (B*S, D) -> (B, S, D) is metadata-only; head split/merge happens inside the
    # attention kernel as static column blocks, so no (0,2,1,3) transposes exist.
    return attention(yq.reshape(B, S, D),
                     yk.reshape(B, S, D),
                     yv.reshape(B, S, D), head_num)


def multi_head_self_attention(params, x, head_num):
    # q is k is v -> the QKV kernel DMAs x only once per grid step.
    return multi_head_attention(params, x, x, x, head_num)


# ---------------------------------------------------------------------------
# Pure-JAX reference (mirrors the PyTorch code) for a correctness check.
# ---------------------------------------------------------------------------
def reference(params, q, k, v, head_num):
    B, S, D = q.shape
    hd = D // head_num
    hp = jax.lax.Precision.HIGHEST

    def proj(x, w, b):
        y = jnp.einsum("bsd,ed->bse", x, w, precision=hp) + b
        return jnp.transpose(y.reshape(B, S, head_num, hd), (0, 2, 1, 3))

    qh = proj(q, params["wq"], params["bq"])
    kh = proj(k, params["wk"], params["bk"])
    vh = proj(v, params["wv"], params["bv"])
    s = jnp.einsum("bhqd,bhkd->bhqk", qh, kh, precision=hp) / math.sqrt(hd)
    p = jax.nn.softmax(s, axis=-1)
    o = jnp.einsum("bhqk,bhkd->bhqd", p, vh, precision=hp)
    return jnp.transpose(o, (0, 2, 1, 3)).reshape(B, S, D)


if __name__ == "__main__":
    # Small shapes consistent with the module (dim_num divisible by head_num).
    batch, seq, dim_num, head_num = 2, 32, 256, 4

    key = jax.random.PRNGKey(0)
    keys = jax.random.split(key, 9)
    bound = 1.0 / math.sqrt(dim_num)  # torch nn.Linear default init range

    def init_linear(kw, kb):
        w = jax.random.uniform(kw, (dim_num, dim_num), jnp.float32, -bound, bound)
        b = jax.random.uniform(kb, (dim_num,), jnp.float32, -bound, bound)
        return w, b

    wq, bq = init_linear(keys[0], keys[1])
    wk, bk = init_linear(keys[2], keys[3])
    wv, bv = init_linear(keys[4], keys[5])
    # output_embed exists in __init__ but is unused in forward(); skipped.
    params = dict(wq=wq, bq=bq, wk=wk, bk=bk, wv=wv, bv=bv)

    q = jax.random.normal(keys[6], (batch, seq, dim_num), jnp.float32)
    k = jax.random.normal(keys[7], (batch, seq, dim_num), jnp.float32)
    v = jax.random.normal(keys[8], (batch, seq, dim_num), jnp.float32)

    # Cross-attention path (distinct q/k/v).
    mha = jax.jit(functools.partial(multi_head_attention, head_num=head_num))
    out = jax.block_until_ready(mha(params, q, k, v))
    ref = reference(params, q, k, v, head_num)
    assert out.shape == (batch, seq, dim_num)
    err = float(jnp.max(jnp.abs(out - ref)))
    assert jnp.allclose(out, ref, rtol=2e-3, atol=2e-3), err

    # Self-attention path (shared-x QKV kernel).
    self_mha = jax.jit(functools.partial(multi_head_self_attention, head_num=head_num))
    out_s = jax.block_until_ready(self_mha(params, q))
    ref_s = reference(params, q, q, q, head_num)
    err_s = float(jnp.max(jnp.abs(out_s - ref_s)))
    assert jnp.allclose(out_s, ref_s, rtol=2e-3, atol=2e-3), err_s

    print("KERNEL_OK")
</pallas_src>

<mosaic_0001>
module attributes {stable_mosaic.version = 11 : i64} {
  func.func @_qkv_proj_kernel(%arg0: i32, %arg1: i32, %arg2: i32, %arg3: memref<64x256xf32, #tpu.memory_space<vmem>>, %arg4: memref<64x256xf32, #tpu.memory_space<vmem>>, %arg5: memref<64x256xf32, #tpu.memory_space<vmem>>, %arg6: memref<256x256xf32, #tpu.memory_space<vmem>>, %arg7: memref<256x256xf32, #tpu.memory_space<vmem>>, %arg8: memref<256x256xf32, #tpu.memory_space<vmem>>, %arg9: memref<1x256xf32, #tpu.memory_space<vmem>>, %arg10: memref<1x256xf32, #tpu.memory_space<vmem>>, %arg11: memref<1x256xf32, #tpu.memory_space<vmem>>, %arg12: memref<64x256xf32, #tpu.memory_space<vmem>>, %arg13: memref<64x256xf32, #tpu.memory_space<vmem>>, %arg14: memref<64x256xf32, #tpu.memory_space<vmem>>, %arg15: memref<64x256xf32, #tpu.memory_space<vmem>>, %arg16: memref<64x256xf32, #tpu.memory_space<vmem>>, %arg17: memref<64x256xf32, #tpu.memory_space<vmem>>) attributes {dimension_semantics = [#tpu.dimension_semantics<parallel>, #tpu.dimension_semantics<parallel>, #tpu.dimension_semantics<arbitrary>], iteration_bounds = array<i64: 1, 1, 1>, scalar_prefetch = 0 : i64, scratch_operands = 3 : i64, tpu.core_type = #tpu.core_type<tc>, window_params = [{transform_indices = @transform_0, window_bounds = array<i64: 64, 256>}, {transform_indices = @transform_1, window_bounds = array<i64: 64, 256>}, {transform_indices = @transform_2, window_bounds = array<i64: 64, 256>}, {transform_indices = @transform_3, window_bounds = array<i64: 256, 256>}, {transform_indices = @transform_4, window_bounds = array<i64: 256, 256>}, {transform_indices = @transform_5, window_bounds = array<i64: 256, 256>}, {transform_indices = @transform_6, window_bounds = array<i64: 1, 256>}, {transform_indices = @transform_7, window_bounds = array<i64: 1, 256>}, {transform_indices = @transform_8, window_bounds = array<i64: 1, 256>}, {transform_indices = @transform_9, window_bounds = array<i64: 64, 256>}, {transform_indices = @transform_10, window_bounds = array<i64: 64, 256>}, {transform_indices = @transform_11, window_bounds = array<i64: 64, 256>}]} {
    %c0_i32 = arith.constant 0 : i32
    %0 = arith.cmpi eq, %arg2, %c0_i32 : i32
    %1 = arith.extui %0 : i1 to i32
    %c0_i32_0 = arith.constant 0 : i32
    %2 = arith.cmpi ne, %1, %c0_i32_0 : i32
    scf.if %2 {
      %cst_28 = arith.constant 0.000000e+00 : f32
      %24 = vector.broadcast %cst_28 : f32 to vector<64x256xf32>
      %c0_29 = arith.constant 0 : index
      %c0_30 = arith.constant 0 : index
      %25 = vector.load %arg15[%c0_29, %c0_30] : memref<64x256xf32, #tpu.memory_space<vmem>>, vector<64x256xf32>
      tpu.vector_store %arg15[%c0_29, %c0_30], %24 {strides = array<i32>} : memref<64x256xf32, #tpu.memory_space<vmem>>, vector<64x256xf32>,
      %cst_31 = arith.constant 0.000000e+00 : f32
      %26 = vector.broadcast %cst_31 : f32 to vector<64x256xf32>
      %c0_32 = arith.constant 0 : index
      %c0_33 = arith.constant 0 : index
      %27 = vector.load %arg16[%c0_32, %c0_33] : memref<64x256xf32, #tpu.memory_space<vmem>>, vector<64x256xf32>
      tpu.vector_store %arg16[%c0_32, %c0_33], %26 {strides = array<i32>} : memref<64x256xf32, #tpu.memory_space<vmem>>, vector<64x256xf32>,
      %cst_34 = arith.constant 0.000000e+00 : f32
      %28 = vector.broadcast %cst_34 : f32 to vector<64x256xf32>
      %c0_35 = arith.constant 0 : index
      %c0_36 = arith.constant 0 : index
      %29 = vector.load %arg17[%c0_35, %c0_36] : memref<64x256xf32, #tpu.memory_space<vmem>>, vector<64x256xf32>
      tpu.vector_store %arg17[%c0_35, %c0_36], %28 {strides = array<i32>} : memref<64x256xf32, #tpu.memory_space<vmem>>, vector<64x256xf32>,
    } else {
    }
    %c0 = arith.constant 0 : index
    %c0_1 = arith.constant 0 : index
    %3 = vector.load %arg3[%c0, %c0_1] : memref<64x256xf32, #tpu.memory_space<vmem>>, vector<64x256xf32>
    %c0_2 = arith.constant 0 : index
    %c0_3 = arith.constant 0 : index
    %4 = vector.load %arg4[%c0_2, %c0_3] : memref<64x256xf32, #tpu.memory_space<vmem>>, vector<64x256xf32>
    %c0_4 = arith.constant 0 : index
    %c0_5 = arith.constant 0 : index
    %5 = vector.load %arg5[%c0_4, %c0_5] : memref<64x256xf32, #tpu.memory_space<vmem>>, vector<64x256xf32>
    %c0_6 = arith.constant 0 : index
    %c0_7 = arith.constant 0 : index
    %6 = vector.load %arg15[%c0_6, %c0_7] : memref<64x256xf32, #tpu.memory_space<vmem>>, vector<64x256xf32>
    %c0_8 = arith.constant 0 : index
    %c0_9 = arith.constant 0 : index
    %7 = vector.load %arg6[%c0_8, %c0_9] : memref<256x256xf32, #tpu.memory_space<vmem>>, vector<256x256xf32>
    %cst = arith.constant dense<0.000000e+00> : vector<64x256xf32>
    %8 = tpu.matmul %3, %7, %cst {dimension_numbers = #tpu.dot_dimension_numbers<[1], [0], [0], [1], [0, 0, 1, 1], [], []>} : vector<64x256xf32>, vector<256x256xf32>, vector<64x256xf32> -> vector<64x256xf32>
    %9 = arith.addf %6, %8 : vector<64x256xf32>
    %c0_10 = arith.constant 0 : index
    %c0_11 = arith.constant 0 : index
    %10 = vector.load %arg15[%c0_10, %c0_11] : memref<64x256xf32, #tpu.memory_space<vmem>>, vector<64x256xf32>
    tpu.vector_store %arg15[%c0_10, %c0_11], %9 {strides = array<i32>} : memref<64x256xf32, #tpu.memory_space<vmem>>, vector<64x256xf32>,
    %c0_12 = arith.constant 0 : index
    %c0_13 = arith.constant 0 : index
    %11 = vector.load %arg16[%c0_12, %c0_13] : memref<64x256xf32, #tpu.memory_space<vmem>>, vector<64x256xf32>
    %c0_14 = arith.constant 0 : index
    %c0_15 = arith.constant 0 : index
    %12 = vector.load %arg7[%c0_14, %c0_15] : memref<256x256xf32, #tpu.memory_space<vmem>>, vector<256x256xf32>
    %cst_16 = arith.constant dense<0.000000e+00> : vector<64x256xf32>
    %13 = tpu.matmul %4, %12, %cst_16 {dimension_numbers = #tpu.dot_dimension_numbers<[1], [0], [0], [1], [0, 0, 1, 1], [], []>} : vector<64x256xf32>, vector<256x256xf32>, vector<64x256xf32> -> vector<64x256xf32>
    %14 = arith.addf %11, %13 : vector<64x256xf32>
    %c0_17 = arith.constant 0 : index
    %c0_18 = arith.constant 0 : index
    %15 = vector.load %arg16[%c0_17, %c0_18] : memref<64x256xf32, #tpu.memory_space<vmem>>, vector<64x256xf32>
    tpu.vector_store %arg16[%c0_17, %c0_18], %14 {strides = array<i32>} : memref<64x256xf32, #tpu.memory_space<vmem>>, vector<64x256xf32>,
    %c0_19 = arith.constant 0 : index
    %c0_20 = arith.constant 0 : index
    %16 = vector.load %arg17[%c0_19, %c0_20] : memref<64x256xf32, #tpu.memory_space<vmem>>, vector<64x256xf32>
    %c0_21 = arith.constant 0 : index
    %c0_22 = arith.constant 0 : index
    %17 = vector.load %arg8[%c0_21, %c0_22] : memref<256x256xf32, #tpu.memory_space<vmem>>, vector<256x256xf32>
    %cst_23 = arith.constant dense<0.000000e+00> : vector<64x256xf32>
    %18 = tpu.matmul %5, %17, %cst_23 {dimension_numbers = #tpu.dot_dimension_numbers<[1], [0], [0], [1], [0, 0, 1, 1], [], []>} : vector<64x256xf32>, vector<256x256xf32>, vector<64x256xf32> -> vector<64x256xf32>
    %19 = arith.addf %16, %18 : vector<64x256xf32>
    %c0_24 = arith.constant 0 : index
    %c0_25 = arith.constant 0 : index
    %20 = vector.load %arg17[%c0_24, %c0_25] : memref<64x256xf32, #tpu.memory_space<vmem>>, vector<64x256xf32>
    tpu.vector_store %arg17[%c0_24, %c0_25], %19 {strides = array<i32>} : memref<64x256xf32, #tpu.memory_space<vmem>>, vector<64x256xf32>,
    %c0_i32_26 = arith.constant 0 : i32
    %21 = arith.cmpi eq, %arg2, %c0_i32_26 : i32
    %22 = arith.extui %21 : i1 to i32
    %c0_i32_27 = arith.constant 0 : i32
    %23 = arith.cmpi ne, %22, %c0_i32_27 : i32
    scf.if %23 {
      %c0_28 = arith.constant 0 : index
      %c0_29 = arith.constant 0 : index
      %24 = vector.load %arg15[%c0_28, %c0_29] : memref<64x256xf32, #tpu.memory_space<vmem>>, vector<64x256xf32>
      %c0_30 = arith.constant 0 : index
      %c0_31 = arith.constant 0 : index
      %25 = vector.load %arg9[%c0_30, %c0_31] : memref<1x256xf32, #tpu.memory_space<vmem>>, vector<1x256xf32>
      %26 = vector.broadcast %25 : vector<1x256xf32> to vector<64x256xf32>
      %27 = arith.addf %24, %26 : vector<64x256xf32>
      %c0_32 = arith.constant 0 : index
      %c0_33 = arith.constant 0 : index
      %28 = vector.load %arg12[%c0_32, %c0_33] : memref<64x256xf32, #tpu.memory_space<vmem>>, vector<64x256xf32>
      tpu.vector_store %arg12[%c0_32, %c0_33], %27 {strides = array<i32>} : memref<64x256xf32, #tpu.memory_space<vmem>>, vector<64x256xf32>,
      %c0_34 = arith.constant 0 : index
      %c0_35 = arith.constant 0 : index
      %29 = vector.load %arg16[%c0_34, %c0_35] : memref<64x256xf32, #tpu.memory_space<vmem>>, vector<64x256xf32>
      %c0_36 = arith.constant 0 : index
      %c0_37 = arith.constant 0 : index
      %30 = vector.load %arg10[%c0_36, %c0_37] : memref<1x256xf32, #tpu.memory_space<vmem>>, vector<1x256xf32>
      %31 = vector.broadcast %30 : vector<1x256xf32> to vector<64x256xf32>
      %32 = arith.addf %29, %31 : vector<64x256xf32>
      %c0_38 = arith.constant 0 : index
      %c0_39 = arith.constant 0 : index
      %33 = vector.load %arg13[%c0_38, %c0_39] : memref<64x256xf32, #tpu.memory_space<vmem>>, vector<64x256xf32>
      tpu.vector_store %arg13[%c0_38, %c0_39], %32 {strides = array<i32>} : memref<64x256xf32, #tpu.memory_space<vmem>>, vector<64x256xf32>,
      %c0_40 = arith.constant 0 : index
      %c0_41 = arith.constant 0 : index
      %34 = vector.load %arg17[%c0_40, %c0_41] : memref<64x256xf32, #tpu.memory_space<vmem>>, vector<64x256xf32>
      %c0_42 = arith.constant 0 : index
      %c0_43 = arith.constant 0 : index
      %35 = vector.load %arg11[%c0_42, %c0_43] : memref<1x256xf32, #tpu.memory_space<vmem>>, vector<1x256xf32>
      %36 = vector.broadcast %35 : vector<1x256xf32> to vector<64x256xf32>
      %37 = arith.addf %34, %36 : vector<64x256xf32>
      %c0_44 = arith.constant 0 : index
      %c0_45 = arith.constant 0 : index
      %38 = vector.load %arg14[%c0_44, %c0_45] : memref<64x256xf32, #tpu.memory_space<vmem>>, vector<64x256xf32>
      tpu.vector_store %arg14[%c0_44, %c0_45], %37 {strides = array<i32>} : memref<64x256xf32, #tpu.memory_space<vmem>>, vector<64x256xf32>,
    } else {
    }
    return
  }
  func.func @transform_0(%arg0: i32, %arg1: i32, %arg2: i32) -> (i32, i32) {
    %c0_i32 = arith.constant 0 : i32
    return %arg0, %arg2 : i32, i32
  }
  func.func @transform_1(%arg0: i32, %arg1: i32, %arg2: i32) -> (i32, i32) {
    %c0_i32 = arith.constant 0 : i32
    return %arg0, %arg2 : i32, i32
  }
  func.func @transform_2(%arg0: i32, %arg1: i32, %arg2: i32) -> (i32, i32) {
    %c0_i32 = arith.constant 0 : i32
    return %arg0, %arg2 : i32, i32
  }
  func.func @transform_3(%arg0: i32, %arg1: i32, %arg2: i32) -> (i32, i32) {
    %c0_i32 = arith.constant 0 : i32
    return %arg2, %arg1 : i32, i32
  }
  func.func @transform_4(%arg0: i32, %arg1: i32, %arg2: i32) -> (i32, i32) {
    %c0_i32 = arith.constant 0 : i32
    return %arg2, %arg1 : i32, i32
  }
  func.func @transform_5(%arg0: i32, %arg1: i32, %arg2: i32) -> (i32, i32) {
    %c0_i32 = arith.constant 0 : i32
    return %arg2, %arg1 : i32, i32
  }
  func.func @transform_6(%arg0: i32, %arg1: i32, %arg2: i32) -> (i32, i32) {
    %c0_i32 = arith.constant 0 : i32
    %c0_i32_0 = arith.constant 0 : i32
    return %c0_i32, %arg1 : i32, i32
  }
  func.func @transform_7(%arg0: i32, %arg1: i32, %arg2: i32) -> (i32, i32) {
    %c0_i32 = arith.constant 0 : i32
    %c0_i32_0 = arith.constant 0 : i32
    return %c0_i32, %arg1 : i32, i32
  }
  func.func @transform_8(%arg0: i32, %arg1: i32, %arg2: i32) -> (i32, i32) {
    %c0_i32 = arith.constant 0 : i32
    %c0_i32_0 = arith.constant 0 : i32
    return %c0_i32, %arg1 : i32, i32
  }
  func.func @transform_9(%arg0: i32, %arg1: i32, %arg2: i32) -> (i32, i32) {
    %c0_i32 = arith.constant 0 : i32
    return %arg0, %arg1 : i32, i32
  }
  func.func @transform_10(%arg0: i32, %arg1: i32, %arg2: i32) -> (i32, i32) {
    %c0_i32 = arith.constant 0 : i32
    return %arg0, %arg1 : i32, i32
  }
  func.func @transform_11(%arg0: i32, %arg1: i32, %arg2: i32) -> (i32, i32) {
    %c0_i32 = arith.constant 0 : i32
    return %arg0, %arg1 : i32, i32
  }
}

module attributes {stable_mosaic.version = 11 : i64} {
  func.func @_mha_flash_kernel(%arg0: i32, %arg1: i32, %arg2: i32, %arg3: memref<1x32x256xf32, #tpu.memory_space<vmem>>, %arg4: memref<1x32x256xf32, #tpu.memory_space<vmem>>, %arg5: memref<1x32x256xf32, #tpu.memory_space<vmem>>, %arg6: memref<1x32x256xf32, #tpu.memory_space<vmem>>, %arg7: memref<4x32x1xf32, #tpu.memory_space<vmem>>, %arg8: memref<4x32x1xf32, #tpu.memory_space<vmem>>, %arg9: memref<32x256xf32, #tpu.memory_space<vmem>>) attributes {dimension_semantics = [#tpu.dimension_semantics<parallel>, #tpu.dimension_semantics<parallel>, #tpu.dimension_semantics<arbitrary>], iteration_bounds = array<i64: 2, 1, 1>, scalar_prefetch = 0 : i64, scratch_operands = 3 : i64, tpu.core_type = #tpu.core_type<tc>, window_params = [{transform_indices = @transform_0, window_bounds = array<i64: 1, 32, 256>}, {transform_indices = @transform_1, window_bounds = array<i64: 1, 32, 256>}, {transform_indices = @transform_2, window_bounds = array<i64: 1, 32, 256>}, {transform_indices = @transform_3, window_bounds = array<i64: 1, 32, 256>}]} {
    %c0_i32 = arith.constant 0 : i32
    %0 = arith.cmpi eq, %arg2, %c0_i32 : i32
    %1 = arith.extui %0 : i1 to i32
    %c0_i32_0 = arith.constant 0 : i32
    %2 = arith.cmpi ne, %1, %c0_i32_0 : i32
    scf.if %2 {
      %cst_111 = arith.constant 0xFF800000 : f32
      %146 = vector.broadcast %cst_111 : f32 to vector<4x32x1xf32>
      %c0_112 = arith.constant 0 : index
      %c0_113 = arith.constant 0 : index
      %c0_114 = arith.constant 0 : index
      %147 = vector.load %arg7[%c0_112, %c0_113, %c0_114] : memref<4x32x1xf32, #tpu.memory_space<vmem>>, vector<4x32x1xf32>
      tpu.vector_store %arg7[%c0_112, %c0_113, %c0_114], %146 {strides = array<i32>} : memref<4x32x1xf32, #tpu.memory_space<vmem>>, vector<4x32x1xf32>,
      %cst_115 = arith.constant 0.000000e+00 : f32
      %148 = vector.broadcast %cst_115 : f32 to vector<4x32x1xf32>
      %c0_116 = arith.constant 0 : index
      %c0_117 = arith.constant 0 : index
      %c0_118 = arith.constant 0 : index
      %149 = vector.load %arg8[%c0_116, %c0_117, %c0_118] : memref<4x32x1xf32, #tpu.memory_space<vmem>>, vector<4x32x1xf32>
      tpu.vector_store %arg8[%c0_116, %c0_117, %c0_118], %148 {strides = array<i32>} : memref<4x32x1xf32, #tpu.memory_space<vmem>>, vector<4x32x1xf32>,
      %cst_119 = arith.constant 0.000000e+00 : f32
      %150 = vector.broadcast %cst_119 : f32 to vector<32x256xf32>
      %c0_120 = arith.constant 0 : index
      %c0_121 = arith.constant 0 : index
      %151 = vector.load %arg9[%c0_120, %c0_121] : memref<32x256xf32, #tpu.memory_space<vmem>>, vector<32x256xf32>
      tpu.vector_store %arg9[%c0_120, %c0_121], %150 {strides = array<i32>} : memref<32x256xf32, #tpu.memory_space<vmem>>, vector<32x256xf32>,
    } else {
    }
    %c0 = arith.constant 0 : index
    %c0_1 = arith.constant 0 : index
    %c0_2 = arith.constant 0 : index
    %3 = vector.load %arg3[%c0, %c0_1, %c0_2] : memref<1x32x256xf32, #tpu.memory_space<vmem>>, vector<1x32x64xf32>
    %4 = vector.shape_cast %3 : vector<1x32x64xf32> to vector<32x64xf32>
    %c0_3 = arith.constant 0 : index
    %c0_4 = arith.constant 0 : index
    %c0_5 = arith.constant 0 : index
    %5 = vector.load %arg4[%c0_3, %c0_4, %c0_5] : memref<1x32x256xf32, #tpu.memory_space<vmem>>, vector<1x32x64xf32>
    %6 = vector.shape_cast %5 : vector<1x32x64xf32> to vector<32x64xf32>
    %c0_6 = arith.constant 0 : index
    %c0_7 = arith.constant 0 : index
    %c0_8 = arith.constant 0 : index
    %7 = vector.load %arg5[%c0_6, %c0_7, %c0_8] : memref<1x32x256xf32, #tpu.memory_space<vmem>>, vector<1x32x64xf32>
    %8 = vector.shape_cast %7 : vector<1x32x64xf32> to vector<32x64xf32>
    %cst = arith.constant dense<0.000000e+00> : vector<32x32xf32>
    %9 = tpu.matmul %4, %6, %cst {dimension_numbers = #tpu.dot_dimension_numbers<[1], [1], [0], [0], [0, 0, 1, 0], [], []>} : vector<32x64xf32>, vector<32x64xf32>, vector<32x32xf32> -> vector<32x32xf32>
    %c0_9 = arith.constant 0 : index
    %c0_10 = arith.constant 0 : index
    %c0_11 = arith.constant 0 : index
    %10 = vector.load %arg7[%c0_9, %c0_10, %c0_11] : memref<4x32x1xf32, #tpu.memory_space<vmem>>, vector<1x32x1xf32>
    %11 = vector.shape_cast %10 : vector<1x32x1xf32> to vector<32x1xf32>
    %cst_12 = arith.constant dense<0xFF800000> : vector<32xf32>
    %12 = vector.multi_reduction <maximumf>, %9, %cst_12 [1] : vector<32x32xf32> to vector<32xf32>
    %13 = vector.shape_cast %12 : vector<32xf32> to vector<32x1xf32>
    %14 = arith.maximumf %11, %13 : vector<32x1xf32>
    %15 = arith.subf %11, %14 : vector<32x1xf32>
    %16 = math.exp %15 : vector<32x1xf32>
    %17 = vector.broadcast %14 : vector<32x1xf32> to vector<32x32xf32>
    %18 = arith.subf %9, %17 : vector<32x32xf32>
    %19 = math.exp %18 : vector<32x32xf32>
    %c0_13 = arith.constant 0 : index
    %c0_14 = arith.constant 0 : index
    %c0_15 = arith.constant 0 : index
    %20 = vector.load %arg8[%c0_13, %c0_14, %c0_15] : memref<4x32x1xf32, #tpu.memory_space<vmem>>, vector<1x32x1xf32>
    %21 = vector.shape_cast %20 : vector<1x32x1xf32> to vector<32x1xf32>
    %22 = arith.mulf %16, %21 : vector<32x1xf32>
    %cst_16 = arith.constant dense<0.000000e+00> : vector<32xf32>
    %23 = vector.multi_reduction <add>, %19, %cst_16 [1] : vector<32x32xf32> to vector<32xf32>
    %24 = vector.shape_cast %23 : vector<32xf32> to vector<32x1xf32>
    %25 = arith.addf %22, %24 : vector<32x1xf32>
    %c0_17 = arith.constant 0 : index
    %c0_18 = arith.constant 0 : index
    %c0_19 = arith.constant 0 : index
    %26 = vector.load %arg8[%c0_17, %c0_18, %c0_19] : memref<4x32x1xf32, #tpu.memory_space<vmem>>, vector<1x32x1xf32>
    %27 = vector.shape_cast %26 : vector<1x32x1xf32> to vector<32x1xf32>
    %28 = vector.shape_cast %25 : vector<32x1xf32> to vector<1x32x1xf32>
    tpu.vector_store %arg8[%c0_17, %c0_18, %c0_19], %28 {strides = array<i32>} : memref<4x32x1xf32, #tpu.memory_space<vmem>>, vector<1x32x1xf32>,
    %c0_20 = arith.constant 0 : index
    %c0_21 = arith.constant 0 : index
    %c0_22 = arith.constant 0 : index
    %29 = vector.load %arg7[%c0_20, %c0_21, %c0_22] : memref<4x32x1xf32, #tpu.memory_space<vmem>>, vector<1x32x1xf32>
    %30 = vector.shape_cast %29 : vector<1x32x1xf32> to vector<32x1xf32>
    %31 = vector.shape_cast %14 : vector<32x1xf32> to vector<1x32x1xf32>
    tpu.vector_store %arg7[%c0_20, %c0_21, %c0_22], %31 {strides = array<i32>} : memref<4x32x1xf32, #tpu.memory_space<vmem>>, vector<1x32x1xf32>,
    %c0_23 = arith.constant 0 : index
    %c0_24 = arith.constant 0 : index
    %32 = vector.load %arg9[%c0_23, %c0_24] : memref<32x256xf32, #tpu.memory_space<vmem>>, vector<32x64xf32>
    %33 = vector.broadcast %16 : vector<32x1xf32> to vector<32x64xf32>
    %34 = arith.mulf %33, %32 : vector<32x64xf32>
    %cst_25 = arith.constant dense<0.000000e+00> : vector<32x64xf32>
    %35 = tpu.matmul %19, %8, %cst_25 {dimension_numbers = #tpu.dot_dimension_numbers<[1], [0], [0], [1], [0, 0, 1, 1], [], []>} : vector<32x32xf32>, vector<32x64xf32>, vector<32x64xf32> -> vector<32x64xf32>
    %36 = arith.addf %34, %35 : vector<32x64xf32>
    %c0_26 = arith.constant 0 : index
    %c0_27 = arith.constant 0 : index
    %37 = vector.load %arg9[%c0_26, %c0_27] : memref<32x256xf32, #tpu.memory_space<vmem>>, vector<32x64xf32>
    tpu.vector_store %arg9[%c0_26, %c0_27], %36 {strides = array<i32>} : memref<32x256xf32, #tpu.memory_space<vmem>>, vector<32x64xf32>,
    %c0_28 = arith.constant 0 : index
    %c0_29 = arith.constant 0 : index
    %c64 = arith.constant 64 : index
    %38 = vector.load %arg3[%c0_28, %c0_29, %c64] : memref<1x32x256xf32, #tpu.memory_space<vmem>>, vector<1x32x64xf32>
    %39 = vector.shape_cast %38 : vector<1x32x64xf32> to vector<32x64xf32>
    %c0_30 = arith.constant 0 : index
    %c0_31 = arith.constant 0 : index
    %c64_32 = arith.constant 64 : index
    %40 = vector.load %arg4[%c0_30, %c0_31, %c64_32] : memref<1x32x256xf32, #tpu.memory_space<vmem>>, vector<1x32x64xf32>
    %41 = vector.shape_cast %40 : vector<1x32x64xf32> to vector<32x64xf32>
    %c0_33 = arith.constant 0 : index
    %c0_34 = arith.constant 0 : index
    %c64_35 = arith.constant 64 : index
    %42 = vector.load %arg5[%c0_33, %c0_34, %c64_35] : memref<1x32x256xf32, #tpu.memory_space<vmem>>, vector<1x32x64xf32>
    %43 = vector.shape_cast %42 : vector<1x32x64xf32> to vector<32x64xf32>
    %cst_36 = arith.constant dense<0.000000e+00> : vector<32x32xf32>
    %44 = tpu.matmul %39, %41, %cst_36 {dimension_numbers = #tpu.dot_dimension_numbers<[1], [1], [0], [0], [0, 0, 1, 0], [], []>} : vector<32x64xf32>, vector<32x64xf32>, vector<32x32xf32> -> vector<32x32xf32>
    %c1 = arith.constant 1 : index
    %c0_37 = arith.constant 0 : index
    %c0_38 = arith.constant 0 : index
    %45 = vector.load %arg7[%c1, %c0_37, %c0_38] : memref<4x32x1xf32, #tpu.memory_space<vmem>>, vector<1x32x1xf32>
    %46 = vector.shape_cast %45 : vector<1x32x1xf32> to vector<32x1xf32>
    %cst_39 = arith.constant dense<0xFF800000> : vector<32xf32>
    %47 = vector.multi_reduction <maximumf>, %44, %cst_39 [1] : vector<32x32xf32> to vector<32xf32>
    %48 = vector.shape_cast %47 : vector<32xf32> to vector<32x1xf32>
    %49 = arith.maximumf %46, %48 : vector<32x1xf32>
    %50 = arith.subf %46, %49 : vector<32x1xf32>
    %51 = math.exp %50 : vector<32x1xf32>
    %52 = vector.broadcast %49 : vector<32x1xf32> to vector<32x32xf32>
    %53 = arith.subf %44, %52 : vector<32x32xf32>
    %54 = math.exp %53 : vector<32x32xf32>
    %c1_40 = arith.constant 1 : index
    %c0_41 = arith.constant 0 : index
    %c0_42 = arith.constant 0 : index
    %55 = vector.load %arg8[%c1_40, %c0_41, %c0_42] : memref<4x32x1xf32, #tpu.memory_space<vmem>>, vector<1x32x1xf32>
    %56 = vector.shape_cast %55 : vector<1x32x1xf32> to vector<32x1xf32>
    %57 = arith.mulf %51, %56 : vector<32x1xf32>
    %cst_43 = arith.constant dense<0.000000e+00> : vector<32xf32>
    %58 = vector.multi_reduction <add>, %54, %cst_43 [1] : vector<32x32xf32> to vector<32xf32>
    %59 = vector.shape_cast %58 : vector<32xf32> to vector<32x1xf32>
    %60 = arith.addf %57, %59 : vector<32x1xf32>
    %c1_44 = arith.constant 1 : index
    %c0_45 = arith.constant 0 : index
    %c0_46 = arith.constant 0 : index
    %61 = vector.load %arg8[%c1_44, %c0_45, %c0_46] : memref<4x32x1xf32, #tpu.memory_space<vmem>>, vector<1x32x1xf32>
    %62 = vector.shape_cast %61 : vector<1x32x1xf32> to vector<32x1xf32>
    %63 = vector.shape_cast %60 : vector<32x1xf32> to vector<1x32x1xf32>
    tpu.vector_store %arg8[%c1_44, %c0_45, %c0_46], %63 {strides = array<i32>} : memref<4x32x1xf32, #tpu.memory_space<vmem>>, vector<1x32x1xf32>,
    %c1_47 = arith.constant 1 : index
    %c0_48 = arith.constant 0 : index
    %c0_49 = arith.constant 0 : index
    %64 = vector.load %arg7[%c1_47, %c0_48, %c0_49] : memref<4x32x1xf32, #tpu.memory_space<vmem>>, vector<1x32x1xf32>
    %65 = vector.shape_cast %64 : vector<1x32x1xf32> to vector<32x1xf32>
    %66 = vector.shape_cast %49 : vector<32x1xf32> to vector<1x32x1xf32>
    tpu.vector_store %arg7[%c1_47, %c0_48, %c0_49], %66 {strides = array<i32>} : memref<4x32x1xf32, #tpu.memory_space<vmem>>, vector<1x32x1xf32>,
    %c0_50 = arith.constant 0 : index
    %c64_51 = arith.constant 64 : index
    %67 = vector.load %arg9[%c0_50, %c64_51] : memref<32x256xf32, #tpu.memory_space<vmem>>, vector<32x64xf32>
    %68 = vector.broadcast %51 : vector<32x1xf32> to vector<32x64xf32>
    %69 = arith.mulf %68, %67 : vector<32x64xf32>
    %cst_52 = arith.constant dense<0.000000e+00> : vector<32x64xf32>
    %70 = tpu.matmul %54, %43, %cst_52 {dimension_numbers = #tpu.dot_dimension_numbers<[1], [0], [0], [1], [0, 0, 1, 1], [], []>} : vector<32x32xf32>, vector<32x64xf32>, vector<32x64xf32> -> vector<32x64xf32>
    %71 = arith.addf %69, %70 : vector<32x64xf32>
    %c0_53 = arith.constant 0 : index
    %c64_54 = arith.constant 64 : index
    %72 = vector.load %arg9[%c0_53, %c64_54] : memref<32x256xf32, #tpu.memory_space<vmem>>, vector<32x64xf32>
    tpu.vector_store %arg9[%c0_53, %c64_54], %71 {strides = array<i32>} : memref<32x256xf32, #tpu.memory_space<vmem>>, vector<32x64xf32>,
    %c0_55 = arith.constant 0 : index
    %c0_56 = arith.constant 0 : index
    %c128 = arith.constant 128 : index
    %73 = vector.load %arg3[%c0_55, %c0_56, %c128] : memref<1x32x256xf32, #tpu.memory_space<vmem>>, vector<1x32x64xf32>
    %74 = vector.shape_cast %73 : vector<1x32x64xf32> to vector<32x64xf32>
    %c0_57 = arith.constant 0 : index
    %c0_58 = arith.constant 0 : index
    %c128_59 = arith.constant 128 : index
    %75 = vector.load %arg4[%c0_57, %c0_58, %c128_59] : memref<1x32x256xf32, #tpu.memory_space<vmem>>, vector<1x32x64xf32>
    %76 = vector.shape_cast %75 : vector<1x32x64xf32> to vector<32x64xf32>
    %c0_60 = arith.constant 0 : index
    %c0_61 = arith.constant 0 : index
    %c128_62 = arith.constant 128 : index
    %77 = vector.load %arg5[%c0_60, %c0_61, %c128_62] : memref<1x32x256xf32, #tpu.memory_space<vmem>>, vector<1x32x64xf32>
    %78 = vector.shape_cast %77 : vector<1x32x64xf32> to vector<32x64xf32>
    %cst_63 = arith.constant dense<0.000000e+00> : vector<32x32xf32>
    %79 = tpu.matmul %74, %76, %cst_63 {dimension_numbers = #tpu.dot_dimension_numbers<[1], [1], [0], [0], [0, 0, 1, 0], [], []>} : vector<32x64xf32>, vector<32x64xf32>, vector<32x32xf32> -> vector<32x32xf32>
    %c2 = arith.constant 2 : index
    %c0_64 = arith.constant 0 : index
    %c0_65 = arith.constant 0 : index
    %80 = vector.load %arg7[%c2, %c0_64, %c0_65] : memref<4x32x1xf32, #tpu.memory_space<vmem>>, vector<1x32x1xf32>
    %81 = vector.shape_cast %80 : vector<1x32x1xf32> to vector<32x1xf32>
    %cst_66 = arith.constant dense<0xFF800000> : vector<32xf32>
    %82 = vector.multi_reduction <maximumf>, %79, %cst_66 [1] : vector<32x32xf32> to vector<32xf32>
    %83 = vector.shape_cast %82 : vector<32xf32> to vector<32x1xf32>
    %84 = arith.maximumf %81, %83 : vector<32x1xf32>
    %85 = arith.subf %81, %84 : vector<32x1xf32>
    %86 = math.exp %85 : vector<32x1xf32>
    %87 = vector.broadcast %84 : vector<32x1xf32> to vector<32x32xf32>
    %88 = arith.subf %79, %87 : vector<32x32xf32>
    %89 = math.exp %88 : vector<32x32xf32>
    %c2_67 = arith.constant 2 : index
    %c0_68 = arith.constant 0 : index
    %c0_69 = arith.constant 0 : index
    %90 = vector.load %arg8[%c2_67, %c0_68, %c0_69] : memref<4x32x1xf32, #tpu.memory_space<vmem>>, vector<1x32x1xf32>
    %91 = vector.shape_cast %90 : vector<1x32x1xf32> to vector<32x1xf32>
    %92 = arith.mulf %86, %91 : vector<32x1xf32>
    %cst_70 = arith.constant dense<0.000000e+00> : vector<32xf32>
    %93 = vector.multi_reduction <add>, %89, %cst_70 [1] : vector<32x32xf32> to vector<32xf32>
    %94 = vector.shape_cast %93 : vector<32xf32> to vector<32x1xf32>
    %95 = arith.addf %92, %94 : vector<32x1xf32>
    %c2_71 = arith.constant 2 : index
    %c0_72 = arith.constant 0 : index
    %c0_73 = arith.constant 0 : index
    %96 = vector.load %arg8[%c2_71, %c0_72, %c0_73] : memref<4x32x1xf32, #tpu.memory_space<vmem>>, vector<1x32x1xf32>
    %97 = vector.shape_cast %96 : vector<1x32x1xf32> to vector<32x1xf32>
    %98 = vector.shape_cast %95 : vector<32x1xf32> to vector<1x32x1xf32>
    tpu.vector_store %arg8[%c2_71, %c0_72, %c0_73], %98 {strides = array<i32>} : memref<4x32x1xf32, #tpu.memory_space<vmem>>, vector<1x32x1xf32>,
    %c2_74 = arith.constant 2 : index
    %c0_75 = arith.constant 0 : index
    %c0_76 = arith.constant 0 : index
    %99 = vector.load %arg7[%c2_74, %c0_75, %c0_76] : memref<4x32x1xf32, #tpu.memory_space<vmem>>, vector<1x32x1xf32>
    %100 = vector.shape_cast %99 : vector<1x32x1xf32> to vector<32x1xf32>
    %101 = vector.shape_cast %84 : vector<32x1xf32> to vector<1x32x1xf32>
    tpu.vector_store %arg7[%c2_74, %c0_75, %c0_76], %101 {strides = array<i32>} : memref<4x32x1xf32, #tpu.memory_space<vmem>>, vector<1x32x1xf32>,
    %c0_77 = arith.constant 0 : index
    %c128_78 = arith.constant 128 : index
    %102 = vector.load %arg9[%c0_77, %c128_78] : memref<32x256xf32, #tpu.memory_space<vmem>>, vector<32x64xf32>
    %103 = vector.broadcast %86 : vector<32x1xf32> to vector<32x64xf32>
    %104 = arith.mulf %103, %102 : vector<32x64xf32>
    %cst_79 = arith.constant dense<0.000000e+00> : vector<32x64xf32>
    %105 = tpu.matmul %89, %78, %cst_79 {dimension_numbers = #tpu.dot_dimension_numbers<[1], [0], [0], [1], [0, 0, 1, 1], [], []>} : vector<32x32xf32>, vector<32x64xf32>, vector<32x64xf32> -> vector<32x64xf32>
    %106 = arith.addf %104, %105 : vector<32x64xf32>
    %c0_80 = arith.constant 0 : index
    %c128_81 = arith.constant 128 : index
    %107 = vector.load %arg9[%c0_80, %c128_81] : memref<32x256xf32, #tpu.memory_space<vmem>>, vector<32x64xf32>
    tpu.vector_store %arg9[%c0_80, %c128_81], %106 {strides = array<i32>} : memref<32x256xf32, #tpu.memory_space<vmem>>, vector<32x64xf32>,
    %c0_82 = arith.constant 0 : index
    %c0_83 = arith.constant 0 : index
    %c192 = arith.constant 192 : index
    %108 = vector.load %arg3[%c0_82, %c0_83, %c192] : memref<1x32x256xf32, #tpu.memory_space<vmem>>, vector<1x32x64xf32>
    %109 = vector.shape_cast %108 : vector<1x32x64xf32> to vector<32x64xf32>
    %c0_84 = arith.constant 0 : index
    %c0_85 = arith.constant 0 : index
    %c192_86 = arith.constant 192 : index
    %110 = vector.load %arg4[%c0_84, %c0_85, %c192_86] : memref<1x32x256xf32, #tpu.memory_space<vmem>>, vector<1x32x64xf32>
    %111 = vector.shape_cast %110 : vector<1x32x64xf32> to vector<32x64xf32>
    %c0_87 = arith.constant 0 : index
    %c0_88 = arith.constant 0 : index
    %c192_89 = arith.constant 192 : index
    %112 = vector.load %arg5[%c0_87, %c0_88, %c192_89] : memref<1x32x256xf32, #tpu.memory_space<vmem>>, vector<1x32x64xf32>
    %113 = vector.shape_cast %112 : vector<1x32x64xf32> to vector<32x64xf32>
    %cst_90 = arith.constant dense<0.000000e+00> : vector<32x32xf32>
    %114 = tpu.matmul %109, %111, %cst_90 {dimension_numbers = #tpu.dot_dimension_numbers<[1], [1], [0], [0], [0, 0, 1, 0], [], []>} : vector<32x64xf32>, vector<32x64xf32>, vector<32x32xf32> -> vector<32x32xf32>
    %c3 = arith.constant 3 : index
    %c0_91 = arith.constant 0 : index
    %c0_92 = arith.constant 0 : index
    %115 = vector.load %arg7[%c3, %c0_91, %c0_92] : memref<4x32x1xf32, #tpu.memory_space<vmem>>, vector<1x32x1xf32>
    %116 = vector.shape_cast %115 : vector<1x32x1xf32> to vector<32x1xf32>
    %cst_93 = arith.constant dense<0xFF800000> : vector<32xf32>
    %117 = vector.multi_reduction <maximumf>, %114, %cst_93 [1] : vector<32x32xf32> to vector<32xf32>
    %118 = vector.shape_cast %117 : vector<32xf32> to vector<32x1xf32>
    %119 = arith.maximumf %116, %118 : vector<32x1xf32>
    %120 = arith.subf %116, %119 : vector<32x1xf32>
    %121 = math.exp %120 : vector<32x1xf32>
    %122 = vector.broadcast %119 : vector<32x1xf32> to vector<32x32xf32>
    %123 = arith.subf %114, %122 : vector<32x32xf32>
    %124 = math.exp %123 : vector<32x32xf32>
    %c3_94 = arith.constant 3 : index
    %c0_95 = arith.constant 0 : index
    %c0_96 = arith.constant 0 : index
    %125 = vector.load %arg8[%c3_94, %c0_95, %c0_96] : memref<4x32x1xf32, #tpu.memory_space<vmem>>, vector<1x32x1xf32>
    %126 = vector.shape_cast %125 : vector<1x32x1xf32> to vector<32x1xf32>
    %127 = arith.mulf %121, %126 : vector<32x1xf32>
    %cst_97 = arith.constant dense<0.000000e+00> : vector<32xf32>
    %128 = vector.multi_reduction <add>, %124, %cst_97 [1] : vector<32x32xf32> to vector<32xf32>
    %129 = vector.shape_cast %128 : vector<32xf32> to vector<32x1xf32>
    %130 = arith.addf %127, %129 : vector<32x1xf32>
    %c3_98 = arith.constant 3 : index
    %c0_99 = arith.constant 0 : index
    %c0_100 = arith.constant 0 : index
    %131 = vector.load %arg8[%c3_98, %c0_99, %c0_100] : memref<4x32x1xf32, #tpu.memory_space<vmem>>, vector<1x32x1xf32>
    %132 = vector.shape_cast %131 : vector<1x32x1xf32> to vector<32x1xf32>
    %133 = vector.shape_cast %130 : vector<32x1xf32> to vector<1x32x1xf32>
    tpu.vector_store %arg8[%c3_98, %c0_99, %c0_100], %133 {strides = array<i32>} : memref<4x32x1xf32, #tpu.memory_space<vmem>>, vector<1x32x1xf32>,
    %c3_101 = arith.constant 3 : index
    %c0_102 = arith.constant 0 : index
    %c0_103 = arith.constant 0 : index
    %134 = vector.load %arg7[%c3_101, %c0_102, %c0_103] : memref<4x32x1xf32, #tpu.memory_space<vmem>>, vector<1x32x1xf32>
    %135 = vector.shape_cast %134 : vector<1x32x1xf32> to vector<32x1xf32>
    %136 = vector.shape_cast %119 : vector<32x1xf32> to vector<1x32x1xf32>
    tpu.vector_store %arg7[%c3_101, %c0_102, %c0_103], %136 {strides = array<i32>} : memref<4x32x1xf32, #tpu.memory_space<vmem>>, vector<1x32x1xf32>,
    %c0_104 = arith.constant 0 : index
    %c192_105 = arith.constant 192 : index
    %137 = vector.load %arg9[%c0_104, %c192_105] : memref<32x256xf32, #tpu.memory_space<vmem>>, vector<32x64xf32>
    %138 = vector.broadcast %121 : vector<32x1xf32> to vector<32x64xf32>
    %139 = arith.mulf %138, %137 : vector<32x64xf32>
    %cst_106 = arith.constant dense<0.000000e+00> : vector<32x64xf32>
    %140 = tpu.matmul %124, %113, %cst_106 {dimension_numbers = #tpu.dot_dimension_numbers<[1], [0], [0], [1], [0, 0, 1, 1], [], []>} : vector<32x32xf32>, vector<32x64xf32>, vector<32x64xf32> -> vector<32x64xf32>
    %141 = arith.addf %139, %140 : vector<32x64xf32>
    %c0_107 = arith.constant 0 : index
    %c192_108 = arith.constant 192 : index
    %142 = vector.load %arg9[%c0_107, %c192_108] : memref<32x256xf32, #tpu.memory_space<vmem>>, vector<32x64xf32>
    tpu.vector_store %arg9[%c0_107, %c192_108], %141 {strides = array<i32>} : memref<32x256xf32, #tpu.memory_space<vmem>>, vector<32x64xf32>,
    %c0_i32_109 = arith.constant 0 : i32
    %143 = arith.cmpi eq, %arg2, %c0_i32_109 : i32
    %144 = arith.extui %143 : i1 to i32
    %c0_i32_110 = arith.constant 0 : i32
    %145 = arith.cmpi ne, %144, %c0_i32_110 : i32
    scf.if %145 {
      %c0_111 = arith.constant 0 : index
      %c0_112 = arith.constant 0 : index
      %c0_113 = arith.constant 0 : index
      %146 = vector.load %arg8[%c0_111, %c0_112, %c0_113] : memref<4x32x1xf32, #tpu.memory_space<vmem>>, vector<1x32x1xf32>
      %147 = vector.shape_cast %146 : vector<1x32x1xf32> to vector<32x1xf32>
      %148 = tpu.reciprocal %147 : vector<32x1xf32> -> vector<32x1xf32>
      %c0_114 = arith.constant 0 : index
      %c0_115 = arith.constant 0 : index
      %149 = vector.load %arg9[%c0_114, %c0_115] : memref<32x256xf32, #tpu.memory_space<vmem>>, vector<32x64xf32>
      %150 = vector.broadcast %148 : vector<32x1xf32> to vector<32x64xf32>
      %151 = arith.mulf %149, %150 : vector<32x64xf32>
      %c0_116 = arith.constant 0 : index
      %c0_117 = arith.constant 0 : index
      %152 = vector.load %arg9[%c0_116, %c0_117] : memref<32x256xf32, #tpu.memory_space<vmem>>, vector<32x64xf32>
      tpu.vector_store %arg9[%c0_116, %c0_117], %151 {strides = array<i32>} : memref<32x256xf32, #tpu.memory_space<vmem>>, vector<32x64xf32>,
      %c1_118 = arith.constant 1 : index
      %c0_119 = arith.constant 0 : index
      %c0_120 = arith.constant 0 : index
      %153 = vector.load %arg8[%c1_118, %c0_119, %c0_120] : memref<4x32x1xf32, #tpu.memory_space<vmem>>, vector<1x32x1xf32>
      %154 = vector.shape_cast %153 : vector<1x32x1xf32> to vector<32x1xf32>
      %155 = tpu.reciprocal %154 : vector<32x1xf32> -> vector<32x1xf32>
      %c0_121 = arith.constant 0 : index
      %c64_122 = arith.constant 64 : index
      %156 = vector.load %arg9[%c0_121, %c64_122] : memref<32x256xf32, #tpu.memory_space<vmem>>, vector<32x64xf32>
      %157 = vector.broadcast %155 : vector<32x1xf32> to vector<32x64xf32>
      %158 = arith.mulf %156, %157 : vector<32x64xf32>
      %c0_123 = arith.constant 0 : index
      %c64_124 = arith.constant 64 : index
      %159 = vector.load %arg9[%c0_123, %c64_124] : memref<32x256xf32, #tpu.memory_space<vmem>>, vector<32x64xf32>
      tpu.vector_store %arg9[%c0_123, %c64_124], %158 {strides = array<i32>} : memref<32x256xf32, #tpu.memory_space<vmem>>, vector<32x64xf32>,
      %c2_125 = arith.constant 2 : index
      %c0_126 = arith.constant 0 : index
      %c0_127 = arith.constant 0 : index
      %160 = vector.load %arg8[%c2_125, %c0_126, %c0_127] : memref<4x32x1xf32, #tpu.memory_space<vmem>>, vector<1x32x1xf32>
      %161 = vector.shape_cast %160 : vector<1x32x1xf32> to vector<32x1xf32>
      %162 = tpu.reciprocal %161 : vector<32x1xf32> -> vector<32x1xf32>
      %c0_128 = arith.constant 0 : index
      %c128_129 = arith.constant 128 : index
      %163 = vector.load %arg9[%c0_128, %c128_129] : memref<32x256xf32, #tpu.memory_space<vmem>>, vector<32x64xf32>
      %164 = vector.broadcast %162 : vector<32x1xf32> to vector<32x64xf32>
      %165 = arith.mulf %163, %164 : vector<32x64xf32>
      %c0_130 = arith.constant 0 : index
      %c128_131 = arith.constant 128 : index
      %166 = vector.load %arg9[%c0_130, %c128_131] : memref<32x256xf32, #tpu.memory_space<vmem>>, vector<32x64xf32>
      tpu.vector_store %arg9[%c0_130, %c128_131], %165 {strides = array<i32>} : memref<32x256xf32, #tpu.memory_space<vmem>>, vector<32x64xf32>,
      %c3_132 = arith.constant 3 : index
      %c0_133 = arith.constant 0 : index
      %c0_134 = arith.constant 0 : index
      %167 = vector.load %arg8[%c3_132, %c0_133, %c0_134] : memref<4x32x1xf32, #tpu.memory_space<vmem>>, vector<1x32x1xf32>
      %168 = vector.shape_cast %167 : vector<1x32x1xf32> to vector<32x1xf32>
      %169 = tpu.reciprocal %168 : vector<32x1xf32> -> vector<32x1xf32>
      %c0_135 = arith.constant 0 : index
      %c192_136 = arith.constant 192 : index
      %170 = vector.load %arg9[%c0_135, %c192_136] : memref<32x256xf32, #tpu.memory_space<vmem>>, vector<32x64xf32>
      %171 = vector.broadcast %169 : vector<32x1xf32> to vector<32x64xf32>
      %172 = arith.mulf %170, %171 : vector<32x64xf32>
      %c0_137 = arith.constant 0 : index
      %c192_138 = arith.constant 192 : index
      %173 = vector.load %arg9[%c0_137, %c192_138] : memref<32x256xf32, #tpu.memory_space<vmem>>, vector<32x64xf32>
      tpu.vector_store %arg9[%c0_137, %c192_138], %172 {strides = array<i32>} : memref<32x256xf32, #tpu.memory_space<vmem>>, vector<32x64xf32>,
      %c0_139 = arith.constant 0 : index
      %c0_140 = arith.constant 0 : index
      %174 = vector.load %arg9[%c0_139, %c0_140] : memref<32x256xf32, #tpu.memory_space<vmem>>, vector<32x256xf32>
      %c0_141 = arith.constant 0 : index
      %c0_142 = arith.constant 0 : index
      %c0_143 = arith.constant 0 : index
      %175 = vector.load %arg6[%c0_141, %c0_142, %c0_143] : memref<1x32x256xf32, #tpu.memory_space<vmem>>, vector<1x32x256xf32>
      %176 = vector.shape_cast %175 : vector<1x32x256xf32> to vector<32x256xf32>
      %177 = vector.shape_cast %174 : vector<32x256xf32> to vector<1x32x256xf32>
      tpu.vector_store %arg6[%c0_141, %c0_142, %c0_143], %177 {strides = array<i32>} : memref<1x32x256xf32, #tpu.memory_space<vmem>>, vector<1x32x256xf32>,
    } else {
    }
    return
  }
  func.func @transform_0(%arg0: i32, %arg1: i32, %arg2: i32) -> (i32, i32, i32) {
    %c0_i32 = arith.constant 0 : i32
    %c0_i32_0 = arith.constant 0 : i32
    return %arg0, %arg1, %c0_i32 : i32, i32, i32
  }
  func.func @transform_1(%arg0: i32, %arg1: i32, %arg2: i32) -> (i32, i32, i32) {
    %c0_i32 = arith.constant 0 : i32
    %c0_i32_0 = arith.constant 0 : i32
    return %arg0, %arg2, %c0_i32 : i32, i32, i32
  }
  func.func @transform_2(%arg0: i32, %arg1: i32, %arg2: i32) -> (i32, i32, i32) {
    %c0_i32 = arith.constant 0 : i32
    %c0_i32_0 = arith.constant 0 : i32
    return %arg0, %arg2, %c0_i32 : i32, i32, i32
  }
  func.func @transform_3(%arg0: i32, %arg1: i32, %arg2: i32) -> (i32, i32, i32) {
    %c0_i32 = arith.constant 0 : i32
    %c0_i32_0 = arith.constant 0 : i32
    return %arg0, %arg1, %c0_i32 : i32, i32, i32
  }
}

</mosaic_0001>

<bundles_post_ra>
// kernel: multi_head_attention.3
= control target key start
LH: loop header
LB: loop body
LE: loop exit
PB: predicated region body
PF: predicated region fallthrough
CT: control target
= control target key end

     0   :  { %8 = vsyncpa [#allocation6], 0  ;;  %s3157_s0 = inlined_call_operand.vmem [shape: f32[2,32,256], index: 0, kind: input, shape index: {}]   ;;  %s3158_s1 = inlined_call_operand.vmem [shape: f32[2,32,256], index: 1, kind: input, shape index: {}]   ;;  %s3159_s2 = inlined_call_operand.vmem [shape: f32[2,32,256], index: 2, kind: input, shape index: {}]   ;;  %s3160_s3 = inlined_call_operand.hbm [shape: f32[2,32,256], index: 3, kind: output, shape index: {}]  }
   0x1   :  { %10 = vsyncpa [#allocation6 + $0x1], 0  ;;  %s2280_s12 = smov 0   ;;  %s2282_s13 = smov 0  }
   0x2   :  { %s2284_s14 = smov 0   ;;  %s2286_s15 = smov 0  }
   0x3   :  { %s2288_s16 = smov 0   ;;  %s2290_s17 = smov 0  }
   0x4 LB: > { %s1924_s18 = sadd.s32 4294967295, %s2252_s17   ;;  %s1925_s19 = sadd.s32 4294967294, %s2252_s17   ;;  %s2252_s17 = sphi %s2290_s17, %s16_s17   ;;  %s2248_s16 = sphi %s2288_s16, %s3175_s16   ;;  %s2244_s15 = sphi %s2286_s15, %s3174_s15   ;;  %s2240_s14 = sphi %s2284_s14, %s3173_s14   ;;  %s2236_s13 = sphi %s2282_s13, %s3172_s13   ;;  %s2232_s12 = sphi %s2280_s12, %s3171_s12  }
   0x5   : > { %s35_s20 = sadd.s32 1, %s2248_s16  ;;  %s128_s21 = sadd.s32 1, %s2240_s14 }
   0x6   : > { %p37_p0 = scmp.ge.s32.totalorder %s35_s20, 2  ;;  %p138_p1 = scmp.ne.s32.totalorder %s2240_s14, %s2236_s13 }
   0x7   : > { %p139_p2 = scmp.eq.s32.totalorder %s1924_s18, 1  ;;  %p144_p3 = scmp.ne.s32.totalorder %s2236_s13, %s2232_s12 }
   0x8   : > { %s3177_s20 = smov (%p37_p0, %s35_s20), 0  ;;  %p145_p5 = scmp.eq.s32.totalorder %s1925_s19, 1 }
   0x9   : > { %p2320_p4 = por %p139_p2, %p138_p1  ;;  %s123_s23 = ssub.s32 %s2248_s16, %s3177_s20 }
   0xa   : > { %p1928_p6 = scmp.ge.s32.totalorder %s2252_s17, 1  ;;  %p126_p7 = scmp.eq.s32.totalorder %s123_s23, 0 }
   0xb   : > { %p2327_p8 = por %p145_p5, %p144_p3  ;;  %p205_p9 = scmp.lt.s32.totalorder %s2252_s17, 3 }
   0xc   : > { %s2333_s25 = scalar_select %p126_p7, %s2240_s14, %s128_s21  }
   0xd   : > { %p206_p10 = pnand %p1928_p6, %p205_p9 }
   0xe   : > { %p255_p11 = scmp.lt.s32.totalorder (!%p206_p10), %s2244_s15, 1  ;;  %s2254_s7 = smov (!%p206_p10), 64  }
   0xf   : > { %209 = sbr.rel (%p206_p10) target bundleno = 1325 (0x52d), region = 32  ;;  %s251_s11 = sand.u32 (!%p206_p10), 1, %s2236_s13  }
  0x10   : > { %s1929_s18 = sshll.u32 (!%p206_p10), %s251_s11, 6  ;;  %s1992_s21 = sshll.u32 (!%p206_p10), %s2244_s15, 6 }
  0x11   : > { %s3089_s19 = scalar_lea.vmem (!%p206_p10), [#allocation5], %s1929_s18 }
  0x12   : > { %s1794_s28 = sshll.u32 (!%p206_p10), %s3089_s19, 4  ;;  %s1795_s28 = int_to_ptr.vmem [resolvable:$true] %s1794_s28 }
  0x14   : > { %s256_s26 = scalar_select %p255_p11, %s2244_s15, 1  ;;  %vm345_vm0 = vcmask 523264   ;;  %vm292_vm1 = vcmask 7168   ;;  %v2255_v26 = vmov -inf   ;;  %vm403_vm2 = vcmask 261120  }
  0x15   : > { %293 = vst.msk [vmem:[#allocation2] sm:$0xff] %vm292_vm1, %v2255_v26  ;;  %v2256_v40 = vmov 0   ;;  %vm858_vm3 = vcmask 1048064   ;;  %s1779_s15 = scalar_lea.sflag [#allocation6], %s251_s11 }
  0x16   : > { %s2337_s27 = sshll.u32 %s256_s26, 6  ;;  %294 = vst.msk [vmem:[#allocation2 + $0x8] sm:$0xff] %vm292_vm1, %v2255_v26  ;;  %2054 = vset.pattern.permute.xlu2 %v2256_v40  ;;  %2055 = vset.pattern.permute.xlu0 %v2256_v40 }
  0x17   : > { %s2343_s30 = scalar_lea.vmem %s3158_s1, %s2337_s27  ;;  %s2349_s6 = scalar_lea.vmem %s3157_s0, %s2337_s27  ;;  %295 = vst.msk [vmem:[#allocation2 + $0x10] sm:$0xff] %vm292_vm1, %v2255_v26  ;;  %2066 = vset.pattern.permute.xlu1 %v2256_v40 }
  0x18   : > { %v340_v0 = vld [vmem:[%s2343_s30 + $0x30] sm:$0xff]  ;;  %v576_v1 = vld [vmem:[%s2349_s6 + $0x20] sm:$0xff]  ;;  %v2370_v8 = vld [vmem:[%s2343_s30 + $0x38] sm:$0xff]  ;;  %296 = vst.msk [vmem:[#allocation2 + $0x18] sm:$0xff] %vm292_vm1, %v2255_v26  ;;  %s2467_s10 = scalar_lea.vmem %s3159_s2, %s2337_s27  ;;  %s1793_s27 = scalar_lea.hbm %s3160_s3, %s1992_s21 }
  0x19   : > { %1936 = vmatpush.xpose.msk.msra.mxu0 %vm345_vm0, %v340_v0  ;;  %594 = vrot.lane.b32.xlu1 %v576_v1, %s2254_s7  ;;  %v574_v2 = vld [vmem:[%s2349_s6] sm:$0xff]  ;;  %v575_v4 = vld [vmem:[%s2349_s6 + $0x10] sm:$0xff]  ;;  %v2378_v9 = vld [vmem:[%s2343_s30 + $0x18] sm:$0xff]  ;;  %297 = vst.msk [vmem:[#allocation2 + $0x20] sm:$0xff] %vm292_vm1, %v2255_v26  ;;  %s1796_s29 = sshll.u32 %s1793_s27, 4  ;;  %s1797_s29 = int_to_ptr.hbm [resolvable:$true] %s1796_s29 }
  0x1a   : > { %v339_v3 = vld [vmem:[%s2343_s30 + $0x20] sm:$0xff]  ;;  %590 = vrot.lane.b32.xlu0 %v574_v2, %s2254_s7  ;;  %592 = vrot.lane.b32.xlu2 %v575_v4, %s2254_s7  ;;  %v338_v5 = vld [vmem:[%s2343_s30 + $0x10] sm:$0xff]  ;;  %298 = vst.msk [vmem:[#allocation2 + $0x28] sm:$0xff] %vm292_vm1, %v2255_v26 }
  0x1b   : > { %v577_v6 = vld [vmem:[%s2349_s6 + $0x30] sm:$0xff]  ;;  %v337_v7 = vld [vmem:[%s2343_s30] sm:$0xff]  ;;  %v2382_v10 = vld [vmem:[%s2343_s30 + $0x28] sm:$0xff]  ;;  %299 = vst.msk [vmem:[#allocation2 + $0x30] sm:$0xff] %vm292_vm1, %v2255_v26 }
  0x1c   : > { %v2389_v11 = vld [vmem:[%s2349_s6 + $0x8] sm:$0xff]  ;;  %v2403_v14 = vld [vmem:[%s2349_s6 + $0x18] sm:$0xff]  ;;  %300 = vst.msk [vmem:[#allocation2 + $0x38] sm:$0xff] %vm292_vm1, %v2255_v26  ;;  %v399_v42 = vld [vmem:[#allocation2] sm:$0xff] }
  0x1d   : > { %1937 = vmatpush.xpose.msk.msra.mxu0 %vm345_vm0, %v339_v3  ;;  %v2393_v12 = vld [vmem:[%s2343_s30 + $0x8] sm:$0xff]  ;;  %v2413_v23 = vld [vmem:[%s2349_s6 + $0x38] sm:$0xff]  ;;  %301 = vst.msk [vmem:[#allocation2 + $0x40] sm:$0xff] %vm292_vm1, %v2255_v26  ;;  %v585_v46 = vld [vmem:[%s2467_s10 + $0x30] sm:$0xff]  ;;  %s2188_s30 = sshra.s32 %s1797_s29, 4  ;;  %s2189_s30 = int_to_ptr.hbm [resolvable:$true] %s2188_s30 }
  0x1e   : > { %v2400_v13 = vld [vmem:[%s2349_s6 + $0x28] sm:$0xff]  ;;  %302 = vst.msk [vmem:[#allocation2 + $0x48] sm:$0xff] %vm292_vm1, %v2255_v26  ;;  %549 = vmatpush.msra.mxu1 %v585_v46  ;;  %v584_v49 = vld [vmem:[%s2467_s10 + $0x20] sm:$0xff]  ;;  %v401_v55 = vld [vmem:[#allocation2 + $0x10] sm:$0xff]  ;;  %s2190_s4 = scalar_lea.hbm %s2189_s30, 64  ;;  %p2195_p1 = scmp.lt.s32.totalorder %s2189_s30, %s3160_s3 }
  0x1f   : > { %303 = vst.msk [vmem:[#allocation2 + $0x50] sm:$0xff] %vm292_vm1, %v2255_v26  ;;  %v2471_v48 = vld [vmem:[#allocation2 + $0x8] sm:$0xff]  ;;  %v2061_v59 = vpack.i.bf16 %v585_v46, %v584_v49  ;;  %p2191_p12 = scmp.ne.s32.totalorder %s2189_s30, %s2190_s4 }
  0x20   : > { %304 = vst.msk [vmem:[#allocation2 + $0x58] sm:$0xff] %vm292_vm1, %v2255_v26  ;;  %550 = vmatpush.msra.mxu1 %v584_v49  ;;  %v2587_v46 = vld [vmem:[%s2467_s10 + $0x8] sm:$0xff] }
  0x21   : > { %1938 = vmatpush.xpose.msk.msra.mxu0 %vm345_vm0, %v338_v5  ;;  %608 = vrot.lane.b32.xlu1 %v340_v0, %s2254_s7  ;;  %305 = vst.msk [vmem:[#allocation2 + $0x60] sm:$0xff] %vm292_vm1, %v2255_v26  ;;  %p2192_p13 = pnand %p2191_p12, %p2320_p4 }
  0x22   : > { %602 = vrot.lane.b32.xlu0 %v337_v7, %s2254_s7  ;;  %596 = vrot.lane.b32.xlu2 %v577_v6, %s2254_s7  ;;  %306 = vst.msk [vmem:[#allocation2 + $0x68] sm:$0xff] %vm292_vm1, %v2255_v26 }
  0x23   : > { %307 = vst.msk [vmem:[#allocation2 + $0x70] sm:$0xff] %vm292_vm1, %v2255_v26  ;;  %p2193_p0 = pneg %p2192_p13 }
  0x24   : > { %308 = vst.msk [vmem:[#allocation2 + $0x78] sm:$0xff] %vm292_vm1, %v2255_v26 }
  0x25   : > { %1939 = vmatpush.xpose.msk.msra.mxu0 %vm345_vm0, %v337_v7  ;;  %v2512_v7 = vld [vmem:[%s2467_s10 + $0x10] sm:$0xff] }
  0x26   : > { %551 = vmatpush.msra.mxu1 %v2512_v7 }
  0x28   : > { %1940 = vmatmul.msk.f32.vlgmr.msra.gmra.mxu0 %vm345_vm0, %v574_v2 }
  0x29   : > { %604 = vrot.lane.b32.xlu1 %v338_v5, %s2254_s7  ;;  %v2257_v5 = vmov 0.0  }
  0x2a   : > { %1137 = vrot.lane.b32.xlu0 %v2370_v8, %s2254_s7  ;;  %606 = vrot.lane.b32.xlu2 %v339_v3, %s2254_s7  ;;  %325 = vst [vmem:[#allocation4] sm:$0xff] %v2257_v5 }
  0x2b   : > { %309 = vst.msk [vmem:[#allocation3] sm:$0xff] %vm292_vm1, %v2257_v5 }
  0x2c   : > { %310 = vst.msk [vmem:[#allocation3 + $0x8] sm:$0xff] %vm292_vm1, %v2257_v5 }
  0x2d   : > { %311 = vst.msk [vmem:[#allocation3 + $0x10] sm:$0xff] %vm292_vm1, %v2257_v5 }
  0x2e   : > { %312 = vst.msk [vmem:[#allocation3 + $0x18] sm:$0xff] %vm292_vm1, %v2257_v5 }
  0x2f   : > { %313 = vst.msk [vmem:[#allocation3 + $0x20] sm:$0xff] %vm292_vm1, %v2257_v5 }
  0x30   : > { %1941 = vmatmul.msk.f32.gmra.mxu0 %vm345_vm0, %v575_v4  ;;  %314 = vst.msk [vmem:[#allocation3 + $0x28] sm:$0xff] %vm292_vm1, %v2257_v5 }
  0x31   : > { %315 = vst.msk [vmem:[#allocation3 + $0x30] sm:$0xff] %vm292_vm1, %v2257_v5 }
  0x32   : > { %1133 = vrot.lane.b32.xlu0 %v2378_v9, %s2254_s7  ;;  %1135 = vrot.lane.b32.xlu2 %v2382_v10, %s2254_s7  ;;  %316 = vst.msk [vmem:[#allocation3 + $0x38] sm:$0xff] %vm292_vm1, %v2257_v5 }
  0x33   : > { %317 = vst.msk [vmem:[#allocation3 + $0x40] sm:$0xff] %vm292_vm1, %v2257_v5 }
  0x34   : > { %318 = vst.msk [vmem:[#allocation3 + $0x48] sm:$0xff] %vm292_vm1, %v2257_v5 }
  0x35   : > { %319 = vst.msk [vmem:[#allocation3 + $0x50] sm:$0xff] %vm292_vm1, %v2257_v5 }
  0x36   : > { %320 = vst.msk [vmem:[#allocation3 + $0x58] sm:$0xff] %vm292_vm1, %v2257_v5 }
  0x37   : > { %321 = vst.msk [vmem:[#allocation3 + $0x60] sm:$0xff] %vm292_vm1, %v2257_v5 }
  0x38   : > { %1942 = vmatmul.msk.f32.gmra.mxu0 %vm345_vm0, %v576_v1  ;;  %v402_v1 = vld [vmem:[#allocation2 + $0x18] sm:$0xff]  ;;  %322 = vst.msk [vmem:[#allocation3 + $0x68] sm:$0xff] %vm292_vm1, %v2257_v5 }
  0x39   : > { %323 = vst.msk [vmem:[#allocation3 + $0x70] sm:$0xff] %vm292_vm1, %v2257_v5 }
  0x3a   : > { %1119 = vrot.lane.b32.xlu0 %v2389_v11, %s2254_s7  ;;  %1131 = vrot.lane.b32.xlu2 %v2393_v12, %s2254_s7  ;;  %324 = vst.msk [vmem:[#allocation3 + $0x78] sm:$0xff] %vm292_vm1, %v2257_v5 }
  0x3b   : > { %326 = vst [vmem:[#allocation4 + $0x8] sm:$0xff] %v2257_v5 }
  0x3c   : > { %327 = vst [vmem:[#allocation4 + $0x10] sm:$0xff] %v2257_v5 }
  0x3d   : > { %328 = vst [vmem:[#allocation4 + $0x18] sm:$0xff] %v2257_v5 }
  0x3e   : > { %329 = vst [vmem:[#allocation4 + $0x20] sm:$0xff] %v2257_v5 }
  0x3f   : > { %330 = vst [vmem:[#allocation4 + $0x28] sm:$0xff] %v2257_v5 }
  0x40   : > { %1943 = vmatmul.msk.f32.gmra.mxu0 %vm345_vm0, %v577_v6  ;;  %331 = vst [vmem:[#allocation4 + $0x30] sm:$0xff] %v2257_v5 }
  0x41   : > { %332 = vst [vmem:[#allocation4 + $0x38] sm:$0xff] %v2257_v5 }
  0x42   : > { %1123 = vrot.lane.b32.xlu0 %v2400_v13, %s2254_s7  ;;  %1121 = vrot.lane.b32.xlu2 %v2403_v14, %s2254_s7 }
  0x4a   : > { %1125 = vrot.lane.b32.xlu2 %v2413_v23, %s2254_s7 }
  0x74   : > { %v593_v15 = vpop.permute.xlu2 %592 }
  0x7c   : > { %v597_v16 = vpop.permute.xlu2 %596 }
  0x84   : > { %v607_v20 = vpop.permute.xlu2 %606 }
  0x8b   : > { %v595_v17 = vpop.permute.xlu1 %594 }
  0x8c   : > { %v591_v18 = vpop.permute.xlu0 %590  ;;  %v1136_v25 = vpop.permute.xlu2 %1135 }
  0x93   : > { %v609_v19 = vpop.permute.xlu1 %608 }
  0x94   : > { %1948 = vmatpush.xpose.msk.msra.mxu2 %vm345_vm0, %v609_v19  ;;  %v603_v21 = vpop.permute.xlu0 %602  ;;  %v1132_v30 = vpop.permute.xlu2 %1131 }
  0x98   : > { %1949 = vmatpush.xpose.msk.msra.mxu2 %vm345_vm0, %v607_v20 }
  0x9b   : > { %v605_v22 = vpop.permute.xlu1 %604 }
  0x9c   : > { %1950 = vmatpush.xpose.msk.msra.mxu2 %vm345_vm0, %v605_v22  ;;  %v1138_v24 = vpop.permute.xlu0 %1137  ;;  %v1122_v34 = vpop.permute.xlu2 %1121 }
  0x9d   : > { %1972 = vmatpush.xpose.msk.msrb.mxu0 %vm345_vm0, %v1138_v24 }
  0xa0   : > { %1951 = vmatpush.xpose.msk.msra.mxu2 %vm345_vm0, %v603_v21 }
  0xa1   : > { %1973 = vmatpush.xpose.msk.msrb.mxu0 %vm345_vm0, %v1136_v25 }
  0xa3   : > { %1952 = vmatmul.msk.f32.vlgmr.msra.gmra.mxu2 %vm345_vm0, %v591_v18 }
  0xa4   : > { %v1134_v27 = vpop.permute.xlu0 %1133  ;;  %v1126_v41 = vpop.permute.xlu2 %1125 }
  0xa5   : > { %v2427_v28 = vpop.f32.mrf.mxu0  ;;  %1974 = vmatpush.xpose.msk.msrb.mxu0 %vm345_vm0, %v1134_v27 }
  0xa6   : > { %v404_v29 = vsel %vm403_vm2, %v2427_v28, -inf }
  0xa7   : > { %405 = vmax.xlane.f32.xlu0 %v404_v29 }
  0xa9   : > { %1975 = vmatpush.xpose.msk.msrb.mxu0 %vm345_vm0, %v1132_v30 }
  0xab   : > { %1953 = vmatmul.msk.f32.gmra.mxu2 %vm345_vm0, %v593_v15  ;;  %v2518_v15 = vld [vmem:[%s2467_s10] sm:$0xff] }
  0xac   : > { %v1120_v31 = vpop.permute.xlu0 %1119  ;;  %552 = vmatpush.msra.mxu1 %v2518_v15 }
  0xad   : > { %v2442_v32 = vpop.f32.mrf.mxu0  ;;  %1976 = vmatmul.msk.f32.vlgmr.msrb.gmra.mxu0 %vm345_vm0, %v1120_v31 }
  0xae   : > { %v407_v33 = vsel %vm403_vm2, %v2442_v32, -inf  ;;  %1960 = vmatpush.xpose.msk.msrb.mxu1 %vm345_vm0, %v2370_v8 }
  0xaf   : > { %408 = vmax.xlane.f32.xlu0 %v407_v33  ;;  %v656_v33 = vld [vmem:[#allocation2 + $0x20] sm:$0xff] }
  0xb2   : > { %1961 = vmatpush.xpose.msk.msrb.mxu1 %vm345_vm0, %v2382_v10 }
  0xb3   : > { %1954 = vmatmul.msk.f32.gmra.mxu2 %vm345_vm0, %v595_v17 }
  0xb4   : > { %v1124_v37 = vpop.permute.xlu0 %1123 }
  0xb5   : > { %v2451_v35 = vpop.f32.mrf.mxu0  ;;  %1977 = vmatmul.msk.f32.gmra.mxu0 %vm345_vm0, %v1122_v34 }
  0xb6   : > { %v410_v36 = vsel %vm403_vm2, %v2451_v35, -inf  ;;  %1962 = vmatpush.xpose.msk.msrb.mxu1 %vm345_vm0, %v2378_v9 }
  0xb7   : > { %411 = vmax.xlane.f32.xlu1 %v410_v36 }
  0xba   : > { %1963 = vmatpush.xpose.msk.msrb.mxu1 %vm345_vm0, %v2393_v12 }
  0xbb   : > { %1955 = vmatmul.msk.f32.gmra.mxu2 %vm345_vm0, %v597_v16 }
  0xbd   : > { %1978 = vmatmul.msk.f32.gmra.mxu0 %vm345_vm0, %v1124_v37  ;;  %v2458_v38 = vpop.f32.mrf.mxu0 }
  0xbe   : > { %v413_v39 = vsel %vm403_vm2, %v2458_v38, -inf }
  0xbf   : > { %414 = vmax.xlane.f32.xlu1 %v413_v39 }
  0xc5   : > { %1979 = vmatmul.msk.f32.gmra.mxu0 %vm345_vm0, %v1126_v41  ;;  %v2056_v41 = vpack.i.bf16 %v2512_v7, %v2518_v15  ;;  %v2625_v7 = vld [vmem:[#allocation2 + $0x60] sm:$0xff] }
 0x11a   : > { %v406_v43 = vpop.xlane.xlu0 %405 }
 0x11b   : > { %v416_v44 = vmax.f32 %v399_v42, %v406_v43 }
 0x11d   : > { %v420_v45 = vsub.f32 %v399_v42, %v416_v44  ;;  %493 = vst.msk [vmem:[#allocation2] sm:$0xff] %vm292_vm1, %v416_v44  ;;  %434 = vperm.xlu2 %2054, %v416_v44  }
 0x11f   : > { %v424_v47 = vmul.f32 1.442695, %v420_v45 }
 0x121   : > { %2077 = vpow2.f32 %v424_v47  ;;  %v2590_v47 = vld [vmem:[%s2467_s10 + $0x18] sm:$0xff] }
 0x122   : > { %v409_v50 = vpop.xlane.xlu0 %408 }
 0x123   : > { %v2475_v51 = vmax.f32 %v2471_v48, %v409_v50  ;;  %v2595_v50 = vld [vmem:[#allocation2 + $0x68] sm:$0xff] }
 0x125   : > { %v421_v52 = vsub.f32 %v2471_v48, %v2475_v51  ;;  %494 = vst.msk [vmem:[#allocation2 + $0x8] sm:$0xff] %vm292_vm1, %v2475_v51  ;;  %439 = vperm.xlu2 %2054, %v2475_v51   ;;  %v2072_v48 = vpack.i.bf16 %v2587_v46, %v2590_v47  ;;  %v2597_v51 = vld [vmem:[#allocation2 + $0x28] sm:$0xff] }
 0x126   : > { %v2482_v53 = vpop.f32.mrf.mxu2 }
 0x127   : > { %v660_v54 = vsel %vm403_vm2, %v2482_v53, -inf  ;;  %v2486_v56 = vpop.eup %2077  ;;  %v426_v12 = vmul.f32 1.442695, %v421_v52 }
 0x128   : > { %661 = vmax.xlane.f32.xlu1 %v660_v54 }
 0x12a   : > { %v412_v57 = vpop.xlane.xlu1 %411  ;;  %v2491_v60 = vpop.f32.mrf.mxu0 }
 0x12b   : > { %v418_v58 = vmax.f32 %v401_v55, %v412_v57  ;;  %v1189_v8 = vsel %vm403_vm2, %v2491_v60, -inf }
 0x12d   : > { %495 = vst.msk [vmem:[#allocation2 + $0x10] sm:$0xff] %vm292_vm1, %v418_v58  ;;  %503 = vperm.xlu2 %2054, %v2486_v56   ;;  %444 = vperm.xlu0 %2055, %v418_v58   ;;  %v422_v16 = vsub.f32 %v401_v55, %v418_v58 }
 0x12e   : > { %v2493_v61 = vpop.f32.mrf.mxu2 }
 0x12f   : > { %v663_v0 = vsel %vm403_vm2, %v2493_v61, -inf  ;;  %v428_v17 = vmul.f32 1.442695, %v422_v16 }
 0x131   : > { %2079 = vpow2.f32 %v428_v17 }
 0x132   : > { %v2495_v62 = vpop.f32.mrf.mxu0  ;;  %v415_v2 = vpop.xlane.xlu1 %414 }
 0x133   : > { %v1192_v63 = vsel %vm403_vm2, %v2495_v62, -inf  ;;  %v2501_v3 = vmax.f32 %v402_v1, %v415_v2 }
 0x135   : > { %496 = vst.msk [vmem:[#allocation2 + $0x18] sm:$0xff] %vm292_vm1, %v2501_v3  ;;  %v423_v18 = vsub.f32 %v402_v1, %v2501_v3  ;;  %v2619_v1 = vld [vmem:[%s2467_s10 + $0x38] sm:$0xff] }
 0x136   : > { %v2503_v4 = vpop.f32.mrf.mxu2 }
 0x137   : > { %v666_v6 = vsel %vm403_vm2, %v2503_v4, -inf  ;;  %v430_v20 = vmul.f32 1.442695, %v423_v18  ;;  %v2548_v9 = vpop.eup %2079 }
 0x139   : > { %2081 = vpow2.f32 %v430_v20 }
 0x13a   : > { %v2541_v10 = vpop.f32.mrf.mxu0 }
 0x13b   : > { %v1195_v19 = vsel %vm403_vm2, %v2541_v10, -inf }
 0x13f   : > { %v2552_v25 = vpop.eup %2081 }
 0x141   : > { %2062 = vrot.lane.b32.xlu1 %v2061_v59, %s2254_s7 }
 0x142   : > { %v2581_v42 = vpop.f32.mrf.mxu0 }
 0x143   : > { %v1198_v44 = vsel %vm403_vm2, %v2581_v42, -inf }
 0x156   : > { %1193 = vmax.xlane.f32.xlu2 %v1192_v63  ;;  %v658_v63 = vld [vmem:[#allocation2 + $0x30] sm:$0xff] }
 0x157   : > { %664 = vmax.xlane.f32.xlu0 %v663_v0  ;;  %v2616_v0 = vld [vmem:[%s2467_s10 + $0x28] sm:$0xff] }
 0x15e   : > { %667 = vmax.xlane.f32.xlu2 %v666_v6  ;;  %v2067_v6 = vpack.i.bf16 %v2616_v0, %v2619_v1 }
 0x16b   : > { %1190 = vmax.xlane.f32.xlu1 %v1189_v8  ;;  %2057 = vrot.lane.b32.xlu0 %v2056_v41, %s2254_s7  ;;  %v2636_v8 = vld [vmem:[#allocation2 + $0x70] sm:$0xff] }
 0x173   : > { %1196 = vmax.xlane.f32.xlu1 %v1195_v19  ;;  %2073 = vrot.lane.b32.xlu0 %v2072_v48, %s2254_s7  ;;  %v2664_v48 = vld [vmem:[#allocation2 + $0x78] sm:$0xff] }
 0x176   : > { %513 = vperm.xlu2 %2054, %v2548_v9  }
 0x177   : > { %v435_v21 = vpop.permute.xlu2 %434 }
 0x178   : > { %v452_v22 = vsub.f32 %v2427_v28, %v435_v21 }
 0x17a   : > { %v456_v24 = vmul.f32 1.442695, %v452_v22 }
 0x17c   : > { %2083 = vpow2.f32 %v456_v24 }
 0x17d   : > { %2085 = vpow2.f32 %v426_v12  ;;  %v2651_v12 = vpop.f32.mrf.mxu2 }
 0x17e   : > { %518 = vperm.xlu2 %2054, %v2552_v25  }
 0x17f   : > { %v440_v26 = vpop.permute.xlu2 %439 }
 0x180   : > { %v453_v27 = vsub.f32 %v2442_v32, %v440_v26 }
 0x182   : > { %v2559_v29 = vpop.eup %2083  ;;  %v458_v30 = vmul.f32 1.442695, %v453_v27 }
 0x183   : > { %1944 = vmatmul.msk.f32.vlgmr.msra.gmra.mxu1 %vm403_vm2, %v2559_v29  ;;  %v2563_v28 = vpop.eup %2085  ;;  %v472_v24 = vsel %vm403_vm2, %v2559_v29, 0.0 }
 0x184   : > { %2087 = vpow2.f32 %v458_v30  ;;  %v669_v30 = vsel %vm403_vm2, %v2651_v12, -inf }
 0x187   : > { %v504_v49 = vpop.permute.xlu2 %503 }
 0x188   : > { %v521_v26 = vmul.f32 0.0, %v504_v49 }
 0x18a   : > { %v2565_v31 = vpop.eup %2087 }
 0x18b   : > { %1945 = vmatmul.msk.f32.gmra.mxu1 %vm403_vm2, %v2565_v31 }
 0x18c   : > { %508 = vperm.xlu1 %2066, %v2563_v28  }
 0x19b   : > { %v662_v34 = vpop.xlane.xlu1 %661 }
 0x19c   : > { %v2570_v32 = vmax.f32 %v656_v33, %v662_v34 }
 0x19e   : > { %749 = vst.msk [vmem:[#allocation2 + $0x20] sm:$0xff] %vm292_vm1, %v2570_v32  ;;  %v676_v17 = vsub.f32 %v656_v33, %v2570_v32 }
 0x19f   : > { %v445_v36 = vpop.permute.xlu0 %444 }
 0x1a0   : > { %v454_v37 = vsub.f32 %v2451_v35, %v445_v36  ;;  %v680_v18 = vmul.f32 1.442695, %v676_v17 }
 0x1a2   : > { %v460_v39 = vmul.f32 1.442695, %v454_v37 }
 0x1a4   : > { %2089 = vpow2.f32 %v460_v39 }
 0x1a5   : > { %2091 = vpow2.f32 %v680_v18 }
 0x1aa   : > { %v2575_v40 = vpop.eup %2089 }
 0x1ab   : > { %1946 = vmatmul.msk.f32.gmra.mxu1 %vm403_vm2, %v2575_v40  ;;  %v2646_v22 = vpop.eup %2091 }
 0x1b3   : > { %v2063_v43 = vpop.permute.xlu1 %2062 }
 0x1b4   : > { %v2065_v45 = vunpack.i.h.bf16 %v2063_v43  ;;  %v2064_v35 = vunpack.i.l.bf16 %v2063_v43  ;;  %v478_v43 = vsel %vm403_vm2, %v2575_v40, 0.0 }
 0x1b6   : > { %1199 = vmax.xlane.f32.xlu1 %v1198_v44  ;;  %821 = vmatpush.msra.mxu3 %v2065_v45 }
 0x1b8   : > { %822 = vmatpush.msra.mxu3 %v2064_v35 }
 0x1c9   : > { %v1194_v52 = vpop.xlane.xlu2 %1193 }
 0x1ca   : > { %v2600_v54 = vmax.f32 %v2595_v50, %v1194_v52  ;;  %v665_v55 = vpop.xlane.xlu0 %664 }
 0x1cb   : > { %v2603_v57 = vmax.f32 %v2597_v51, %v665_v55 }
 0x1cc   : > { %v1206_v58 = vsub.f32 %v2595_v50, %v2600_v54  ;;  %1279 = vst.msk [vmem:[#allocation2 + $0x68] sm:$0xff] %vm292_vm1, %v2600_v54  ;;  %1224 = vperm.xlu2 %2054, %v2600_v54  }
 0x1cd   : > { %v677_v59 = vsub.f32 %v2597_v51, %v2603_v57  ;;  %750 = vst.msk [vmem:[#allocation2 + $0x28] sm:$0xff] %vm292_vm1, %v2603_v57 }
 0x1cf   : > { %449 = vperm.xlu1 %2066, %v2501_v3  }
 0x1d1   : > { %v668_v2 = vpop.xlane.xlu2 %667 }
 0x1d2   : > { %v674_v5 = vmax.f32 %v658_v63, %v668_v2 }
 0x1d4   : > { %751 = vst.msk [vmem:[#allocation2 + $0x30] sm:$0xff] %vm292_vm1, %v674_v5  ;;  %v678_v29 = vsub.f32 %v658_v63, %v674_v5 }
 0x1d6   : > { %v684_v41 = vmul.f32 1.442695, %v678_v29  ;;  %v682_v29 = vmul.f32 1.442695, %v677_v59 }
 0x1d7   : > { %2068 = vrot.lane.b32.xlu1 %v2067_v6, %s2254_s7  ;;  %v475_v6 = vsel %vm403_vm2, %v2565_v31, 0.0 }
 0x1d8   : > { %2093 = vpow2.f32 %v684_v41 }
 0x1d9   : > { %v514_v45 = vpop.permute.xlu2 %513 }
 0x1da   : > { %v523_v35 = vmul.f32 0.0, %v514_v45 }
 0x1dd   : > { %v2058_v40 = vpop.permute.xlu0 %2057 }
 0x1de   : > { %v1191_v15 = vpop.xlane.xlu1 %1190  ;;  %v2661_v44 = vpop.eup %2093 }
 0x1df   : > { %v2628_v16 = vmax.f32 %v2625_v7, %v1191_v15 }
 0x1e1   : > { %v1205_v3 = vsub.f32 %v2625_v7, %v2628_v16  ;;  %1278 = vst.msk [vmem:[#allocation2 + $0x60] sm:$0xff] %vm292_vm1, %v2628_v16  ;;  %1219 = vperm.xlu0 %2055, %v2628_v16  }
 0x1e5   : > { %v2074_v18 = vpop.permute.xlu0 %2073 }
 0x1e6   : > { %v1197_v19 = vpop.xlane.xlu1 %1196 }
 0x1e7   : > { %v2639_v20 = vmax.f32 %v2636_v8, %v1197_v19 }
 0x1e9   : > { %v1207_v21 = vsub.f32 %v2636_v8, %v2639_v20  ;;  %1280 = vst.msk [vmem:[#allocation2 + $0x70] sm:$0xff] %vm292_vm1, %v2639_v20  ;;  %695 = vperm.xlu0 %2055, %v2603_v57  }
 0x1f1   : > { %759 = vperm.xlu0 %2055, %v2646_v22  }
 0x1f5   : > { %473 = vadd.xlane.f32.xlu2 %v472_v24 }
 0x1fe   : > { %v509_v34 = vpop.permute.xlu1 %508 }
 0x1ff   : > { %v522_v36 = vmul.f32 0.0, %v509_v34 }
 0x200   : > { %v554_v27 = vpop.f32.mrf.mxu1 }
 0x201   : > { %v566_v33 = vadd.f32 %v554_v27, %v521_v26  ;;  %670 = vmax.xlane.f32.xlu1 %v669_v30  ;;  %v2075_v27 = vunpack.i.l.bf16 %v2074_v18  ;;  %v2677_v30 = vpop.permute.xlu2 %518 }
 0x203   : > { %570 = vst.msk [vmem:[#allocation4] sm:$0xff] %vm345_vm0, %v566_v33 }
 0x208   : > { %v557_v37 = vpop.f32.mrf.mxu1 }
 0x209   : > { %v567_v39 = vadd.f32 %v557_v37, %v522_v36 }
 0x20b   : > { %571 = vst.msk [vmem:[#allocation4 + $0x10] sm:$0xff] %vm345_vm0, %v567_v39 }
 0x20d   : > { %1229 = vperm.xlu2 %2054, %v2639_v20  }
 0x215   : > { %700 = vperm.xlu2 %2054, %v674_v5  }
 0x21a   : > { %690 = vperm.xlu1 %2066, %v2570_v32  }
 0x21b   : > { %479 = vadd.xlane.f32.xlu0 %v478_v43 }
 0x21d   : > { %769 = vperm.xlu2 %2054, %v2661_v44  }
 0x226   : > { %v1225_v36 = vpop.permute.xlu2 %1224 }
 0x227   : > { %v1238_v39 = vsub.f32 %v2495_v62, %v1225_v36 }
 0x228   : > { %v560_v49 = vpop.f32.mrf.mxu1 }
 0x229   : > { %v568_v52 = vadd.f32 %v560_v49, %v523_v35  ;;  %v1200_v55 = vpop.xlane.xlu1 %1199  ;;  %v1243_v41 = vmul.f32 1.442695, %v1238_v39  ;;  %v2060_v35 = vunpack.i.h.bf16 %v2058_v40  ;;  %v2059_v49 = vunpack.i.l.bf16 %v2058_v40 }
 0x22a   : > { %v2667_v63 = vmax.f32 %v2664_v48, %v1200_v55 }
 0x22b   : > { %572 = vst.msk [vmem:[#allocation4 + $0x20] sm:$0xff] %vm345_vm0, %v568_v52  ;;  %823 = vmatpush.msra.mxu3 %v2060_v35 }
 0x22c   : > { %v1208_v32 = vsub.f32 %v2664_v48, %v2667_v63  ;;  %1281 = vst.msk [vmem:[#allocation2 + $0x78] sm:$0xff] %vm292_vm1, %v2667_v63 }
 0x22d   : > { %824 = vmatpush.msra.mxu3 %v2059_v49 }
 0x22f   : > { %1078 = vmatpush.msrb.mxu3 %v2619_v1 }
 0x231   : > { %1079 = vmatpush.msrb.mxu3 %v2616_v0 }
 0x233   : > { %1080 = vmatpush.msrb.mxu3 %v2590_v47 }
 0x235   : > { %1081 = vmatpush.msrb.mxu3 %v2587_v46 }
 0x241   : > { %v450_v2 = vpop.permute.xlu1 %449 }
 0x242   : > { %v455_v5 = vsub.f32 %v2458_v38, %v450_v2  ;;  %v2076_v38 = vunpack.i.h.bf16 %v2074_v18 }
 0x244   : > { %v462_v15 = vmul.f32 1.442695, %v455_v5  ;;  %476 = vadd.xlane.f32.xlu1 %v475_v6 }
 0x246   : > { %2095 = vpow2.f32 %v462_v15 }
 0x249   : > { %v2069_v17 = vpop.permute.xlu1 %2068 }
 0x24a   : > { %v2070_v19 = vunpack.i.l.bf16 %v2069_v17  ;;  %v2071_v26 = vunpack.i.h.bf16 %v2069_v17  ;;  %v466_v17 = vld [vmem:[#allocation3 + $0x10] sm:$0xff] }
 0x24c   : > { %v2096_v24 = vpop.eup %2095  ;;  %1350 = vmatpush.msrb.mxu2 %v2070_v19 }
 0x24d   : > { %1947 = vmatmul.msk.f32.gmra.mxu1 %vm403_vm2, %v2096_v24  ;;  %v481_v33 = vsel %vm403_vm2, %v2096_v24, 0.0  ;;  %v470_v24 = vmul.f32 %v2548_v9, %v466_v17 }
 0x24e   : > { %482 = vadd.xlane.f32.xlu2 %v481_v33  ;;  %1351 = vmatpush.msrb.mxu2 %v2071_v26 }
 0x250   : > { %1352 = vmatpush.msrb.mxu2 %v2075_v27 }
 0x252   : > { %1353 = vmatpush.msrb.mxu2 %v2076_v38 }
 0x253   : > { %v1220_v31 = vpop.permute.xlu0 %1219 }
 0x254   : > { %v1237_v34 = vsub.f32 %v2491_v60, %v1220_v31  ;;  %v464_v60 = vld [vmem:[#allocation3] sm:$0xff] }
 0x255   : > { %1964 = vmatmul.msk.f32.vlgmr.msrb.gmra.mxu1 %vm345_vm0, %v2389_v11 }
 0x256   : > { %v1241_v37 = vmul.f32 1.442695, %v1237_v34 }
 0x258   : > { %2097 = vpow2.f32 %v1241_v37 }
 0x259   : > { %2099 = vpow2.f32 %v682_v29 }
 0x25a   : > { %2101 = vpow2.f32 %v1243_v41  ;;  %v467_v41 = vld [vmem:[#allocation3 + $0x18] sm:$0xff] }
 0x25b   : > { %v696_v15 = vpop.permute.xlu0 %695 }
 0x25c   : > { %v709_v33 = vsub.f32 %v2493_v61, %v696_v15  ;;  %v465_v61 = vld [vmem:[#allocation3 + $0x8] sm:$0xff] }
 0x25d   : > { %1234 = vperm.xlu1 %2066, %v2667_v63   ;;  %1965 = vmatmul.msk.f32.gmra.mxu1 %vm345_vm0, %v2403_v14  ;;  %v468_v14 = vmul.f32 %v2486_v56, %v464_v60  ;;  %v469_v36 = vmul.f32 %v2563_v28, %v465_v61  ;;  %v471_v60 = vmul.f32 %v2552_v25, %v467_v41  ;;  %v2779_v61 = vld [vmem:[#allocation2 + $0x40] sm:$0xff] }
 0x25e   : > { %v2691_v43 = vpop.eup %2097  ;;  %v714_v38 = vmul.f32 1.442695, %v709_v33 }
 0x25f   : > { %1980 = vmatmul.msk.f32.vlgmr.msrb.gmra.mxu2 %vm403_vm2, %v2691_v43  ;;  %v2695_v11 = vpop.eup %2099 }
 0x260   : > { %v2700_v62 = vpop.eup %2101 }
 0x263   : > { %v2723_v47 = vpop.permute.xlu0 %759 }
 0x265   : > { %764 = vperm.xlu1 %2066, %v2695_v11   ;;  %1966 = vmatmul.msk.f32.gmra.mxu1 %vm345_vm0, %v2400_v13  ;;  %v659_v13 = vld [vmem:[#allocation2 + $0x38] sm:$0xff] }
 0x267   : > { %1981 = vmatmul.msk.f32.gmra.mxu2 %vm403_vm2, %v2700_v62 }
 0x268   : > { %v474_v51 = vpop.xlane.xlu2 %473 }
 0x269   : > { %v484_v57 = vadd.f32 %v474_v51, %v468_v14 }
 0x26b   : > { %489 = vst.msk [vmem:[#allocation3] sm:$0xff] %vm292_vm1, %v484_v57  ;;  %v524_v57 = vmul.f32 0.0, %v2677_v30 }
 0x26d   : > { %1967 = vmatmul.msk.f32.gmra.mxu1 %vm345_vm0, %v2413_v23 }
 0x270   : > { %v1230_v59 = vpop.permute.xlu2 %1229 }
 0x271   : > { %v1239_v45 = vsub.f32 %v2541_v10, %v1230_v59 }
 0x273   : > { %v1245_v52 = vmul.f32 1.442695, %v1239_v45 }
 0x274   : > { %v671_v55 = vpop.xlane.xlu1 %670 }
 0x275   : > { %2103 = vpow2.f32 %v1245_v52  ;;  %v675_v2 = vmax.f32 %v659_v13, %v671_v55 }
 0x277   : > { %v679_v56 = vsub.f32 %v659_v13, %v675_v2  ;;  %752 = vst.msk [vmem:[#allocation2 + $0x38] sm:$0xff] %vm292_vm1, %v675_v2  ;;  %705 = vperm.xlu1 %2066, %v675_v2  }
 0x278   : > { %v701_v5 = vpop.permute.xlu2 %700 }
 0x279   : > { %v686_v23 = vmul.f32 1.442695, %v679_v56  ;;  %v710_v10 = vsub.f32 %v2503_v4, %v701_v5 }
 0x27b   : > { %v2714_v40 = vpop.eup %2103  ;;  %2105 = vpow2.f32 %v686_v23  ;;  %v716_v6 = vmul.f32 1.442695, %v710_v10 }
 0x27c   : > { %1982 = vmatmul.msk.f32.gmra.mxu2 %vm403_vm2, %v2714_v40  ;;  %v1264_v7 = vsel %vm403_vm2, %v2714_v40, 0.0 }
 0x27d   : > { %2107 = vpow2.f32 %v716_v6 }
 0x280   : > { %v2735_v29 = vpop.permute.xlu2 %769 }
 0x281   : > { %v2719_v1 = vpop.eup %2105 }
 0x282   : > { %774 = vperm.xlu0 %2055, %v2719_v1  }
 0x283   : > { %v2108_v0 = vpop.eup %2107 }
 0x284   : > { %v735_v4 = vsel %vm403_vm2, %v2108_v0, 0.0 }
 0x285   : > { %736 = vadd.xlane.f32.xlu2 %v735_v4  ;;  %v723_v4 = vld [vmem:[#allocation3 + $0x30] sm:$0xff] }
 0x28c   : > { %v691_v18 = vpop.permute.xlu1 %690 }
 0x28d   : > { %v708_v19 = vsub.f32 %v2482_v53, %v691_v18  ;;  %v727_v18 = vmul.f32 %v2661_v44, %v723_v4 }
 0x28e   : > { %v480_v26 = vpop.xlane.xlu0 %479 }
 0x28f   : > { %v712_v27 = vmul.f32 1.442695, %v708_v19  ;;  %v486_v46 = vadd.f32 %v480_v26, %v470_v24 }
 0x291   : > { %2109 = vpow2.f32 %v712_v27  ;;  %491 = vst.msk [vmem:[#allocation3 + $0x10] sm:$0xff] %vm292_vm1, %v486_v46 }
 0x292   : > { %2111 = vpow2.f32 %v714_v38 }
 0x297   : > { %v2110_v31 = vpop.eup %2109 }
 0x298   : > { %1956 = vmatmul.msk.f32.vlgmr.msra.gmra.mxu3 %vm403_vm2, %v2110_v31  ;;  %v2112_v34 = vpop.eup %2111  ;;  %v729_v53 = vsel %vm403_vm2, %v2110_v31, 0.0  ;;  %v722_v31 = vld [vmem:[#allocation3 + $0x28] sm:$0xff] }
 0x299   : > { %v732_v9 = vsel %vm403_vm2, %v2112_v34, 0.0 }
 0x2a0   : > { %1957 = vmatmul.msk.f32.gmra.mxu3 %vm403_vm2, %v2112_v34  ;;  %v726_v34 = vmul.f32 %v2695_v11, %v722_v31  ;;  %v930_v11 = vld [vmem:[#allocation2 + $0x48] sm:$0xff] }
 0x2a1   : > { %730 = vadd.xlane.f32.xlu1 %v729_v53 }
 0x2a8   : > { %1958 = vmatmul.msk.f32.gmra.mxu3 %vm403_vm2, %v2108_v0 }
 0x2ac   : > { %733 = vadd.xlane.f32.xlu0 %v732_v9 }
 0x2b7   : > { %v477_v37 = vpop.xlane.xlu1 %476 }
 0x2b8   : > { %v485_v39 = vadd.f32 %v477_v37, %v469_v36 }
 0x2ba   : > { %490 = vst.msk [vmem:[#allocation3 + $0x8] sm:$0xff] %vm292_vm1, %v485_v39 }
 0x2c1   : > { %v483_v14 = vpop.xlane.xlu2 %482 }
 0x2c2   : > { %v487_v51 = vadd.f32 %v483_v14, %v471_v60 }
 0x2c4   : > { %492 = vst.msk [vmem:[#allocation3 + $0x18] sm:$0xff] %vm292_vm1, %v487_v51  ;;  %v931_v51 = vld [vmem:[#allocation2 + $0x50] sm:$0xff] }
 0x2ca   : > { %v563_v59 = vpop.f32.mrf.mxu1 }
 0x2cb   : > { %v569_v45 = vadd.f32 %v563_v59, %v524_v57 }
 0x2cd   : > { %573 = vst.msk [vmem:[#allocation4 + $0x30] sm:$0xff] %vm345_vm0, %v569_v45 }
 0x2cf   : > { %v1235_v28 = vpop.permute.xlu1 %1234 }
 0x2d0   : > { %v1240_v35 = vsub.f32 %v2581_v42, %v1235_v28  ;;  %v2790_v28 = vld [vmem:[#allocation2 + $0x58] sm:$0xff] }
 0x2d2   : > { %v1247_v49 = vmul.f32 1.442695, %v1240_v35  ;;  %v2743_v13 = vpop.f32.mrf.mxu1 }
 0x2d3   : > { %v933_v52 = vsel %vm403_vm2, %v2743_v13, -inf }
 0x2d4   : > { %2113 = vpow2.f32 %v1247_v49  ;;  %934 = vmax.xlane.f32.xlu0 %v933_v52 }
 0x2d7   : > { %v2755_v42 = vpop.permute.xlu1 %764 }
 0x2da   : > { %v2747_v25 = vpop.eup %2113  ;;  %v2749_v55 = vpop.f32.mrf.mxu1 }
 0x2db   : > { %1983 = vmatmul.msk.f32.gmra.mxu2 %vm403_vm2, %v2747_v25  ;;  %v936_v30 = vsel %vm403_vm2, %v2749_v55, -inf }
 0x2dc   : > { %937 = vmax.xlane.f32.xlu0 %v936_v30  ;;  %v724_v30 = vld [vmem:[#allocation3 + $0x38] sm:$0xff] }
 0x2e2   : > { %v2757_v2 = vpop.f32.mrf.mxu1  ;;  %v1355_v20 = vpop.f32.mrf.mxu2 }
 0x2e3   : > { %v939_v56 = vsel %vm403_vm2, %v2757_v2, -inf }
 0x2e4   : > { %940 = vmax.xlane.f32.xlu2 %v939_v56  ;;  %v728_v56 = vmul.f32 %v2719_v1, %v724_v30  ;;  %v1267_v1 = vsel %vm403_vm2, %v2747_v25, 0.0 }
 0x2e9   : > { %v706_v5 = vpop.permute.xlu1 %705 }
 0x2ea   : > { %v711_v23 = vsub.f32 %v2651_v12, %v706_v5  ;;  %v2762_v10 = vpop.f32.mrf.mxu1  ;;  %v721_v12 = vld [vmem:[#allocation3 + $0x20] sm:$0xff]  ;;  %v1358_v54 = vpop.f32.mrf.mxu2 }
 0x2eb   : > { %v942_v6 = vsel %vm403_vm2, %v2762_v10, -inf  ;;  %v725_v26 = vmul.f32 %v2646_v22, %v721_v12 }
 0x2ec   : > { %v718_v15 = vmul.f32 1.442695, %v711_v23  ;;  %943 = vmax.xlane.f32.xlu0 %v942_v6  ;;  %v753_v6 = vld [vmem:[#allocation4] sm:$0xff] }
 0x2ee   : > { %2115 = vpow2.f32 %v718_v15  ;;  %v777_v15 = vmul.f32 %v2723_v47, %v753_v6  ;;  %v1261_v47 = vsel %vm403_vm2, %v2700_v62, 0.0  ;;  %v1253_v6 = vld [vmem:[#allocation3 + $0x78] sm:$0xff] }
 0x2f4   : > { %v2116_v0 = vpop.eup %2115  ;;  %v2771_v33 = vpop.permute.xlu0 %774 }
 0x2f5   : > { %1959 = vmatmul.msk.f32.gmra.mxu3 %vm403_vm2, %v2116_v0  ;;  %v738_v17 = vsel %vm403_vm2, %v2116_v0, 0.0 }
 0x2f6   : > { %739 = vadd.xlane.f32.xlu1 %v738_v17 }
 0x2f8   : > { %v737_v19 = vpop.xlane.xlu2 %736 }
 0x2f9   : > { %v743_v24 = vadd.f32 %v737_v19, %v727_v18  ;;  %v1258_v18 = vsel %vm403_vm2, %v2691_v43, 0.0  ;;  %v1213_v19 = vmul.f32 1.442695, %v1207_v21 }
 0x2fb   : > { %747 = vst.msk [vmem:[#allocation3 + $0x30] sm:$0xff] %vm292_vm1, %v743_v24  ;;  %2117 = vpow2.f32 %v1213_v19  ;;  %v754_v24 = vld [vmem:[#allocation4 + $0x10] sm:$0xff] }
 0x2fc   : > { %v778_v43 = vmul.f32 %v2755_v42, %v754_v24  ;;  %v1209_v42 = vmul.f32 1.442695, %v1205_v3 }
 0x2ff   : > { %v1361_v24 = vpop.f32.mrf.mxu2 }
 0x314   : > { %v731_v27 = vpop.xlane.xlu1 %730 }
 0x315   : > { %v741_v46 = vadd.f32 %v731_v27, %v725_v26  ;;  %v2816_v26 = vpop.eup %2117 }
 0x317   : > { %745 = vst.msk [vmem:[#allocation3 + $0x20] sm:$0xff] %vm292_vm1, %v741_v46  ;;  %v755_v46 = vld [vmem:[#allocation4 + $0x20] sm:$0xff] }
 0x318   : > { %v779_v62 = vmul.f32 %v2735_v29, %v755_v46 }
 0x31b   : > { %v826_v38 = vpop.f32.mrf.mxu3 }
 0x31c   : > { %842 = vrot.lane.b32.xlu2 %v826_v38, %s2254_s7 }
 0x31f   : > { %v734_v44 = vpop.xlane.xlu0 %733 }
 0x320   : > { %v742_v53 = vadd.f32 %v734_v44, %v726_v34  ;;  %v1215_v34 = vmul.f32 1.442695, %v1208_v32  ;;  %v756_v32 = vld [vmem:[#allocation4 + $0x30] sm:$0xff] }
 0x321   : > { %v780_v40 = vmul.f32 %v2771_v33, %v756_v32 }
 0x322   : > { %746 = vst.msk [vmem:[#allocation3 + $0x28] sm:$0xff] %vm292_vm1, %v742_v53  ;;  %v1211_v53 = vmul.f32 1.442695, %v1206_v58 }
 0x323   : > { %v829_v9 = vpop.f32.mrf.mxu3 }
 0x324   : > { %844 = vrot.lane.b32.xlu0 %v829_v9, %s2254_s7 }
 0x32b   : > { %v832_v22 = vpop.f32.mrf.mxu3 }
 0x32c   : > { %846 = vrot.lane.b32.xlu1 %v832_v22, %s2254_s7 }
 0x347   : > { %v935_v36 = vpop.xlane.xlu0 %934 }
 0x348   : > { %v2782_v37 = vmax.f32 %v2779_v61, %v935_v36 }
 0x34a   : > { %v949_v39 = vsub.f32 %v2779_v61, %v2782_v37  ;;  %1022 = vst.msk [vmem:[#allocation2 + $0x40] sm:$0xff] %vm292_vm1, %v2782_v37 }
 0x34c   : > { %v953_v3 = vmul.f32 1.442695, %v949_v39 }
 0x34f   : > { %v938_v41 = vpop.xlane.xlu0 %937 }
 0x350   : > { %v946_v60 = vmax.f32 %v930_v11, %v938_v41 }
 0x352   : > { %v950_v14 = vsub.f32 %v930_v11, %v946_v60  ;;  %1023 = vst.msk [vmem:[#allocation2 + $0x48] sm:$0xff] %vm292_vm1, %v946_v60  ;;  %968 = vperm.xlu0 %2055, %v946_v60  }
 0x354   : > { %v955_v25 = vmul.f32 1.442695, %v950_v14 }
 0x356   : > { %2119 = vpow2.f32 %v955_v25 }
 0x357   : > { %v941_v57 = vpop.xlane.xlu2 %940 }
 0x358   : > { %v947_v59 = vmax.f32 %v931_v51, %v941_v57 }
 0x35a   : > { %v951_v45 = vsub.f32 %v931_v51, %v947_v59  ;;  %1024 = vst.msk [vmem:[#allocation2 + $0x50] sm:$0xff] %vm292_vm1, %v947_v59 }
 0x35c   : > { %v957_v38 = vmul.f32 1.442695, %v951_v45  ;;  %v2826_v31 = vpop.eup %2119 }
 0x35e   : > { %2121 = vpow2.f32 %v957_v38 }
 0x35f   : > { %v944_v35 = vpop.xlane.xlu0 %943  ;;  %2123 = vpow2.f32 %v1209_v42 }
 0x360   : > { %v2793_v49 = vmax.f32 %v2790_v28, %v944_v35  ;;  %2125 = vpow2.f32 %v1215_v34  ;;  %v1364_v34 = vpop.f32.mrf.mxu2 }
 0x361   : > { %2127 = vpow2.f32 %v953_v3 }
 0x362   : > { %v952_v52 = vsub.f32 %v2790_v28, %v2793_v49  ;;  %1025 = vst.msk [vmem:[#allocation2 + $0x58] sm:$0xff] %vm292_vm1, %v2793_v49  ;;  %978 = vperm.xlu1 %2066, %v2793_v49   ;;  %2129 = vpow2.f32 %v1211_v53  ;;  %v2864_v28 = vld [vmem:[#allocation3 + $0x10] sm:$0xff] }
 0x363   : > { %v1437_v3 = vand.u32 2147483648, %v2864_v28  ;;  %vm1431_vm5 = vweird.f32 %v2864_v28  ;;  %v1435_v32 = vand.u32 2147483647, %v2864_v28 }
 0x364   : > { %v2829_v29 = vpop.eup %2121  ;;  %v959_v50 = vmul.f32 1.442695, %v952_v52 }
 0x365   : > { %v2124_v44 = vpop.eup %2123  ;;  %vm1436_vm8 = vcmp.eq.f32.partialorder %v1435_v32, 8.507059e+37 }
 0x366   : > { %v2126_v16 = vpop.eup %2125  ;;  %2131 = vpow2.f32 %v959_v50 }
 0x367   : > { %v2843_v48 = vpop.eup %2127 }
 0x368   : > { %v2846_v63 = vpop.eup %2129 }
 0x369   : > { %v740_v5 = vpop.xlane.xlu1 %739 }
 0x36a   : > { %v744_v23 = vadd.f32 %v740_v5, %v728_v56 }
 0x36c   : > { %748 = vst.msk [vmem:[#allocation3 + $0x38] sm:$0xff] %vm292_vm1, %v744_v23  ;;  %v2858_v41 = vpop.eup %2131  ;;  %v2870_v23 = vld [vmem:[#allocation3 + $0x8] sm:$0xff] }
 0x36d   : > { %vm1417_vm9 = vweird.f32 %v2870_v23 }
 0x376   : > { %v843_v0 = vpop.permute.xlu2 %842 }
 0x377   : > { %v854_v4 = vadd.f32 %v843_v0, %v777_v15  ;;  %v2874_v15 = vld [vmem:[#allocation3 + $0x28] sm:$0xff] }
 0x378   : > { %v835_v17 = vpop.f32.mrf.mxu3  ;;  %vm1509_vm12 = vweird.f32 %v2874_v15 }
 0x379   : > { %859 = vst.msk [vmem:[#allocation4] sm:$0xff] %vm858_vm3, %v854_v4  ;;  %848 = vrot.lane.b32.xlu2 %v835_v17, %s2254_s7  ;;  %v1257_v4 = vmul.f32 %v2126_v16, %v1253_v6 }
 0x37c   : > { %1259 = vadd.xlane.f32.xlu0 %v1258_v18 }
 0x381   : > { %963 = vperm.xlu2 %2054, %v2782_v37  }
 0x384   : > { %1268 = vadd.xlane.f32.xlu0 %v1267_v1 }
 0x389   : > { %973 = vperm.xlu2 %2054, %v947_v59  }
 0x38c   : > { %1262 = vadd.xlane.f32.xlu1 %v1261_v47  ;;  %v2879_v47 = vld [vmem:[#allocation3 + $0x20] sm:$0xff] }
 0x396   : > { %v845_v12 = vpop.permute.xlu0 %844 }
 0x397   : > { %v855_v27 = vadd.f32 %v845_v12, %v778_v43  ;;  %v1251_v43 = vld [vmem:[#allocation3 + $0x68] sm:$0xff] }
 0x398   : > { %1298 = vperm.xlu0 %2055, %v2816_v26   ;;  %v1255_v46 = vmul.f32 %v2846_v63, %v1251_v43 }
 0x399   : > { %860 = vst.msk [vmem:[#allocation4 + $0x10] sm:$0xff] %vm858_vm3, %v855_v27 }
 0x39e   : > { %v847_v8 = vpop.permute.xlu1 %846 }
 0x39f   : > { %v856_v21 = vadd.f32 %v847_v8, %v779_v62 }
 0x3a0   : > { %1371 = vrot.lane.b32.xlu0 %v1355_v20, %s2254_s7 }
 0x3a1   : > { %861 = vst.msk [vmem:[#allocation4 + $0x20] sm:$0xff] %vm858_vm3, %v856_v21 }
 0x3a5   : > { %1037 = vperm.xlu1 %2066, %v2826_v31  }
 0x3a8   : > { %1042 = vperm.xlu0 %2055, %v2829_v29  }
 0x3ad   : > { %1288 = vperm.xlu1 %2066, %v2124_v44  }
 0x3b2   : > { %1265 = vadd.xlane.f32.xlu2 %v1264_v7 }
 0x3b5   : > { %1303 = vperm.xlu1 %2066, %v2126_v16  }
 0x3c4   : > { %v969_v36 = vpop.permute.xlu0 %968 }
 0x3c5   : > { %v982_v11 = vsub.f32 %v2749_v55, %v969_v36  ;;  %v1250_v55 = vld [vmem:[#allocation3 + $0x60] sm:$0xff] }
 0x3c6   : > { %v1254_v52 = vmul.f32 %v2124_v44, %v1250_v55  ;;  %v2893_v44 = vld [vmem:[#allocation3] sm:$0xff] }
 0x3c7   : > { %v987_v14 = vmul.f32 1.442695, %v982_v11 }
 0x3ca   : > { %1032 = vperm.xlu2 %2054, %v2843_v48  }
 0x3d2   : > { %1293 = vperm.xlu2 %2054, %v2846_v63  }
 0x3d3   : > { %v849_v9 = vpop.permute.xlu2 %848 }
 0x3d4   : > { %v857_v22 = vadd.f32 %v849_v9, %v780_v40  ;;  %v979_v58 = vpop.permute.xlu1 %978 }
 0x3d5   : > { %v984_v33 = vsub.f32 %v2762_v10, %v979_v58 }
 0x3d6   : > { %862 = vst.msk [vmem:[#allocation4 + $0x30] sm:$0xff] %vm858_vm3, %v857_v22  ;;  %v1438_v22 = vor.u32 1.1754944e-38, %v1437_v3 }
 0x3d7   : > { %v991_v60 = vmul.f32 1.442695, %v984_v33  ;;  %v2908_v33 = vld [vmem:[#allocation3 + $0x18] sm:$0xff] }
 0x3da   : > { %1373 = vrot.lane.b32.xlu2 %v1358_v54, %s2254_s7 }
 0x3db   : > { %v964_v61 = vpop.permute.xlu2 %963 }
 0x3dc   : > { %v981_v37 = vsub.f32 %v2743_v13, %v964_v61  ;;  %v1423_v61 = vand.u32 2147483648, %v2870_v23 }
 0x3de   : > { %v985_v39 = vmul.f32 1.442695, %v981_v37  ;;  %v1421_v37 = vand.u32 2147483647, %v2870_v23 }
 0x3e0   : > { %2133 = vpow2.f32 %v985_v39  ;;  %vm1422_vm13 = vcmp.eq.f32.partialorder %v1421_v37, 8.507059e+37 }
 0x3e1   : > { %2135 = vpow2.f32 %v991_v60 }
 0x3e2   : > { %1047 = vperm.xlu2 %2054, %v2858_v41   ;;  %2137 = vpow2.f32 %v987_v14  ;;  %v1515_v14 = vand.u32 2147483648, %v2874_v15 }
 0x3e3   : > { %v974_v51 = vpop.permute.xlu2 %973 }
 0x3e4   : > { %v983_v57 = vsub.f32 %v2757_v2, %v974_v51 }
 0x3e6   : > { %v2134_v59 = vpop.eup %2133  ;;  %v989_v45 = vmul.f32 1.442695, %v983_v57  ;;  %v1424_v57 = vor.u32 1.1754944e-38, %v1423_v61  ;;  %v994_v61 = vld [vmem:[#allocation3 + $0x40] sm:$0xff] }
 0x3e7   : > { %1968 = vmatmul.msk.f32.vlgmr.msrb.gmra.mxu3 %vm403_vm2, %v2134_v59  ;;  %v1002_v13 = vsel %vm403_vm2, %v2134_v59, 0.0  ;;  %v2136_v10 = vpop.eup %2135  ;;  %v1513_v59 = vand.u32 2147483647, %v2874_v15  ;;  %v998_v37 = vmul.f32 %v2843_v48, %v994_v61 }
 0x3e8   : > { %2139 = vpow2.f32 %v989_v45  ;;  %1003 = vadd.xlane.f32.xlu0 %v1002_v13  ;;  %v2138_v35 = vpop.eup %2137  ;;  %v1011_v2 = vsel %vm403_vm2, %v2136_v10, 0.0 }
 0x3e9   : > { %2141 = vrcp.f32 %v2864_v28  ;;  %v1005_v58 = vsel %vm403_vm2, %v2138_v35, 0.0 }
 0x3ea   : > { %2143 = vrcp.f32 %v2870_v23 }
 0x3eb   : > { %2145 = vrcp.f32 %v2874_v15 }
 0x3ec   : > { %2147 = vrcp.f32 %v2879_v47 }
 0x3ed   : > { %2149 = vrcp.f32 %v2893_v44 }
 0x3ee   : > { %v2140_v49 = vpop.eup %2139  ;;  %2151 = vrcp.f32 %v2908_v33 }
 0x3ef   : > { %v1260_v30 = vpop.xlane.xlu0 %1259  ;;  %1969 = vmatmul.msk.f32.gmra.mxu3 %vm403_vm2, %v2138_v35  ;;  %v1008_v56 = vsel %vm403_vm2, %v2140_v49, 0.0  ;;  %v2142_v0 = vpop.eup %2141  ;;  %v1501_v35 = vand.u32 2147483648, %v2879_v47 }
 0x3f0   : > { %v1270_v5 = vadd.f32 %v1260_v30, %v1254_v52  ;;  %1012 = vadd.xlane.f32.xlu0 %v1011_v2  ;;  %1009 = vadd.xlane.f32.xlu1 %v1008_v56  ;;  %v1427_v1 = vmul.f32 %v2142_v0, %v2864_v28  ;;  %v2144_v19 = vpop.eup %2143  ;;  %vm1432_vm4 = vweird.f32 %v2142_v0  ;;  %v1499_v52 = vand.u32 2147483647, %v2879_v47  ;;  %v1488_v2 = vld [vmem:[#allocation3 + $0x30] sm:$0xff] }
 0x3f1   : > { %v2883_v27 = vpop.eup %2145  ;;  %v1413_v25 = vmul.f32 %v2144_v19, %v2870_v23  ;;  %vm1433_vm6 = vmor %vm1431_vm5, %vm1432_vm4  ;;  %vm1418_vm7 = vweird.f32 %v2144_v19  ;;  %vm1495_vm4 = vweird.f32 %v2879_v47  ;;  %v1502_v23 = vor.u32 1.1754944e-38, %v1501_v35 }
 0x3f2   : > { %1274 = vst.msk [vmem:[#allocation3 + $0x60] sm:$0xff] %vm292_vm1, %v1270_v5  ;;  %v1428_v12 = vsub.f32 1.0, %v1427_v1  ;;  %v1505_v20 = vmul.f32 %v2883_v27, %v2874_v15  ;;  %v2890_v42 = vpop.eup %2147  ;;  %vm1419_vm10 = vmor %vm1417_vm9, %vm1418_vm7  ;;  %vm1510_vm11 = vweird.f32 %v2883_v27  ;;  %2153 = vrcp.f32 %v1488_v2 }
 0x3f3   : > { %v1414_v21 = vsub.f32 1.0, %v1413_v25  ;;  %v1491_v63 = vmul.f32 %v2890_v42, %v2879_v47  ;;  %v2150_v39 = vpop.eup %2149  ;;  %vm1511_vm14 = vmor %vm1509_vm12, %vm1510_vm11  ;;  %vm1496_vm15 = vweird.f32 %v2890_v42  ;;  %v1409_v1 = vand.u32 2147483648, %v2893_v44 }
 0x3f4   : > { %v1429_v8 = vmul.f32 %v2142_v0, %v1428_v12  ;;  %v1506_v16 = vsub.f32 1.0, %v1505_v20  ;;  %v1399_v45 = vmul.f32 %v2150_v39, %v2893_v44  ;;  %v2152_v56 = vpop.eup %2151  ;;  %vm1497_vm5 = vmor %vm1495_vm4, %vm1496_vm15  ;;  %vm1404_vm7 = vweird.f32 %v2150_v39 }
 0x3f5   : > { %v1415_v53 = vmul.f32 %v2144_v19, %v1414_v21  ;;  %v1492_v54 = vsub.f32 1.0, %v1491_v63  ;;  %v1441_v15 = vmul.f32 %v2152_v56, %v2908_v33  ;;  %v1407_v47 = vand.u32 2147483647, %v2893_v44 }
 0x3f6   : > { %v1430_v7 = vadd.f32 %v2142_v0, %v1429_v8  ;;  %v1507_v9 = vmul.f32 %v2883_v27, %v1506_v16  ;;  %v1400_v30 = vsub.f32 1.0, %v1399_v45  ;;  %v1410_v12 = vor.u32 1.1754944e-38, %v1409_v1 }
 0x3f7   : > { %v1269_v17 = vpop.xlane.xlu0 %1268  ;;  %1970 = vmatmul.msk.f32.gmra.mxu3 %vm403_vm2, %v2140_v49  ;;  %v1416_v50 = vadd.f32 %v2144_v19, %v1415_v53  ;;  %v1493_v51 = vmul.f32 %v2890_v42, %v1492_v54  ;;  %vm1446_vm11 = vweird.f32 %v2152_v56  ;;  %v1451_v8 = vand.u32 2147483648, %v2908_v33 }
 0x3f8   : > { %v1273_v18 = vadd.f32 %v1269_v17, %v1257_v4  ;;  %v1434_v40 = vsel %vm1433_vm6, %v2142_v0, %v1430_v7  ;;  %v1508_v11 = vadd.f32 %v2883_v27, %v1507_v9  ;;  %vm1500_vm6 = vcmp.eq.f32.partialorder %v1499_v52, 8.507059e+37 }
 0x3f9   : > { %v1439_v36 = vsel %vm1436_vm8, %v1438_v22, %v1434_v40  ;;  %v1420_v60 = vsel %vm1419_vm10, %v2144_v19, %v1416_v50  ;;  %v1494_v28 = vadd.f32 %v2890_v42, %v1493_v51  ;;  %v1401_v6 = vmul.f32 %v2150_v39, %v1400_v30 }
 0x3fa   : > { %1277 = vst.msk [vmem:[#allocation3 + $0x78] sm:$0xff] %vm292_vm1, %v1273_v18  ;;  %v1425_v13 = vsel %vm1422_vm13, %v1424_v57, %v1420_v60  ;;  %v1512_v55 = vsel %vm1511_vm14, %v2883_v27, %v1508_v11  ;;  %v1442_v17 = vsub.f32 1.0, %v1441_v15  ;;  %v2154_v18 = vpop.eup %2153  ;;  %vm1403_vm8 = vweird.f32 %v2893_v44  ;;  %v1252_v27 = vld [vmem:[#allocation3 + $0x70] sm:$0xff]  ;;  %v997_v60 = vld [vmem:[#allocation3 + $0x58] sm:$0xff] }
 0x3fb   : > { %v1498_v5 = vsel %vm1497_vm5, %v2890_v42, %v1494_v28  ;;  %v1402_v4 = vadd.f32 %v2150_v39, %v1401_v6  ;;  %vm1405_vm9 = vmor %vm1403_vm8, %vm1404_vm7  ;;  %v1519_v43 = vmul.f32 %v2154_v18, %v1488_v2  ;;  %vm1408_vm10 = vcmp.eq.f32.partialorder %v1407_v47, 8.507059e+37  ;;  %v2950_v28 = vld [vmem:[#allocation3 + $0x60] sm:$0xff] }
 0x3fc   : > { %v1503_v0 = vsel %vm1500_vm6, %v1502_v23, %v1498_v5  ;;  %vm1445_vm12 = vweird.f32 %v2908_v33  ;;  %v1449_v21 = vand.u32 2147483647, %v2908_v33  ;;  %v1452_v7 = vor.u32 1.1754944e-38, %v1451_v8 }
 0x3fd   : > { %v1406_v19 = vsel %vm1405_vm9, %v2150_v39, %v1402_v4  ;;  %vm1447_vm13 = vmor %vm1445_vm12, %vm1446_vm11  ;;  %vm1524_vm15 = vweird.f32 %v2154_v18  ;;  %v1527_v53 = vand.u32 2147483647, %v1488_v2  ;;  %v1001_v57 = vmul.f32 %v2858_v41, %v997_v60 }
 0x3fe   : > { %v1411_v25 = vsel %vm1408_vm10, %v1410_v12, %v1406_v19  ;;  %vm1450_vm14 = vcmp.eq.f32.partialorder %v1449_v21, 8.507059e+37 }
 0x3ff   : > { %v1263_v62 = vpop.xlane.xlu1 %1262  ;;  %1971 = vmatmul.msk.f32.gmra.mxu3 %vm403_vm2, %v2136_v10  ;;  %v1516_v10 = vor.u32 1.1754944e-38, %v1515_v14  ;;  %vm1514_vm2 = vcmp.eq.f32.partialorder %v1513_v59, 8.507059e+37  ;;  %vm1528_vm5 = vcmp.eq.f32.partialorder %v1527_v53, 8.507059e+37  ;;  %v996_v14 = vld [vmem:[#allocation3 + $0x50] sm:$0xff] }
 0x400   : > { %v1271_v38 = vadd.f32 %v1263_v62, %v1255_v46  ;;  %v1520_v62 = vsub.f32 1.0, %v1519_v43  ;;  %v1000_v59 = vmul.f32 %v2829_v29, %v996_v14 }
 0x401   : > { %v1517_v49 = vsel %vm1514_vm2, %v1516_v10, %v1512_v55  ;;  %vm1523_vm2 = vweird.f32 %v1488_v2  ;;  %v2974_v4 = vld [vmem:[#allocation3 + $0x78] sm:$0xff] }
 0x402   : > { %1275 = vst.msk [vmem:[#allocation3 + $0x68] sm:$0xff] %vm292_vm1, %v1271_v38  ;;  %v1256_v38 = vmul.f32 %v2816_v26, %v1252_v27  ;;  %v1521_v44 = vmul.f32 %v2154_v18, %v1520_v62  ;;  %v1529_v26 = vand.u32 2147483648, %v1488_v2  ;;  %vm1525_vm4 = vmor %vm1523_vm2, %vm1524_vm15  ;;  %v995_v62 = vld [vmem:[#allocation3 + $0x48] sm:$0xff] }
 0x403   : > { %v999_v53 = vmul.f32 %v2826_v31, %v995_v62  ;;  %v3036_v62 = vld [vmem:[#allocation3 + $0x38] sm:$0xff] }
 0x404   : > { %1377 = vrot.lane.b32.xlu0 %v1364_v34, %s2254_s7  ;;  %v1522_v3 = vadd.f32 %v2154_v18, %v1521_v44  ;;  %v1530_v32 = vor.u32 1.1754944e-38, %v1529_v26 }
 0x406   : > { %v1526_v63 = vsel %vm1525_vm4, %v2154_v18, %v1522_v3 }
 0x407   : > { %v1531_v40 = vsel %vm1528_vm5, %v1530_v32, %v1526_v63 }
 0x409   : > { %1375 = vrot.lane.b32.xlu1 %v1361_v24, %s2254_s7  ;;  %v1443_v24 = vmul.f32 %v2152_v56, %v1442_v17  ;;  %v2953_v35 = vld [vmem:[#allocation3 + $0x68] sm:$0xff]  ;;  %s2194_s7 = scalar_lea.hbm %s3160_s3, 128 }
 0x40a   : > { %v2934_v9 = vpop.permute.xlu0 %1298  ;;  %p2196_p2 = scmp.lt.s32.totalorder %s2194_s7, %s2190_s4 }
 0x40b   : > { %1006 = vadd.xlane.f32.xlu2 %v1005_v58  ;;  %v1444_v46 = vadd.f32 %v2152_v56, %v1443_v24 }
 0x40c   : > { %1470 = vperm.xlu0 %2055, %v1439_v36   ;;  %p2197_p3 = por %p2196_p2, %p2195_p1 }
 0x40d   : > { %v1448_v34 = vsel %vm1447_vm13, %v2152_v56, %v1444_v46 }
 0x40e   : > { %v1453_v16 = vsel %vm1450_vm14, %v1452_v7, %v1448_v34  ;;  %p2198_p5 = pnand %p2197_p3, %p2193_p0 }
 0x411   : > { %1465 = vperm.xlu1 %2066, %v1425_v13  }
 0x412   : > { %v2936_v50 = vpop.permute.xlu0 %1371 }
 0x414   : > { %1557 = vperm.xlu0 %2055, %v1517_v49   ;;  %v2957_v49 = vld [vmem:[#allocation4 + $0x8] sm:$0xff] }
 0x417   : > { %v1038_v22 = vpop.permute.xlu1 %1037 }
 0x418   : > { %v1051_v1 = vmul.f32 %v2957_v49, %v1038_v22 }
 0x419   : > { %1552 = vperm.xlu1 %2066, %v1503_v0  }
 0x41a   : > { %v2940_v58 = vpop.permute.xlu0 %1042 }
 0x41b   : > { %v1052_v22 = vmul.f32 %v2957_v49, %v2940_v58 }
 0x41f   : > { %v2938_v54 = vpop.permute.xlu1 %1288 }
 0x423   : > { %1460 = vperm.xlu2 %2054, %v1411_v25  }
 0x425   : > { %v1266_v20 = vpop.xlane.xlu2 %1265 }
 0x426   : > { %v1272_v42 = vadd.f32 %v1266_v20, %v1256_v38 }
 0x427   : > { %v2943_v33 = vpop.permute.xlu1 %1303 }
 0x428   : > { %1276 = vst.msk [vmem:[#allocation3 + $0x70] sm:$0xff] %vm292_vm1, %v1272_v42 }
 0x42b   : > { %1475 = vperm.xlu2 %2054, %v1453_v16  }
 0x42d   : > { %v1033_v36 = vpop.permute.xlu2 %1032 }
 0x42e   : > { %v1050_v29 = vmul.f32 %v2957_v49, %v1033_v36 }
 0x433   : > { %1562 = vperm.xlu2 %2054, %v1531_v40  }
 0x435   : > { %v2946_v51 = vpop.permute.xlu2 %1293 }
 0x43d   : > { %v2961_v2 = vpop.permute.xlu2 %1373 }
 0x445   : > { %v1048_v44 = vpop.permute.xlu2 %1047 }
 0x45b   : > { %v1004_v39 = vpop.xlane.xlu0 %1003 }
 0x45c   : > { %v1014_v11 = vadd.f32 %v1004_v39, %v998_v37 }
 0x45e   : > { %1018 = vst.msk [vmem:[#allocation3 + $0x40] sm:$0xff] %vm292_vm1, %v1014_v11 }
 0x463   : > { %v1013_v45 = vpop.xlane.xlu0 %1012  ;;  %v1010_v13 = vpop.xlane.xlu1 %1009 }
 0x464   : > { %v1017_v55 = vadd.f32 %v1013_v45, %v1001_v57  ;;  %v1016_v10 = vadd.f32 %v1010_v13, %v1000_v59 }
 0x465   : > { %v1578_v48 = vld [vmem:[#allocation3 + $0x40] sm:$0xff] }
 0x466   : > { %1021 = vst.msk [vmem:[#allocation3 + $0x58] sm:$0xff] %vm292_vm1, %v1017_v55  ;;  %2155 = vrcp.f32 %v1578_v48  ;;  %v1593_v17 = vand.u32 2147483648, %v1578_v48  ;;  %v1591_v19 = vand.u32 2147483647, %v1578_v48  ;;  %vm1587_vm7 = vweird.f32 %v1578_v48 }
 0x467   : > { %1020 = vst.msk [vmem:[#allocation3 + $0x50] sm:$0xff] %vm292_vm1, %v1016_v10  ;;  %2157 = vrcp.f32 %v2950_v28 }
 0x468   : > { %2159 = vrcp.f32 %v2953_v35  ;;  %v1594_v46 = vor.u32 1.1754944e-38, %v1593_v17  ;;  %vm1592_vm9 = vcmp.eq.f32.partialorder %v1591_v19, 8.507059e+37 }
 0x46a   : > { %v1083_v41 = vpop.f32.mrf.mxu3 }
 0x46b   : > { %v1095_v52 = vadd.f32 %v1083_v41, %v1050_v29 }
 0x46c   : > { %v2156_v30 = vpop.eup %2155 }
 0x46d   : > { %v2963_v56 = vpop.eup %2157  ;;  %1099 = vst.msk [vmem:[#allocation4 + $0x8] sm:$0xff] %vm345_vm0, %v1095_v52  ;;  %v1583_v5 = vmul.f32 %v2156_v30, %v1578_v48  ;;  %v2966_v23 = vld [vmem:[#allocation3 + $0x58] sm:$0xff]  ;;  %vm1588_vm6 = vweird.f32 %v2156_v30 }
 0x46e   : > { %2161 = vrcp.f32 %v2966_v23  ;;  %v2969_v6 = vld [vmem:[#allocation3 + $0x50] sm:$0xff]  ;;  %v2971_v15 = vpop.eup %2159  ;;  %v1675_v18 = vmul.f32 %v2963_v56, %v2950_v28  ;;  %vm1589_vm8 = vmor %vm1587_vm7, %vm1588_vm6  ;;  %v1633_v39 = vand.u32 2147483647, %v2966_v23  ;;  %vm1629_vm12 = vweird.f32 %v2966_v23 }
 0x46f   : > { %v1584_v0 = vsub.f32 1.0, %v1583_v5  ;;  %2163 = vrcp.f32 %v2969_v6  ;;  %v1689_v43 = vmul.f32 %v2971_v15, %v2953_v35  ;;  %v1621_v11 = vand.u32 2147483648, %v2969_v6 }
 0x470   : > { %2165 = vrcp.f32 %v2974_v4  ;;  %v1676_v38 = vsub.f32 1.0, %v1675_v18  ;;  %v1619_v60 = vand.u32 2147483647, %v2969_v6  ;;  %vm1615_vm14 = vweird.f32 %v2969_v6 }
 0x471   : > { %v1585_v47 = vmul.f32 %v2156_v30, %v1584_v0  ;;  %v1690_v26 = vsub.f32 1.0, %v1689_v43  ;;  %vm1694_vm15 = vweird.f32 %v2971_v15  ;;  %vm1634_vm2 = vcmp.eq.f32.partialorder %v1633_v39, 8.507059e+37 }
 0x472   : > { %v1086_v24 = vpop.f32.mrf.mxu3  ;;  %v1677_v36 = vmul.f32 %v2963_v56, %v1676_v38  ;;  %v1622_v41 = vor.u32 1.1754944e-38, %v1621_v11  ;;  %vm1620_vm5 = vcmp.eq.f32.partialorder %v1619_v60, 8.507059e+37  ;;  %vm1680_vm6 = vweird.f32 %v2963_v56  ;;  %v3070_v11 = vld [vmem:[#allocation3 + $0x70] sm:$0xff] }
 0x473   : > { %v1096_v12 = vadd.f32 %v1086_v24, %v1051_v1  ;;  %v1586_v27 = vadd.f32 %v2156_v30, %v1585_v47  ;;  %v1691_v58 = vmul.f32 %v2971_v15, %v1690_v26  ;;  %v1699_v24 = vand.u32 2147483648, %v2953_v35  ;;  %v1454_v26 = vld [vmem:[#allocation4] sm:$0xff] }
 0x474   : > { %v2162_v25 = vpop.eup %2161  ;;  %v1282_v8 = vld [vmem:[#allocation4 + $0x8] sm:$0xff]  ;;  %v1678_v43 = vadd.f32 %v2963_v56, %v1677_v36  ;;  %vm1693_vm7 = vweird.f32 %v2953_v35  ;;  %2167 = vrcp.f32 %v3036_v62  ;;  %v1725_v36 = vand.u32 2147483647, %v2974_v4 }
 0x475   : > { %v2164_v20 = vpop.eup %2163  ;;  %1100 = vst.msk [vmem:[#allocation4 + $0x18] sm:$0xff] %vm345_vm0, %v1096_v12  ;;  %v1590_v21 = vsel %vm1589_vm8, %v2156_v30, %v1586_v27  ;;  %v1625_v42 = vmul.f32 %v2162_v25, %v2966_v23  ;;  %v1306_v34 = vmul.f32 %v2938_v54, %v1282_v8  ;;  %v1635_v54 = vand.u32 2147483648, %v2966_v23  ;;  %v1456_v30 = vld [vmem:[#allocation4 + $0x20] sm:$0xff]  ;;  %vm3030_vm8 = vmor %vm1693_vm7, %vm1694_vm15  ;;  %v1455_v8 = vld [vmem:[#allocation4 + $0x10] sm:$0xff] }
 0x476   : > { %v2985_v7 = vpop.permute.xlu0 %1377  ;;  %v1595_v16 = vsel %vm1592_vm9, %v1594_v46, %v1590_v21  ;;  %v1611_v3 = vmul.f32 %v2164_v20, %v2969_v6  ;;  %v2990_v40 = vpop.eup %2165  ;;  %vm1630_vm10 = vweird.f32 %v2162_v25  ;;  %vm1616_vm11 = vweird.f32 %v2164_v20 }
 0x477   : > { %1644 = vperm.xlu1 %2066, %v1595_v16   ;;  %v1626_v63 = vsub.f32 1.0, %v1625_v42  ;;  %v1383_v32 = vadd.f32 %v2936_v50, %v1306_v34  ;;  %v1717_v45 = vmul.f32 %v2990_v40, %v2974_v4  ;;  %vm3006_vm13 = vmor %vm1629_vm12, %vm1630_vm10  ;;  %v1636_v55 = vor.u32 1.1754944e-38, %v1635_v54 }
 0x478   : > { %v1612_v61 = vsub.f32 1.0, %v1611_v3  ;;  %vm1617_vm4 = vmor %vm1615_vm14, %vm1616_vm11  ;;  %v1692_v6 = vadd.f32 %v2971_v15, %v1691_v58  ;;  %v1053_v12 = vmul.f32 %v2957_v49, %v1048_v44  ;;  %v1697_v27 = vand.u32 2147483647, %v2953_v35 }
 0x479   : > { %v1627_v37 = vmul.f32 %v2162_v25, %v1626_v63  ;;  %1387 = vst.msk [vmem:[#allocation4 + $0x8] sm:$0xff] %vm858_vm3, %v1383_v32  ;;  %vm1679_vm9 = vweird.f32 %v2950_v28  ;;  %v1683_v49 = vand.u32 2147483647, %v2950_v28  ;;  %vm1722_vm12 = vweird.f32 %v2990_v40 }
 0x47a   : > { %v1089_v31 = vpop.f32.mrf.mxu3  ;;  %v1613_v50 = vmul.f32 %v2164_v20, %v1612_v61  ;;  %vm1698_vm10 = vcmp.eq.f32.partialorder %v1697_v27, 8.507059e+37  ;;  %v1727_v54 = vand.u32 2147483648, %v2974_v4  ;;  %vm1726_vm15 = vcmp.eq.f32.partialorder %v1725_v36, 8.507059e+37 }
 0x47b   : > { %v1097_v14 = vadd.f32 %v1089_v31, %v1052_v22  ;;  %v3001_v57 = vpop.permute.xlu1 %1375  ;;  %v1628_v59 = vadd.f32 %v2162_v25, %v1627_v37  ;;  %vm1684_vm11 = vcmp.eq.f32.partialorder %v1683_v49, 8.507059e+37  ;;  %v3064_v37 = vpop.eup %2167  ;;  %v1543_v49 = vand.u32 2147483648, %v3036_v62 }
 0x47c   : > { %v1614_v10 = vadd.f32 %v2164_v20, %v1613_v50  ;;  %v1283_v48 = vld [vmem:[#allocation4 + $0x18] sm:$0xff]  ;;  %v1533_v13 = vmul.f32 %v3064_v37, %v3036_v62  ;;  %vm1538_vm7 = vweird.f32 %v3064_v37 }
 0x47d   : > { %1101 = vst.msk [vmem:[#allocation4 + $0x28] sm:$0xff] %vm345_vm0, %v1097_v14  ;;  %v1632_v29 = vsel %vm3006_vm13, %v2162_v25, %v1628_v59  ;;  %v1307_v52 = vmul.f32 %v2946_v51, %v1283_v48  ;;  %v1718_v51 = vsub.f32 1.0, %v1717_v45  ;;  %v1685_v25 = vand.u32 2147483648, %v2950_v28  ;;  %v1457_v59 = vld [vmem:[#allocation4 + $0x30] sm:$0xff] }
 0x47e   : > { %v1471_v5 = vpop.permute.xlu0 %1470  ;;  %v1007_v23 = vpop.xlane.xlu2 %1006  ;;  %v1637_v0 = vsel %vm1634_vm2, %v1636_v55, %v1632_v29  ;;  %v1618_v17 = vsel %vm1617_vm4, %v2164_v20, %v1614_v10  ;;  %v1696_v20 = vsel %vm3030_vm8, %v2971_v15, %v1692_v6  ;;  %v1700_v28 = vor.u32 1.1754944e-38, %v1699_v24 }
 0x47f   : > { %v1480_v18 = vmul.f32 %v1471_v5, %v1456_v30  ;;  %v1015_v1 = vadd.f32 %v1007_v23, %v999_v53  ;;  %1659 = vperm.xlu1 %2066, %v1637_v0   ;;  %v1623_v47 = vsel %vm1620_vm5, %v1622_v41, %v1618_v17  ;;  %v1384_v19 = vadd.f32 %v2961_v2, %v1307_v52 }
 0x480   : > { %1654 = vperm.xlu2 %2054, %v1623_v47   ;;  %v1719_v16 = vmul.f32 %v2990_v40, %v1718_v51  ;;  %v1686_v15 = vor.u32 1.1754944e-38, %v1685_v25  ;;  %v1701_v63 = vsel %vm1698_vm10, %v1700_v28, %v1696_v20  ;;  %vm1721_vm13 = vweird.f32 %v2974_v4 }
 0x481   : > { %1484 = vst.msk [vmem:[#allocation4 + $0x20] sm:$0xff] %vm345_vm0, %v1480_v18  ;;  %vm3066_vm14 = vmor %vm1721_vm13, %vm1722_vm12  ;;  %v1728_v14 = vor.u32 1.1754944e-38, %v1727_v54  ;;  %v1534_v30 = vsub.f32 1.0, %v1533_v13  ;;  %vm1537_vm8 = vweird.f32 %v3036_v62  ;;  %v1544_v21 = vor.u32 1.1754944e-38, %v1543_v49 }
 0x482   : > { %1019 = vst.msk [vmem:[#allocation3 + $0x48] sm:$0xff] %vm292_vm1, %v1015_v1  ;;  %v1092_v2 = vpop.f32.mrf.mxu3  ;;  %vm3043_vm1 = vmor %vm1679_vm9, %vm1680_vm6  ;;  %v1713_v28 = vand.u32 2147483648, %v3070_v11 }
 0x483   : > { %v1098_v38 = vadd.f32 %v1092_v2, %v1053_v12  ;;  %v1466_v35 = vpop.permute.xlu1 %1465  ;;  %1388 = vst.msk [vmem:[#allocation4 + $0x18] sm:$0xff] %vm858_vm3, %v1384_v19  ;;  %v1682_v44 = vsel %vm3043_vm1, %v2963_v56, %v1678_v43  ;;  %v1535_v1 = vmul.f32 %v3064_v37, %v1534_v30  ;;  %vm1539_vm9 = vmor %vm1537_vm8, %vm1538_vm7 }
 0x484   : > { %v1284_v42 = vld [vmem:[#allocation4 + $0x28] sm:$0xff]  ;;  %v1479_v34 = vmul.f32 %v1466_v35, %v1455_v8  ;;  %v1687_v56 = vsel %vm1684_vm11, %v1686_v15, %v1682_v44  ;;  %vm1707_vm11 = vweird.f32 %v3070_v11  ;;  %v1711_v44 = vand.u32 2147483647, %v3070_v11 }
 0x485   : > { %v1308_v3 = vmul.f32 %v2934_v9, %v1284_v42  ;;  %1102 = vst.msk [vmem:[#allocation4 + $0x38] sm:$0xff] %vm345_vm0, %v1098_v38  ;;  %v1720_v9 = vadd.f32 %v2990_v40, %v1719_v16  ;;  %v1536_v2 = vadd.f32 %v3064_v37, %v1535_v1  ;;  %v1541_v38 = vand.u32 2147483647, %v3036_v62 }
 0x486   : > { %1483 = vst.msk [vmem:[#allocation4 + $0x10] sm:$0xff] %vm345_vm0, %v1479_v34  ;;  %v1461_v53 = vpop.permute.xlu2 %1460  ;;  %v1558_v60 = vpop.permute.xlu0 %1557  ;;  %v1714_v16 = vor.u32 1.1754944e-38, %v1713_v28  ;;  %vm1712_vm13 = vcmp.eq.f32.partialorder %v1711_v44, 8.507059e+37 }
 0x487   : > { %v1385_v32 = vadd.f32 %v3001_v57, %v1308_v3  ;;  %v1478_v22 = vmul.f32 %v1461_v53, %v1454_v26  ;;  %1741 = vperm.xlu1 %2066, %v1701_v63   ;;  %v1724_v31 = vsel %vm3066_vm14, %v2990_v40, %v1720_v9  ;;  %v1540_v8 = vsel %vm1539_vm9, %v3064_v37, %v1536_v2 }
 0x488   : > { %1736 = vperm.xlu2 %2054, %v1687_v56   ;;  %v1729_v10 = vsel %vm1726_vm15, %v1728_v14, %v1724_v31  ;;  %v1548_v6 = vld [vmem:[#allocation4 + $0x20] sm:$0xff]  ;;  %vm1542_vm1 = vcmp.eq.f32.partialorder %v1541_v38, 8.507059e+37 }
 0x489   : > { %1389 = vst.msk [vmem:[#allocation4 + $0x28] sm:$0xff] %vm858_vm3, %v1385_v32  ;;  %v1579_v61 = vld [vmem:[#allocation3 + $0x48] sm:$0xff]  ;;  %v1545_v42 = vsel %vm1542_vm1, %v1544_v21, %v1540_v8 }
 0x48a   : > { %1482 = vst.msk [vmem:[#allocation4] sm:$0xff] %vm345_vm0, %v1478_v22  ;;  %2169 = vrcp.f32 %v1579_v61  ;;  %v1605_v17 = vand.u32 2147483647, %v1579_v61  ;;  %vm1601_vm4 = vweird.f32 %v1579_v61  ;;  %v1638_v32 = vld [vmem:[#allocation4 + $0x8] sm:$0xff] }
 0x48b   : > { %2171 = vrcp.f32 %v3070_v11 }
 0x48c   : > { %v1285_v50 = vld [vmem:[#allocation4 + $0x38] sm:$0xff]  ;;  %vm1606_vm6 = vcmp.eq.f32.partialorder %v1605_v17, 8.507059e+37 }
 0x48d   : > { %v1547_v58 = vld [vmem:[#allocation4 + $0x10] sm:$0xff]  ;;  %v1309_v4 = vmul.f32 %v2943_v33, %v1285_v50  ;;  %v1553_v33 = vpop.permute.xlu1 %1552 }
 0x48e   : > { %v1571_v57 = vmul.f32 %v1558_v60, %v1547_v58  ;;  %v1476_v45 = vpop.permute.xlu2 %1475  ;;  %v1639_v58 = vld [vmem:[#allocation4 + $0x18] sm:$0xff] }
 0x48f   : > { %v1481_v55 = vmul.f32 %v1476_v45, %v1457_v59  ;;  %v1386_v40 = vadd.f32 %v2985_v7, %v1309_v4  ;;  %v1607_v7 = vand.u32 2147483648, %v1579_v61 }
 0x490   : > { %v2170_v48 = vpop.eup %2169  ;;  %1575 = vst.msk [vmem:[#allocation4 + $0x10] sm:$0xff] %vm858_vm3, %v1571_v57  ;;  %1751 = vperm.xlu2 %2054, %v1729_v10   ;;  %v1640_v15 = vld [vmem:[#allocation4 + $0x28] sm:$0xff] }
 0x491   : > { %v1546_v29 = vld [vmem:[#allocation4] sm:$0xff]  ;;  %1485 = vst.msk [vmem:[#allocation4 + $0x30] sm:$0xff] %vm345_vm0, %v1481_v55  ;;  %v1597_v41 = vmul.f32 %v2170_v48, %v1579_v61  ;;  %v2172_v23 = vpop.eup %2171  ;;  %vm1602_vm2 = vweird.f32 %v2170_v48  ;;  %v1608_v51 = vor.u32 1.1754944e-38, %v1607_v7 }
 0x492   : > { %v1570_v52 = vmul.f32 %v1553_v33, %v1546_v29  ;;  %1390 = vst.msk [vmem:[#allocation4 + $0x38] sm:$0xff] %vm858_vm3, %v1386_v40  ;;  %v1703_v43 = vmul.f32 %v2172_v23, %v3070_v11  ;;  %vm1603_vm5 = vmor %vm1601_vm4, %vm1602_vm2  ;;  %vm1708_vm10 = vweird.f32 %v2172_v23 }
 0x493   : > { %v1598_v5 = vsub.f32 1.0, %v1597_v41  ;;  %vm1709_vm12 = vmor %vm1707_vm11, %vm1708_vm10 }
 0x494   : > { %1574 = vst.msk [vmem:[#allocation4] sm:$0xff] %vm858_vm3, %v1570_v52  ;;  %v1704_v46 = vsub.f32 1.0, %v1703_v43 }
 0x495   : > { %v1599_v0 = vmul.f32 %v2170_v48, %v1598_v5 }
 0x496   : > { %v1563_v18 = vpop.permute.xlu2 %1562  ;;  %v1705_v35 = vmul.f32 %v2172_v23, %v1704_v46 }
 0x497   : > { %v1764_v47 = vld [vmem:[#allocation4 + $0x10] sm:$0xff]  ;;  %v1572_v19 = vmul.f32 %v1563_v18, %v1548_v6  ;;  %v1600_v24 = vadd.f32 %v2170_v48, %v1599_v0 }
 0x498   : > { %1772 = vst [vmem:[%s3089_s19 + $0x10] sm:$0xff] %v1764_v47  ;;  %v1706_v34 = vadd.f32 %v2172_v23, %v1705_v35  ;;  %v1549_v59 = vld [vmem:[#allocation4 + $0x30] sm:$0xff] }
 0x499   : > { %1576 = vst.msk [vmem:[#allocation4 + $0x20] sm:$0xff] %vm858_vm3, %v1572_v19  ;;  %v1604_v12 = vsel %vm1603_vm5, %v2170_v48, %v1600_v24  ;;  %v1641_v54 = vld [vmem:[#allocation4 + $0x38] sm:$0xff] }
 0x49a   : > { %v1609_v27 = vsel %vm1606_vm6, %v1608_v51, %v1604_v12  ;;  %v1710_v62 = vsel %vm1709_vm12, %v2172_v23, %v1706_v34 }
 0x49b   : > { %v1762_v25 = vld [vmem:[#allocation4] sm:$0xff]  ;;  %1649 = vperm.xlu0 %2055, %v1609_v27   ;;  %v1715_v3 = vsel %vm1712_vm13, %v1714_v16, %v1710_v62 }
 0x49c   : > { %1770 = vst [vmem:[%s3089_s19] sm:$0xff] %v1762_v25 }
 0x4a0   : > { %v1766_v20 = vld [vmem:[#allocation4 + $0x20] sm:$0xff] }
 0x4a1   : > { %1774 = vst [vmem:[%s3089_s19 + $0x20] sm:$0xff] %v1766_v20 }
 0x4a3   : > { %1567 = vperm.xlu0 %2055, %v1545_v42  }
 0x4ab   : > { %1746 = vperm.xlu0 %2055, %v1715_v3  }
 0x4da   : > { %v1655_v26 = vpop.permute.xlu2 %1654 }
 0x4db   : > { %v1664_v53 = vmul.f32 %v1655_v26, %v1640_v15 }
 0x4dd   : > { %1668 = vst.msk [vmem:[#allocation4 + $0x28] sm:$0xff] %vm345_vm0, %v1664_v53 }
 0x4e2   : > { %v1737_v56 = vpop.permute.xlu2 %1736 }
 0x4e4   : > { %v1732_v48 = vld [vmem:[#allocation4 + $0x28] sm:$0xff] }
 0x4e9   : > { %v1645_v63 = vpop.permute.xlu1 %1644 }
 0x4ea   : > { %v1662_v22 = vmul.f32 %v1645_v63, %v1638_v32  ;;  %v1752_v39 = vpop.permute.xlu2 %1751 }
 0x4ec   : > { %1666 = vst.msk [vmem:[#allocation4 + $0x8] sm:$0xff] %vm345_vm0, %v1662_v22 }
 0x4f1   : > { %v1660_v9 = vpop.permute.xlu1 %1659 }
 0x4f2   : > { %v1665_v61 = vmul.f32 %v1660_v9, %v1641_v54 }
 0x4f3   : > { %v1730_v36 = vld [vmem:[#allocation4 + $0x8] sm:$0xff] }
 0x4f4   : > { %v1754_v37 = vmul.f32 %v1737_v56, %v1730_v36  ;;  %1669 = vst.msk [vmem:[#allocation4 + $0x38] sm:$0xff] %vm345_vm0, %v1665_v61 }
 0x4f6   : > { %1758 = vst.msk [vmem:[#allocation4 + $0x8] sm:$0xff] %vm858_vm3, %v1754_v37 }
 0x4f9   : > { %v1742_v13 = vpop.permute.xlu1 %1741 }
 0x4fb   : > { %v1733_v11 = vld [vmem:[#allocation4 + $0x38] sm:$0xff] }
 0x4fc   : > { %v1757_v31 = vmul.f32 %v1752_v39, %v1733_v11 }
 0x4fd   : > { %v1763_v50 = vld [vmem:[#allocation4 + $0x8] sm:$0xff] }
 0x4fe   : > { %1771 = vst [vmem:[%s3089_s19 + $0x8] sm:$0xff] %v1763_v50 }
 0x4ff   : > { %1761 = vst.msk [vmem:[#allocation4 + $0x38] sm:$0xff] %vm858_vm3, %v1757_v31 }
 0x506   : > { %v1769_v60 = vld [vmem:[#allocation4 + $0x38] sm:$0xff] }
 0x507   : > { %1777 = vst [vmem:[%s3089_s19 + $0x38] sm:$0xff] %v1769_v60 }
 0x50d   : > { %v1650_v14 = vpop.permute.xlu0 %1649 }
 0x50e   : > { %v1663_v4 = vmul.f32 %v1650_v14, %v1639_v58 }
 0x510   : > { %1667 = vst.msk [vmem:[#allocation4 + $0x18] sm:$0xff] %vm345_vm0, %v1663_v4 }
 0x515   : > { %v1568_v57 = vpop.permute.xlu0 %1567 }
 0x516   : > { %v1573_v45 = vmul.f32 %v1568_v57, %v1549_v59 }
 0x517   : > { %v1731_v55 = vld [vmem:[#allocation4 + $0x18] sm:$0xff] }
 0x518   : > { %v1755_v10 = vmul.f32 %v1742_v13, %v1731_v55  ;;  %1577 = vst.msk [vmem:[#allocation4 + $0x30] sm:$0xff] %vm858_vm3, %v1573_v45 }
 0x51a   : > { %1759 = vst.msk [vmem:[#allocation4 + $0x18] sm:$0xff] %vm858_vm3, %v1755_v10 }
 0x51d   : > { %v1747_v40 = vpop.permute.xlu0 %1746 }
 0x51e   : > { %v1756_v33 = vmul.f32 %v1747_v40, %v1732_v48 }
 0x51f   : > { %v1768_v29 = vld [vmem:[#allocation4 + $0x30] sm:$0xff] }
 0x520   : > { %1776 = vst [vmem:[%s3089_s19 + $0x30] sm:$0xff] %v1768_v29 }
 0x521   : > { %v1765_v41 = vld [vmem:[#allocation4 + $0x18] sm:$0xff]  ;;  %1760 = vst.msk [vmem:[#allocation4 + $0x28] sm:$0xff] %vm858_vm3, %v1756_v33 }
 0x522   : > { %1773 = vst [vmem:[%s3089_s19 + $0x18] sm:$0xff] %v1765_v41 }
 0x528   : > { %v1767_v52 = vld [vmem:[#allocation4 + $0x28] sm:$0xff] }
 0x529   : > { %1775 = vst [vmem:[%s3089_s19 + $0x28] sm:$0xff] %v1767_v52 }
 0x52a   : > { %2201 = shalt.err (!%p2198_p5)
}
 0x52b   : > { %s2258_s10 = smov 256   ;;  %s2259_s11 = smov 16  }
 0x52c   : > { %1993 = dma.vmem_to_hbm [thread:$0]  (%p2320_p4), %s1795_s28, 1024, %s1797_s29, %s1779_s15, %s2258_s10, %s2258_s10, %s2259_s11  }
 0x52d PF: > { %p1999_p6 = scmp.ge.s32.totalorder %s2252_s17, 2  ;;  %s1811_s18 = sand.u32 1, %s2232_s12  }
 0x52e   : > { %s1812_s19 = scalar_lea.sflag [#allocation6], %s1811_s18 }
 0x52f   : > { %p1996_p7 = pnand %p1999_p6, %p2327_p8 }
 0x531   : > { %p1997_p9 = pneg %p1996_p7 }
 0x533   : > { %2227 = dma.done.wait (%p1997_p9), %s1812_s19, 1024  }
 0x534   : > { %2229 = vsyncadd (%p1997_p9), %s1812_s19, 4294966272  ;;  %s16_s17 = sadd.s32 1, %s2252_s17   ;;  %s3171_s12 = smov %s2236_s13 }
 0x535   : > { %p13_p10 = scmp.ge.s32.totalorder %s16_s17, 4   ;;  %s3172_s13 = smov %s2240_s14 }
 0x536   : > { %s3173_s14 = smov %s2333_s25  ;;  %s3174_s15 = smov %s2248_s16 }
 0x537   : > { %s3175_s16 = smov %s3177_s20  ;;  %15 = sbr.rel (!%p13_p10) target bundleno = 4 (0x4), region = 87 }
 0x53c   :  { %1818 = vsyncpa [#allocation6], 1 }
 0x53d   :  { %1820 = vsyncpa [#allocation6 + $0x1], 1 }

// kernel: multi_head_attention.2
= control target key start
LH: loop header
LB: loop body
LE: loop exit
PB: predicated region body
PF: predicated region fallthrough
CT: control target
= control target key end

     0   :  { %s2133_s3 = inlined_call_operand.vmem [shape: f32[256,256], index: 3, kind: input, shape index: {}]   ;;  %s2134_s0 = inlined_call_operand.vmem [shape: f32[64,256], index: 0, kind: input, shape index: {}]   ;;  %s2135_s4 = inlined_call_operand.vmem [shape: f32[256,256], index: 4, kind: input, shape index: {}]   ;;  %s2136_s5 = inlined_call_operand.vmem [shape: f32[256,256], index: 5, kind: input, shape index: {}]   ;;  %s2137_s1 = inlined_call_operand.vmem [shape: f32[64,256], index: 1, kind: input, shape index: {}]   ;;  %s2138_s2 = inlined_call_operand.vmem [shape: f32[64,256], index: 2, kind: input, shape index: {}]   ;;  %s2139_s6 = inlined_call_operand.vmem [shape: f32[1,256], index: 6, kind: input, shape index: {}]   ;;  %s2140_s9 = inlined_call_operand.vmem [shape: f32[64,256], index: 9, kind: output, shape index: {0}]   ;;  %s2141_s7 = inlined_call_operand.vmem [shape: f32[1,256], index: 7, kind: input, shape index: {}]   ;;  %s2142_s10 = inlined_call_operand.vmem [shape: f32[64,256], index: 10, kind: output, shape index: {1}]   ;;  %s2143_s8 = inlined_call_operand.vmem [shape: f32[1,256], index: 8, kind: input, shape index: {}]   ;;  %s2144_s11 = inlined_call_operand.vmem [shape: f32[64,256], index: 11, kind: output, shape index: {2}]  }
   0x1   :  { %v182_v0 = vld [vmem:[%s2133_s3 + $0xf8] sm:$0xff]  ;;  %v180_v2 = vld [vmem:[%s2133_s3 + $0xe8] sm:$0xff]  ;;  %v181_v6 = vld [vmem:[%s2133_s3 + $0xf0] sm:$0xff] }
   0x2   :  { %v214_v1 = vld [vmem:[%s2133_s3 + $0x1f8] sm:$0xff]  ;;  %297 = vmatpush.msra.mxu2 %v182_v0  ;;  %v212_v3 = vld [vmem:[%s2133_s3 + $0x1e8] sm:$0xff]  ;;  %v213_v7 = vld [vmem:[%s2133_s3 + $0x1f0] sm:$0xff]  ;;  %215 = vmatpush.msra.mxu0 %v181_v6 }
   0x3   :  { %338 = vmatpush.msra.mxu3 %v214_v1  ;;  %v178_v4 = vld [vmem:[%s2133_s3 + $0xd8] sm:$0xff]  ;;  %v179_v8 = vld [vmem:[%s2133_s3 + $0xe0] sm:$0xff]  ;;  %256 = vmatpush.msra.mxu1 %v213_v7  ;;  %v176_v10 = vld [vmem:[%s2133_s3 + $0xc8] sm:$0xff] }
   0x4   :  { %v210_v5 = vld [vmem:[%s2133_s3 + $0x1d8] sm:$0xff]  ;;  %298 = vmatpush.msra.mxu2 %v180_v2  ;;  %v211_v9 = vld [vmem:[%s2133_s3 + $0x1e0] sm:$0xff]  ;;  %v208_v11 = vld [vmem:[%s2133_s3 + $0x1c8] sm:$0xff]  ;;  %216 = vmatpush.msra.mxu0 %v179_v8 }
   0x5   :  { %339 = vmatpush.msra.mxu3 %v212_v3  ;;  %v177_v12 = vld [vmem:[%s2133_s3 + $0xd0] sm:$0xff]  ;;  %257 = vmatpush.msra.mxu1 %v211_v9  ;;  %v174_v14 = vld [vmem:[%s2133_s3 + $0xb8] sm:$0xff]  ;;  %v175_v16 = vld [vmem:[%s2133_s3 + $0xc0] sm:$0xff] }
   0x6   :  { %299 = vmatpush.msra.mxu2 %v178_v4  ;;  %v209_v13 = vld [vmem:[%s2133_s3 + $0x1d0] sm:$0xff]  ;;  %v206_v15 = vld [vmem:[%s2133_s3 + $0x1b8] sm:$0xff]  ;;  %v207_v17 = vld [vmem:[%s2133_s3 + $0x1c0] sm:$0xff]  ;;  %217 = vmatpush.msra.mxu0 %v177_v12 }
   0x7   :  { %340 = vmatpush.msra.mxu3 %v210_v5  ;;  %258 = vmatpush.msra.mxu1 %v209_v13  ;;  %v172_v18 = vld [vmem:[%s2133_s3 + $0xa8] sm:$0xff]  ;;  %v173_v20 = vld [vmem:[%s2133_s3 + $0xb0] sm:$0xff]  ;;  %v170_v22 = vld [vmem:[%s2133_s3 + $0x98] sm:$0xff] }
   0x8   :  { %300 = vmatpush.msra.mxu2 %v176_v10  ;;  %v204_v19 = vld [vmem:[%s2133_s3 + $0x1a8] sm:$0xff]  ;;  %v205_v21 = vld [vmem:[%s2133_s3 + $0x1b0] sm:$0xff]  ;;  %218 = vmatpush.msra.mxu0 %v175_v16  ;;  %v202_v23 = vld [vmem:[%s2133_s3 + $0x198] sm:$0xff] }
   0x9   :  { %341 = vmatpush.msra.mxu3 %v208_v11  ;;  %259 = vmatpush.msra.mxu1 %v207_v17  ;;  %v171_v24 = vld [vmem:[%s2133_s3 + $0xa0] sm:$0xff]  ;;  %v168_v26 = vld [vmem:[%s2133_s3 + $0x88] sm:$0xff]  ;;  %v169_v28 = vld [vmem:[%s2133_s3 + $0x90] sm:$0xff] }
   0xa   :  { %301 = vmatpush.msra.mxu2 %v174_v14  ;;  %v203_v25 = vld [vmem:[%s2133_s3 + $0x1a0] sm:$0xff]  ;;  %219 = vmatpush.msra.mxu0 %v173_v20  ;;  %v200_v27 = vld [vmem:[%s2133_s3 + $0x188] sm:$0xff]  ;;  %v201_v29 = vld [vmem:[%s2133_s3 + $0x190] sm:$0xff] }
   0xb   :  { %342 = vmatpush.msra.mxu3 %v206_v15  ;;  %260 = vmatpush.msra.mxu1 %v205_v21  ;;  %v166_v30 = vld [vmem:[%s2133_s3 + $0x78] sm:$0xff]  ;;  %v167_v32 = vld [vmem:[%s2133_s3 + $0x80] sm:$0xff]  ;;  %v164_v34 = vld [vmem:[%s2133_s3 + $0x68] sm:$0xff] }
   0xc   :  { %302 = vmatpush.msra.mxu2 %v172_v18  ;;  %220 = vmatpush.msra.mxu0 %v171_v24  ;;  %v198_v31 = vld [vmem:[%s2133_s3 + $0x178] sm:$0xff]  ;;  %v199_v33 = vld [vmem:[%s2133_s3 + $0x180] sm:$0xff]  ;;  %v196_v35 = vld [vmem:[%s2133_s3 + $0x168] sm:$0xff] }
   0xd   :  { %343 = vmatpush.msra.mxu3 %v204_v19  ;;  %261 = vmatpush.msra.mxu1 %v203_v25  ;;  %v165_v36 = vld [vmem:[%s2133_s3 + $0x70] sm:$0xff]  ;;  %v162_v38 = vld [vmem:[%s2133_s3 + $0x58] sm:$0xff]  ;;  %v163_v40 = vld [vmem:[%s2133_s3 + $0x60] sm:$0xff] }
   0xe   :  { %303 = vmatpush.msra.mxu2 %v170_v22  ;;  %221 = vmatpush.msra.mxu0 %v169_v28  ;;  %v197_v37 = vld [vmem:[%s2133_s3 + $0x170] sm:$0xff]  ;;  %v194_v39 = vld [vmem:[%s2133_s3 + $0x158] sm:$0xff]  ;;  %v195_v41 = vld [vmem:[%s2133_s3 + $0x160] sm:$0xff] }
   0xf   :  { %344 = vmatpush.msra.mxu3 %v202_v23  ;;  %262 = vmatpush.msra.mxu1 %v201_v29  ;;  %v160_v42 = vld [vmem:[%s2133_s3 + $0x48] sm:$0xff]  ;;  %v161_v44 = vld [vmem:[%s2133_s3 + $0x50] sm:$0xff]  ;;  %v158_v46 = vld [vmem:[%s2133_s3 + $0x38] sm:$0xff] }
  0x10   :  { %304 = vmatpush.msra.mxu2 %v168_v26  ;;  %222 = vmatpush.msra.mxu0 %v167_v32  ;;  %v192_v43 = vld [vmem:[%s2133_s3 + $0x148] sm:$0xff]  ;;  %v193_v45 = vld [vmem:[%s2133_s3 + $0x150] sm:$0xff]  ;;  %v190_v47 = vld [vmem:[%s2133_s3 + $0x138] sm:$0xff] }
  0x11   :  { %345 = vmatpush.msra.mxu3 %v200_v27  ;;  %263 = vmatpush.msra.mxu1 %v199_v33  ;;  %v159_v48 = vld [vmem:[%s2133_s3 + $0x40] sm:$0xff]  ;;  %v156_v50 = vld [vmem:[%s2133_s3 + $0x28] sm:$0xff]  ;;  %v157_v52 = vld [vmem:[%s2133_s3 + $0x30] sm:$0xff] }
  0x12   :  { %305 = vmatpush.msra.mxu2 %v166_v30  ;;  %223 = vmatpush.msra.mxu0 %v165_v36  ;;  %v191_v49 = vld [vmem:[%s2133_s3 + $0x140] sm:$0xff]  ;;  %v188_v51 = vld [vmem:[%s2133_s3 + $0x128] sm:$0xff]  ;;  %v189_v53 = vld [vmem:[%s2133_s3 + $0x130] sm:$0xff] }
  0x13   :  { %346 = vmatpush.msra.mxu3 %v198_v31  ;;  %264 = vmatpush.msra.mxu1 %v197_v37  ;;  %v154_v54 = vld [vmem:[%s2133_s3 + $0x18] sm:$0xff]  ;;  %v155_v56 = vld [vmem:[%s2133_s3 + $0x20] sm:$0xff]  ;;  %v152_v58 = vld [vmem:[%s2133_s3 + $0x8] sm:$0xff] }
  0x14   :  { %306 = vmatpush.msra.mxu2 %v164_v34  ;;  %224 = vmatpush.msra.mxu0 %v163_v40  ;;  %v186_v55 = vld [vmem:[%s2133_s3 + $0x118] sm:$0xff]  ;;  %v187_v57 = vld [vmem:[%s2133_s3 + $0x120] sm:$0xff]  ;;  %v184_v59 = vld [vmem:[%s2133_s3 + $0x108] sm:$0xff] }
  0x15   :  { %347 = vmatpush.msra.mxu3 %v196_v35  ;;  %265 = vmatpush.msra.mxu1 %v195_v41  ;;  %v87_v60 = vld [vmem:[%s2134_s0] sm:$0xff]  ;;  %v88_v61 = vld [vmem:[%s2134_s0 + $0x8] sm:$0xff]  ;;  %v458_v62 = vld [vmem:[%s2135_s4 + $0xf8] sm:$0xff] }
  0x16   :  { %307 = vmatpush.msra.mxu2 %v162_v38  ;;  %225 = vmatpush.msra.mxu0 %v161_v44  ;;  %v490_v63 = vld [vmem:[%s2135_s4 + $0x1f8] sm:$0xff]  ;;  %v153_v0 = vld [vmem:[%s2133_s3 + $0x10] sm:$0xff]  ;;  %v456_v2 = vld [vmem:[%s2135_s4 + $0xe8] sm:$0xff] }
  0x17   :  { %348 = vmatpush.msra.mxu3 %v194_v39  ;;  %266 = vmatpush.msra.mxu1 %v193_v45  ;;  %v185_v1 = vld [vmem:[%s2133_s3 + $0x110] sm:$0xff]  ;;  %v488_v3 = vld [vmem:[%s2135_s4 + $0x1e8] sm:$0xff]  ;;  %v151_v4 = vld [vmem:[%s2133_s3] sm:$0xff] }
  0x18   :  { %308 = vmatpush.msra.mxu2 %v160_v42  ;;  %226 = vmatpush.msra.mxu0 %v159_v48  ;;  %v183_v5 = vld [vmem:[%s2133_s3 + $0x100] sm:$0xff]  ;;  %v457_v6 = vld [vmem:[%s2135_s4 + $0xf0] sm:$0xff]  ;;  %v454_v8 = vld [vmem:[%s2135_s4 + $0xd8] sm:$0xff] }
  0x19   :  { %349 = vmatpush.msra.mxu3 %v192_v43  ;;  %267 = vmatpush.msra.mxu1 %v191_v49  ;;  %v489_v7 = vld [vmem:[%s2135_s4 + $0x1f0] sm:$0xff]  ;;  %v486_v9 = vld [vmem:[%s2135_s4 + $0x1d8] sm:$0xff]  ;;  %v455_v12 = vld [vmem:[%s2135_s4 + $0xe0] sm:$0xff] }
  0x1a   :  { %309 = vmatpush.msra.mxu2 %v158_v46  ;;  %227 = vmatpush.msra.mxu0 %v157_v52  ;;  %v89_v10 = vld [vmem:[%s2134_s0 + $0x10] sm:$0xff]  ;;  %v90_v11 = vld [vmem:[%s2134_s0 + $0x18] sm:$0xff]  ;;  %v487_v13 = vld [vmem:[%s2135_s4 + $0x1e0] sm:$0xff] }
  0x1b   :  { %350 = vmatpush.msra.mxu3 %v190_v47  ;;  %268 = vmatpush.msra.mxu1 %v189_v53  ;;  %v452_v14 = vld [vmem:[%s2135_s4 + $0xc8] sm:$0xff]  ;;  %v453_v16 = vld [vmem:[%s2135_s4 + $0xd0] sm:$0xff]  ;;  %v450_v18 = vld [vmem:[%s2135_s4 + $0xb8] sm:$0xff] }
  0x1c   :  { %310 = vmatpush.msra.mxu2 %v156_v50  ;;  %228 = vmatpush.msra.mxu0 %v155_v56  ;;  %v484_v15 = vld [vmem:[%s2135_s4 + $0x1c8] sm:$0xff]  ;;  %v485_v17 = vld [vmem:[%s2135_s4 + $0x1d0] sm:$0xff]  ;;  %v482_v19 = vld [vmem:[%s2135_s4 + $0x1b8] sm:$0xff] }
  0x1d   :  { %351 = vmatpush.msra.mxu3 %v188_v51  ;;  %269 = vmatpush.msra.mxu1 %v187_v57  ;;  %v451_v20 = vld [vmem:[%s2135_s4 + $0xc0] sm:$0xff]  ;;  %v448_v22 = vld [vmem:[%s2135_s4 + $0xa8] sm:$0xff]  ;;  %v449_v26 = vld [vmem:[%s2135_s4 + $0xb0] sm:$0xff] }
  0x1e   :  { %311 = vmatpush.msra.mxu2 %v154_v54  ;;  %229 = vmatpush.msra.mxu0 %v153_v0  ;;  %v483_v21 = vld [vmem:[%s2135_s4 + $0x1c0] sm:$0xff]  ;;  %v480_v23 = vld [vmem:[%s2135_s4 + $0x1a8] sm:$0xff]  ;;  %v481_v27 = vld [vmem:[%s2135_s4 + $0x1b0] sm:$0xff] }
  0x1f   :  { %352 = vmatpush.msra.mxu3 %v186_v55  ;;  %270 = vmatpush.msra.mxu1 %v185_v1  ;;  %v91_v24 = vld [vmem:[%s2134_s0 + $0x20] sm:$0xff]  ;;  %v92_v25 = vld [vmem:[%s2134_s0 + $0x28] sm:$0xff]  ;;  %v446_v28 = vld [vmem:[%s2135_s4 + $0x98] sm:$0xff] }
  0x20   :  { %312 = vmatpush.msra.mxu2 %v152_v58  ;;  %230 = vmatpush.msra.mxu0 %v151_v4  ;;  %v478_v29 = vld [vmem:[%s2135_s4 + $0x198] sm:$0xff]  ;;  %v447_v30 = vld [vmem:[%s2135_s4 + $0xa0] sm:$0xff]  ;;  %v444_v32 = vld [vmem:[%s2135_s4 + $0x88] sm:$0xff] }
  0x21   :  { %353 = vmatpush.msra.mxu3 %v184_v59  ;;  %313 = vmatmul.f32.vlgmr.msra.gmra.mxu2 %v87_v60  ;;  %v479_v31 = vld [vmem:[%s2135_s4 + $0x1a0] sm:$0xff]  ;;  %v476_v33 = vld [vmem:[%s2135_s4 + $0x188] sm:$0xff]  ;;  %v445_v34 = vld [vmem:[%s2135_s4 + $0x90] sm:$0xff] }
  0x22   :  { %354 = vmatmul.f32.vlgmr.msra.gmra.mxu3 %v88_v61  ;;  %573 = vmatpush.msrb.mxu2 %v458_v62  ;;  %v477_v35 = vld [vmem:[%s2135_s4 + $0x190] sm:$0xff]  ;;  %v442_v36 = vld [vmem:[%s2135_s4 + $0x78] sm:$0xff]  ;;  %v443_v40 = vld [vmem:[%s2135_s4 + $0x80] sm:$0xff] }
  0x23   :  { %614 = vmatpush.msrb.mxu3 %v490_v63  ;;  %271 = vmatpush.msra.mxu1 %v183_v5  ;;  %v474_v37 = vld [vmem:[%s2135_s4 + $0x178] sm:$0xff]  ;;  %v93_v38 = vld [vmem:[%s2134_s0 + $0x30] sm:$0xff]  ;;  %v475_v41 = vld [vmem:[%s2135_s4 + $0x180] sm:$0xff] }
  0x24   :  { %574 = vmatpush.msrb.mxu2 %v456_v2  ;;  %231 = vmatmul.f32.vlgmr.msra.gmra.mxu0 %v87_v60  ;;  %v94_v39 = vld [vmem:[%s2134_s0 + $0x38] sm:$0xff]  ;;  %v440_v42 = vld [vmem:[%s2135_s4 + $0x68] sm:$0xff]  ;;  %v441_v44 = vld [vmem:[%s2135_s4 + $0x70] sm:$0xff] }
  0x25   :  { %615 = vmatpush.msrb.mxu3 %v488_v3  ;;  %272 = vmatmul.f32.vlgmr.msra.gmra.mxu1 %v88_v61  ;;  %v472_v43 = vld [vmem:[%s2135_s4 + $0x168] sm:$0xff]  ;;  %v473_v45 = vld [vmem:[%s2135_s4 + $0x170] sm:$0xff]  ;;  %v438_v46 = vld [vmem:[%s2135_s4 + $0x58] sm:$0xff] }
  0x26   :  { %491 = vmatpush.msrb.mxu0 %v457_v6  ;;  %532 = vmatpush.msrb.mxu1 %v489_v7  ;;  %v470_v47 = vld [vmem:[%s2135_s4 + $0x158] sm:$0xff]  ;;  %v439_v48 = vld [vmem:[%s2135_s4 + $0x60] sm:$0xff]  ;;  %v436_v50 = vld [vmem:[%s2135_s4 + $0x48] sm:$0xff] }
  0x27   :  { %575 = vmatpush.msrb.mxu2 %v454_v8  ;;  %616 = vmatpush.msrb.mxu3 %v486_v9  ;;  %v471_v49 = vld [vmem:[%s2135_s4 + $0x160] sm:$0xff]  ;;  %v468_v51 = vld [vmem:[%s2135_s4 + $0x148] sm:$0xff]  ;;  %v437_v54 = vld [vmem:[%s2135_s4 + $0x50] sm:$0xff] }
  0x28   :  { %492 = vmatpush.msrb.mxu0 %v455_v12  ;;  %533 = vmatpush.msrb.mxu1 %v487_v13  ;;  %v95_v52 = vld [vmem:[%s2134_s0 + $0x40] sm:$0xff]  ;;  %v96_v53 = vld [vmem:[%s2134_s0 + $0x48] sm:$0xff]  ;;  %v469_v55 = vld [vmem:[%s2135_s4 + $0x150] sm:$0xff] }
  0x29   :  { %316 = vmatmul.f32.gmra.mxu2 %v89_v10  ;;  %617 = vmatpush.msrb.mxu3 %v484_v15  ;;  %v434_v56 = vld [vmem:[%s2135_s4 + $0x38] sm:$0xff]  ;;  %v435_v58 = vld [vmem:[%s2135_s4 + $0x40] sm:$0xff]  ;;  %v432_v60 = vld [vmem:[%s2135_s4 + $0x28] sm:$0xff] }
  0x2a   :  { %357 = vmatmul.f32.gmra.mxu3 %v90_v11  ;;  %576 = vmatpush.msrb.mxu2 %v452_v14  ;;  %v466_v57 = vld [vmem:[%s2135_s4 + $0x138] sm:$0xff]  ;;  %v467_v59 = vld [vmem:[%s2135_s4 + $0x140] sm:$0xff]  ;;  %v464_v61 = vld [vmem:[%s2135_s4 + $0x128] sm:$0xff] }
  0x2b   :  { %493 = vmatpush.msrb.mxu0 %v453_v16  ;;  %534 = vmatpush.msrb.mxu1 %v485_v17  ;;  %v433_v62 = vld [vmem:[%s2135_s4 + $0x30] sm:$0xff]  ;;  %v430_v0 = vld [vmem:[%s2135_s4 + $0x18] sm:$0xff]  ;;  %v431_v4 = vld [vmem:[%s2135_s4 + $0x20] sm:$0xff] }
  0x2c   :  { %577 = vmatpush.msrb.mxu2 %v450_v18  ;;  %618 = vmatpush.msrb.mxu3 %v482_v19  ;;  %v465_v63 = vld [vmem:[%s2135_s4 + $0x130] sm:$0xff]  ;;  %v462_v1 = vld [vmem:[%s2135_s4 + $0x118] sm:$0xff]  ;;  %v463_v5 = vld [vmem:[%s2135_s4 + $0x120] sm:$0xff] }
  0x2d   :  { %234 = vmatmul.f32.gmra.mxu0 %v89_v10  ;;  %275 = vmatmul.f32.gmra.mxu1 %v90_v11  ;;  %v97_v2 = vld [vmem:[%s2134_s0 + $0x50] sm:$0xff]  ;;  %v98_v3 = vld [vmem:[%s2134_s0 + $0x58] sm:$0xff]  ;;  %v428_v6 = vld [vmem:[%s2135_s4 + $0x8] sm:$0xff] }
  0x2e   :  { %494 = vmatpush.msrb.mxu0 %v451_v20  ;;  %535 = vmatpush.msrb.mxu1 %v483_v21  ;;  %v460_v7 = vld [vmem:[%s2135_s4 + $0x108] sm:$0xff]  ;;  %v429_v8 = vld [vmem:[%s2135_s4 + $0x10] sm:$0xff]  ;;  %v734_v10 = vld [vmem:[%s2136_s5 + $0xf8] sm:$0xff] }
  0x2f   :  { %578 = vmatpush.msrb.mxu2 %v448_v22  ;;  %619 = vmatpush.msrb.mxu3 %v480_v23  ;;  %v461_v9 = vld [vmem:[%s2135_s4 + $0x110] sm:$0xff]  ;;  %v766_v11 = vld [vmem:[%s2136_s5 + $0x1f8] sm:$0xff]  ;;  %v427_v12 = vld [vmem:[%s2135_s4] sm:$0xff] }
  0x30   :  { %495 = vmatpush.msrb.mxu0 %v449_v26  ;;  %536 = vmatpush.msrb.mxu1 %v481_v27  ;;  %v459_v13 = vld [vmem:[%s2135_s4 + $0x100] sm:$0xff]  ;;  %v732_v14 = vld [vmem:[%s2136_s5 + $0xe8] sm:$0xff]  ;;  %v733_v18 = vld [vmem:[%s2136_s5 + $0xf0] sm:$0xff] }
  0x31   :  { %319 = vmatmul.f32.gmra.mxu2 %v91_v24  ;;  %620 = vmatpush.msrb.mxu3 %v478_v29  ;;  %v764_v15 = vld [vmem:[%s2136_s5 + $0x1e8] sm:$0xff]  ;;  %v99_v16 = vld [vmem:[%s2134_s0 + $0x60] sm:$0xff]  ;;  %v765_v19 = vld [vmem:[%s2136_s5 + $0x1f0] sm:$0xff] }
  0x32   :  { %360 = vmatmul.f32.gmra.mxu3 %v92_v25  ;;  %579 = vmatpush.msrb.mxu2 %v446_v28  ;;  %v100_v17 = vld [vmem:[%s2134_s0 + $0x68] sm:$0xff]  ;;  %v730_v20 = vld [vmem:[%s2136_s5 + $0xd8] sm:$0xff]  ;;  %v731_v22 = vld [vmem:[%s2136_s5 + $0xe0] sm:$0xff] }
  0x33   :  { %496 = vmatpush.msrb.mxu0 %v447_v30  ;;  %537 = vmatpush.msrb.mxu1 %v479_v31  ;;  %v762_v21 = vld [vmem:[%s2136_s5 + $0x1d8] sm:$0xff]  ;;  %v763_v23 = vld [vmem:[%s2136_s5 + $0x1e0] sm:$0xff]  ;;  %v729_v26 = vld [vmem:[%s2136_s5 + $0xd0] sm:$0xff] }
  0x34   :  { %580 = vmatpush.msrb.mxu2 %v444_v32  ;;  %621 = vmatpush.msrb.mxu3 %v476_v33  ;;  %v761_v27 = vld [vmem:[%s2136_s5 + $0x1d0] sm:$0xff]  ;;  %v726_v28 = vld [vmem:[%s2136_s5 + $0xb8] sm:$0xff]  ;;  %v727_v32 = vld [vmem:[%s2136_s5 + $0xc0] sm:$0xff] }
  0x35   :  { %237 = vmatmul.f32.gmra.mxu0 %v91_v24  ;;  %278 = vmatmul.f32.gmra.mxu1 %v92_v25  ;;  %v728_v24 = vld [vmem:[%s2136_s5 + $0xc8] sm:$0xff]  ;;  %v758_v29 = vld [vmem:[%s2136_s5 + $0x1b8] sm:$0xff]  ;;  %v101_v30 = vld [vmem:[%s2134_s0 + $0x70] sm:$0xff] }
  0x36   :  { %497 = vmatpush.msrb.mxu0 %v445_v34  ;;  %538 = vmatpush.msrb.mxu1 %v477_v35  ;;  %v760_v25 = vld [vmem:[%s2136_s5 + $0x1c8] sm:$0xff]  ;;  %v102_v31 = vld [vmem:[%s2134_s0 + $0x78] sm:$0xff]  ;;  %v759_v33 = vld [vmem:[%s2136_s5 + $0x1c0] sm:$0xff] }
  0x37   :  { %581 = vmatpush.msrb.mxu2 %v442_v36  ;;  %622 = vmatpush.msrb.mxu3 %v474_v37  ;;  %v724_v34 = vld [vmem:[%s2136_s5 + $0xa8] sm:$0xff]  ;;  %v725_v36 = vld [vmem:[%s2136_s5 + $0xb0] sm:$0xff] }
  0x38   :  { %498 = vmatpush.msrb.mxu0 %v443_v40  ;;  %539 = vmatpush.msrb.mxu1 %v475_v41  ;;  %v756_v35 = vld [vmem:[%s2136_s5 + $0x1a8] sm:$0xff]  ;;  %v757_v37 = vld [vmem:[%s2136_s5 + $0x1b0] sm:$0xff]  ;;  %v723_v40 = vld [vmem:[%s2136_s5 + $0xa0] sm:$0xff] }
  0x39   :  { %322 = vmatmul.f32.gmra.mxu2 %v93_v38  ;;  %623 = vmatpush.msrb.mxu3 %v472_v43  ;;  %v755_v41 = vld [vmem:[%s2136_s5 + $0x1a0] sm:$0xff]  ;;  %v752_v43 = vld [vmem:[%s2136_s5 + $0x188] sm:$0xff] }
  0x3a   :  { %363 = vmatmul.f32.gmra.mxu3 %v94_v39  ;;  %582 = vmatpush.msrb.mxu2 %v440_v42  ;;  %v720_v42 = vld [vmem:[%s2136_s5 + $0x88] sm:$0xff] }
  0x3b   :  { %499 = vmatpush.msrb.mxu0 %v441_v44  ;;  %540 = vmatpush.msrb.mxu1 %v473_v45  ;;  %v103_v44 = vld [vmem:[%s2137_s1] sm:$0xff]  ;;  %v104_v45 = vld [vmem:[%s2137_s1 + $0x8] sm:$0xff] }
  0x3c   :  { %583 = vmatpush.msrb.mxu2 %v438_v46  ;;  %624 = vmatpush.msrb.mxu3 %v470_v47  ;;  %v721_v46 = vld [vmem:[%s2136_s5 + $0x90] sm:$0xff] }
  0x3d   :  { %240 = vmatmul.f32.gmra.mxu0 %v93_v38  ;;  %281 = vmatmul.f32.gmra.mxu1 %v94_v39  ;;  %v722_v38 = vld [vmem:[%s2136_s5 + $0x98] sm:$0xff]  ;;  %v753_v47 = vld [vmem:[%s2136_s5 + $0x190] sm:$0xff] }
  0x3e   :  { %500 = vmatpush.msrb.mxu0 %v439_v48  ;;  %541 = vmatpush.msrb.mxu1 %v471_v49  ;;  %v754_v39 = vld [vmem:[%s2136_s5 + $0x198] sm:$0xff] }
  0x3f   :  { %584 = vmatpush.msrb.mxu2 %v436_v50  ;;  %625 = vmatpush.msrb.mxu3 %v468_v51  ;;  %v718_v48 = vld [vmem:[%s2136_s5 + $0x78] sm:$0xff]  ;;  %v719_v50 = vld [vmem:[%s2136_s5 + $0x80] sm:$0xff] }
  0x40   :  { %501 = vmatpush.msrb.mxu0 %v437_v54  ;;  %542 = vmatpush.msrb.mxu1 %v469_v55  ;;  %v750_v49 = vld [vmem:[%s2136_s5 + $0x178] sm:$0xff]  ;;  %v751_v51 = vld [vmem:[%s2136_s5 + $0x180] sm:$0xff]  ;;  %v105_v54 = vld [vmem:[%s2137_s1 + $0x10] sm:$0xff] }
  0x41   :  { %325 = vmatmul.f32.gmra.mxu2 %v95_v52  ;;  %626 = vmatpush.msrb.mxu3 %v466_v57  ;;  %v106_v55 = vld [vmem:[%s2137_s1 + $0x18] sm:$0xff]  ;;  %v749_v57 = vld [vmem:[%s2136_s5 + $0x170] sm:$0xff] }
  0x42   :  { %366 = vmatmul.f32.gmra.mxu3 %v96_v53  ;;  %585 = vmatpush.msrb.mxu2 %v434_v56  ;;  %v717_v56 = vld [vmem:[%s2136_s5 + $0x70] sm:$0xff] }
  0x43   :  { %502 = vmatpush.msrb.mxu0 %v435_v58  ;;  %543 = vmatpush.msrb.mxu1 %v467_v59  ;;  %v714_v58 = vld [vmem:[%s2136_s5 + $0x58] sm:$0xff] }
  0x44   :  { %586 = vmatpush.msrb.mxu2 %v432_v60  ;;  %627 = vmatpush.msrb.mxu3 %v464_v61  ;;  %v746_v59 = vld [vmem:[%s2136_s5 + $0x158] sm:$0xff]  ;;  %v715_v60 = vld [vmem:[%s2136_s5 + $0x60] sm:$0xff] }
  0x45   :  { %243 = vmatmul.f32.gmra.mxu0 %v95_v52  ;;  %284 = vmatmul.f32.gmra.mxu1 %v96_v53  ;;  %v716_v52 = vld [vmem:[%s2136_s5 + $0x68] sm:$0xff]  ;;  %v747_v61 = vld [vmem:[%s2136_s5 + $0x160] sm:$0xff] }
  0x46   :  { %503 = vmatpush.msrb.mxu0 %v433_v62  ;;  %544 = vmatpush.msrb.mxu1 %v465_v63  ;;  %v748_v53 = vld [vmem:[%s2136_s5 + $0x168] sm:$0xff] }
  0x47   :  { %587 = vmatpush.msrb.mxu2 %v430_v0  ;;  %628 = vmatpush.msrb.mxu3 %v462_v1  ;;  %v712_v62 = vld [vmem:[%s2136_s5 + $0x48] sm:$0xff]  ;;  %v107_v0 = vld [vmem:[%s2137_s1 + $0x20] sm:$0xff] }
  0x48   :  { %504 = vmatpush.msrb.mxu0 %v431_v4  ;;  %545 = vmatpush.msrb.mxu1 %v463_v5  ;;  %v744_v63 = vld [vmem:[%s2136_s5 + $0x148] sm:$0xff]  ;;  %v710_v4 = vld [vmem:[%s2136_s5 + $0x38] sm:$0xff] }
  0x49   :  { %328 = vmatmul.f32.gmra.mxu2 %v97_v2  ;;  %629 = vmatpush.msrb.mxu3 %v460_v7  ;;  %v108_v1 = vld [vmem:[%s2137_s1 + $0x28] sm:$0xff]  ;;  %v742_v5 = vld [vmem:[%s2136_s5 + $0x138] sm:$0xff]  ;;  %v743_v7 = vld [vmem:[%s2136_s5 + $0x140] sm:$0xff] }
  0x4a   :  { %369 = vmatmul.f32.gmra.mxu3 %v98_v3  ;;  %588 = vmatpush.msrb.mxu2 %v428_v6  ;;  %v711_v6 = vld [vmem:[%s2136_s5 + $0x40] sm:$0xff] }
  0x4b   :  { %505 = vmatpush.msrb.mxu0 %v429_v8  ;;  %546 = vmatpush.msrb.mxu1 %v461_v9  ;;  %v708_v8 = vld [vmem:[%s2136_s5 + $0x28] sm:$0xff] }
  0x4c   :  { %849 = vmatpush.msra.mxu2 %v734_v10  ;;  %890 = vmatpush.msra.mxu3 %v766_v11  ;;  %v740_v9 = vld [vmem:[%s2136_s5 + $0x128] sm:$0xff]  ;;  %v109_v10 = vld [vmem:[%s2137_s1 + $0x30] sm:$0xff]  ;;  %v110_v11 = vld [vmem:[%s2137_s1 + $0x38] sm:$0xff] }
  0x4d   :  { %246 = vmatmul.f32.gmra.mxu0 %v97_v2  ;;  %287 = vmatmul.f32.gmra.mxu1 %v98_v3  ;;  %v713_v2 = vld [vmem:[%s2136_s5 + $0x50] sm:$0xff] }
  0x4e   :  { %506 = vmatpush.msrb.mxu0 %v427_v12  ;;  %547 = vmatpush.msrb.mxu1 %v459_v13  ;;  %v745_v3 = vld [vmem:[%s2136_s5 + $0x150] sm:$0xff] }
  0x4f   :  { %850 = vmatpush.msra.mxu2 %v732_v14  ;;  %891 = vmatpush.msra.mxu3 %v764_v15  ;;  %v709_v12 = vld [vmem:[%s2136_s5 + $0x30] sm:$0xff]  ;;  %v706_v14 = vld [vmem:[%s2136_s5 + $0x18] sm:$0xff] }
  0x50   :  { %767 = vmatpush.msra.mxu0 %v733_v18  ;;  %808 = vmatpush.msra.mxu1 %v765_v19  ;;  %v741_v13 = vld [vmem:[%s2136_s5 + $0x130] sm:$0xff]  ;;  %v738_v15 = vld [vmem:[%s2136_s5 + $0x118] sm:$0xff]  ;;  %v704_v18 = vld [vmem:[%s2136_s5 + $0x8] sm:$0xff] }
  0x51   :  { %331 = vmatmul.f32.gmra.mxu2 %v99_v16  ;;  %892 = vmatpush.msra.mxu3 %v762_v21  ;;  %v736_v19 = vld [vmem:[%s2136_s5 + $0x108] sm:$0xff] }
  0x52   :  { %372 = vmatmul.f32.gmra.mxu3 %v100_v17  ;;  %851 = vmatpush.msra.mxu2 %v730_v20  ;;  %v111_v20 = vld [vmem:[%s2137_s1 + $0x40] sm:$0xff]  ;;  %v112_v21 = vld [vmem:[%s2137_s1 + $0x48] sm:$0xff] }
  0x53   :  { %768 = vmatpush.msra.mxu0 %v731_v22  ;;  %809 = vmatpush.msra.mxu1 %v763_v23  ;;  %v705_v22 = vld [vmem:[%s2136_s5 + $0x10] sm:$0xff] }
  0x54   :  { %852 = vmatpush.msra.mxu2 %v728_v24  ;;  %893 = vmatpush.msra.mxu3 %v760_v25  ;;  %v737_v23 = vld [vmem:[%s2136_s5 + $0x110] sm:$0xff]  ;;  %v703_v24 = vld [vmem:[%s2136_s5] sm:$0xff] }
  0x55   :  { %249 = vmatmul.f32.gmra.mxu0 %v99_v16  ;;  %290 = vmatmul.f32.gmra.mxu1 %v100_v17  ;;  %v707_v16 = vld [vmem:[%s2136_s5 + $0x20] sm:$0xff] }
  0x56   :  { %769 = vmatpush.msra.mxu0 %v729_v26  ;;  %810 = vmatpush.msra.mxu1 %v761_v27  ;;  %v739_v17 = vld [vmem:[%s2136_s5 + $0x120] sm:$0xff]  ;;  %v113_v26 = vld [vmem:[%s2137_s1 + $0x50] sm:$0xff]  ;;  %v114_v27 = vld [vmem:[%s2137_s1 + $0x58] sm:$0xff] }
  0x57   :  { %853 = vmatpush.msra.mxu2 %v726_v28  ;;  %894 = vmatpush.msra.mxu3 %v758_v29  ;;  %v735_v25 = vld [vmem:[%s2136_s5 + $0x100] sm:$0xff]  ;;  %v116_v29 = vld [vmem:[%s2137_s1 + $0x68] sm:$0xff] }
  0x58   :  { %770 = vmatpush.msra.mxu0 %v727_v32  ;;  %811 = vmatpush.msra.mxu1 %v759_v33  ;;  %v115_v28 = vld [vmem:[%s2137_s1 + $0x60] sm:$0xff]  ;;  %v120_v33 = vld [vmem:[%s2138_s2 + $0x8] sm:$0xff] }
  0x59   :  { %334 = vmatmul.f32.gmra.mxu2 %v101_v30  ;;  %895 = vmatpush.msra.mxu3 %v756_v35  ;;  %v119_v32 = vld [vmem:[%s2138_s2] sm:$0xff] }
  0x5a   :  { %375 = vmatmul.f32.gmra.mxu3 %v102_v31  ;;  %854 = vmatpush.msra.mxu2 %v724_v34  ;;  %v982_v34 = vld [vmem:[%s2139_s6] sm:$0x3] }
  0x5b   :  { %771 = vmatpush.msra.mxu0 %v725_v36  ;;  %812 = vmatpush.msra.mxu1 %v757_v37  ;;  %v1881_v35 = vperm.slane %v982_v34, 0 }
  0x5c   :  { %855 = vmatpush.msra.mxu2 %v722_v38  ;;  %896 = vmatpush.msra.mxu3 %v754_v39  ;;  %v1883_v38 = vperm.slane %v982_v34, 1 }
  0x5d   :  { %252 = vmatmul.f32.gmra.mxu0 %v101_v30  ;;  %293 = vmatmul.f32.gmra.mxu1 %v102_v31  ;;  %v117_v30 = vld [vmem:[%s2137_s1 + $0x70] sm:$0xff]  ;;  %v118_v31 = vld [vmem:[%s2137_s1 + $0x78] sm:$0xff] }
  0x5e   :  { %772 = vmatpush.msra.mxu0 %v723_v40  ;;  %813 = vmatpush.msra.mxu1 %v755_v41 }
  0x5f   :  { %856 = vmatpush.msra.mxu2 %v720_v42  ;;  %897 = vmatpush.msra.mxu3 %v752_v43 }
  0x60   :  { %773 = vmatpush.msra.mxu0 %v721_v46  ;;  %814 = vmatpush.msra.mxu1 %v753_v47 }
  0x61   :  { %589 = vmatmul.f32.vlgmr.msrb.gmra.mxu2 %v103_v44  ;;  %898 = vmatpush.msra.mxu3 %v750_v49 }
  0x62   :  { %630 = vmatmul.f32.vlgmr.msrb.gmra.mxu3 %v104_v45  ;;  %857 = vmatpush.msra.mxu2 %v718_v48 }
  0x63   :  { %774 = vmatpush.msra.mxu0 %v719_v50  ;;  %815 = vmatpush.msra.mxu1 %v751_v51 }
  0x64   :  { %858 = vmatpush.msra.mxu2 %v716_v52  ;;  %899 = vmatpush.msra.mxu3 %v748_v53 }
  0x65   :  { %507 = vmatmul.f32.vlgmr.msrb.gmra.mxu0 %v103_v44  ;;  %548 = vmatmul.f32.vlgmr.msrb.gmra.mxu1 %v104_v45  ;;  %v121_v44 = vld [vmem:[%s2138_s2 + $0x10] sm:$0xff]  ;;  %v122_v45 = vld [vmem:[%s2138_s2 + $0x18] sm:$0xff] }
  0x66   :  { %775 = vmatpush.msra.mxu0 %v717_v56  ;;  %816 = vmatpush.msra.mxu1 %v749_v57 }
  0x67   :  { %859 = vmatpush.msra.mxu2 %v714_v58  ;;  %900 = vmatpush.msra.mxu3 %v746_v59 }
  0x68   :  { %776 = vmatpush.msra.mxu0 %v715_v60  ;;  %817 = vmatpush.msra.mxu1 %v747_v61 }
  0x69   :  { %592 = vmatmul.f32.gmra.mxu2 %v105_v54  ;;  %901 = vmatpush.msra.mxu3 %v744_v63 }
  0x6a   :  { %633 = vmatmul.f32.gmra.mxu3 %v106_v55  ;;  %860 = vmatpush.msra.mxu2 %v712_v62 }
  0x6b   :  { %777 = vmatpush.msra.mxu0 %v713_v2  ;;  %818 = vmatpush.msra.mxu1 %v745_v3 }
  0x6c   :  { %861 = vmatpush.msra.mxu2 %v710_v4  ;;  %902 = vmatpush.msra.mxu3 %v742_v5 }
  0x6d   :  { %510 = vmatmul.f32.gmra.mxu0 %v105_v54  ;;  %551 = vmatmul.f32.gmra.mxu1 %v106_v55  ;;  %v123_v54 = vld [vmem:[%s2138_s2 + $0x20] sm:$0xff]  ;;  %v124_v55 = vld [vmem:[%s2138_s2 + $0x28] sm:$0xff] }
  0x6e   :  { %778 = vmatpush.msra.mxu0 %v711_v6  ;;  %819 = vmatpush.msra.mxu1 %v743_v7 }
  0x6f   :  { %862 = vmatpush.msra.mxu2 %v708_v8  ;;  %903 = vmatpush.msra.mxu3 %v740_v9 }
  0x70   :  { %779 = vmatpush.msra.mxu0 %v709_v12  ;;  %820 = vmatpush.msra.mxu1 %v741_v13 }
  0x71   :  { %595 = vmatmul.f32.gmra.mxu2 %v107_v0  ;;  %904 = vmatpush.msra.mxu3 %v738_v15 }
  0x72   :  { %636 = vmatmul.f32.gmra.mxu3 %v108_v1  ;;  %863 = vmatpush.msra.mxu2 %v706_v14 }
  0x73   :  { %780 = vmatpush.msra.mxu0 %v707_v16  ;;  %821 = vmatpush.msra.mxu1 %v739_v17 }
  0x74   :  { %864 = vmatpush.msra.mxu2 %v704_v18  ;;  %905 = vmatpush.msra.mxu3 %v736_v19 }
  0x75   :  { %513 = vmatmul.f32.gmra.mxu0 %v107_v0  ;;  %554 = vmatmul.f32.gmra.mxu1 %v108_v1  ;;  %v125_v0 = vld [vmem:[%s2138_s2 + $0x30] sm:$0xff]  ;;  %v126_v1 = vld [vmem:[%s2138_s2 + $0x38] sm:$0xff] }
  0x76   :  { %781 = vmatpush.msra.mxu0 %v705_v22  ;;  %822 = vmatpush.msra.mxu1 %v737_v23 }
  0x78   :  { %782 = vmatpush.msra.mxu0 %v703_v24  ;;  %823 = vmatpush.msra.mxu1 %v735_v25 }
  0x79   :  { %598 = vmatmul.f32.gmra.mxu2 %v109_v10 }
  0x7a   :  { %639 = vmatmul.f32.gmra.mxu3 %v110_v11 }
  0x7d   :  { %516 = vmatmul.f32.gmra.mxu0 %v109_v10  ;;  %557 = vmatmul.f32.gmra.mxu1 %v110_v11  ;;  %v127_v10 = vld [vmem:[%s2138_s2 + $0x40] sm:$0xff]  ;;  %v128_v11 = vld [vmem:[%s2138_s2 + $0x48] sm:$0xff] }
  0x81   :  { %601 = vmatmul.f32.gmra.mxu2 %v111_v20 }
  0x82   :  { %642 = vmatmul.f32.gmra.mxu3 %v112_v21 }
  0x85   :  { %519 = vmatmul.f32.gmra.mxu0 %v111_v20  ;;  %560 = vmatmul.f32.gmra.mxu1 %v112_v21  ;;  %v129_v20 = vld [vmem:[%s2138_s2 + $0x50] sm:$0xff]  ;;  %v130_v21 = vld [vmem:[%s2138_s2 + $0x58] sm:$0xff] }
  0x89   :  { %604 = vmatmul.f32.gmra.mxu2 %v113_v26 }
  0x8a   :  { %645 = vmatmul.f32.gmra.mxu3 %v114_v27 }
  0x8d   :  { %522 = vmatmul.f32.gmra.mxu0 %v113_v26  ;;  %563 = vmatmul.f32.gmra.mxu1 %v114_v27 }
  0x91   :  { %607 = vmatmul.f32.gmra.mxu2 %v115_v28 }
  0x92   :  { %648 = vmatmul.f32.gmra.mxu3 %v116_v29 }
  0x95   :  { %525 = vmatmul.f32.gmra.mxu0 %v115_v28  ;;  %566 = vmatmul.f32.gmra.mxu1 %v116_v29 }
  0x99   :  { %610 = vmatmul.f32.gmra.mxu2 %v117_v30 }
  0x9a   :  { %651 = vmatmul.f32.gmra.mxu3 %v118_v31 }
  0x9d   :  { %528 = vmatmul.f32.gmra.mxu0 %v117_v30  ;;  %569 = vmatmul.f32.gmra.mxu1 %v118_v31  ;;  %v131_v30 = vld [vmem:[%s2138_s2 + $0x60] sm:$0xff]  ;;  %v132_v31 = vld [vmem:[%s2138_s2 + $0x68] sm:$0xff] }
  0xa1   :  { %865 = vmatmul.f32.vlgmr.msra.gmra.mxu2 %v119_v32  ;;  %v232_v36 = vpop.f32.mrf.mxu0 }
  0xa2   :  { %906 = vmatmul.f32.vlgmr.msra.gmra.mxu3 %v120_v33  ;;  %v273_v37 = vpop.f32.mrf.mxu1 }
  0xa3   :  { %v274_v39 = vadd.f32 %v273_v37, %v232_v36 }
  0xa4   :  { %v314_v40 = vpop.f32.mrf.mxu2 }
  0xa5   :  { %v355_v41 = vpop.f32.mrf.mxu3  ;;  %v988_v43 = vadd.f32 %v1881_v35, %v274_v39  ;;  %783 = vmatmul.f32.vlgmr.msra.gmra.mxu0 %v119_v32  ;;  %824 = vmatmul.f32.vlgmr.msra.gmra.mxu1 %v120_v33 }
  0xa6   :  { %v356_v42 = vadd.f32 %v355_v41, %v314_v40 }
  0xa7   :  { %1004 = vst [vmem:[%s2140_s9] sm:$0xff] %v988_v43  ;;  %v134_v43 = vld [vmem:[%s2138_s2 + $0x78] sm:$0xff] }
  0xa8   :  { %v989_v46 = vadd.f32 %v1883_v38, %v356_v42  ;;  %v133_v42 = vld [vmem:[%s2138_s2 + $0x70] sm:$0xff] }
  0xa9   :  { %868 = vmatmul.f32.gmra.mxu2 %v121_v44 }
  0xaa   :  { %1005 = vst [vmem:[%s2140_s9 + $0x8] sm:$0xff] %v989_v46  ;;  %909 = vmatmul.f32.gmra.mxu3 %v122_v45  ;;  %v235_v47 = vpop.f32.mrf.mxu0  ;;  %v276_v48 = vpop.f32.mrf.mxu1 }
  0xab   :  { %v277_v49 = vadd.f32 %v276_v48, %v235_v47 }
  0xac   :  { %v317_v50 = vpop.f32.mrf.mxu2 }
  0xad   :  { %v358_v51 = vpop.f32.mrf.mxu3  ;;  %v990_v53 = vadd.f32 %v1881_v35, %v277_v49  ;;  %786 = vmatmul.f32.gmra.mxu0 %v121_v44  ;;  %827 = vmatmul.f32.gmra.mxu1 %v122_v45 }
  0xae   :  { %v359_v52 = vadd.f32 %v358_v51, %v317_v50 }
  0xaf   :  { %1006 = vst [vmem:[%s2140_s9 + $0x10] sm:$0xff] %v990_v53  ;;  %v1036_v53 = vld [vmem:[%s2141_s7] sm:$0x3] }
  0xb0   :  { %v991_v56 = vadd.f32 %v1883_v38, %v359_v52 }
  0xb1   :  { %871 = vmatmul.f32.gmra.mxu2 %v123_v54 }
  0xb2   :  { %1007 = vst [vmem:[%s2140_s9 + $0x18] sm:$0xff] %v991_v56  ;;  %912 = vmatmul.f32.gmra.mxu3 %v124_v55  ;;  %v238_v57 = vpop.f32.mrf.mxu0  ;;  %v279_v58 = vpop.f32.mrf.mxu1  ;;  %v1996_v56 = vperm.slane %v1036_v53, 1 }
  0xb3   :  { %v280_v59 = vadd.f32 %v279_v58, %v238_v57 }
  0xb4   :  { %v320_v60 = vpop.f32.mrf.mxu2 }
  0xb5   :  { %v361_v61 = vpop.f32.mrf.mxu3  ;;  %v992_v63 = vadd.f32 %v1881_v35, %v280_v59  ;;  %789 = vmatmul.f32.gmra.mxu0 %v123_v54  ;;  %830 = vmatmul.f32.gmra.mxu1 %v124_v55  ;;  %v1994_v54 = vperm.slane %v1036_v53, 0 }
  0xb6   :  { %v362_v62 = vadd.f32 %v361_v61, %v320_v60 }
  0xb7   :  { %1008 = vst [vmem:[%s2140_s9 + $0x20] sm:$0xff] %v992_v63 }
  0xb8   :  { %v993_v2 = vadd.f32 %v1883_v38, %v362_v62 }
  0xb9   :  { %874 = vmatmul.f32.gmra.mxu2 %v125_v0 }
  0xba   :  { %1009 = vst [vmem:[%s2140_s9 + $0x28] sm:$0xff] %v993_v2  ;;  %915 = vmatmul.f32.gmra.mxu3 %v126_v1  ;;  %v241_v3 = vpop.f32.mrf.mxu0  ;;  %v282_v4 = vpop.f32.mrf.mxu1 }
  0xbb   :  { %v283_v5 = vadd.f32 %v282_v4, %v241_v3 }
  0xbc   :  { %v323_v6 = vpop.f32.mrf.mxu2 }
  0xbd   :  { %v364_v7 = vpop.f32.mrf.mxu3  ;;  %v994_v9 = vadd.f32 %v1881_v35, %v283_v5  ;;  %792 = vmatmul.f32.gmra.mxu0 %v125_v0  ;;  %833 = vmatmul.f32.gmra.mxu1 %v126_v1 }
  0xbe   :  { %v365_v8 = vadd.f32 %v364_v7, %v323_v6 }
  0xbf   :  { %1010 = vst [vmem:[%s2140_s9 + $0x30] sm:$0xff] %v994_v9 }
  0xc0   :  { %v995_v12 = vadd.f32 %v1883_v38, %v365_v8 }
  0xc1   :  { %877 = vmatmul.f32.gmra.mxu2 %v127_v10 }
  0xc2   :  { %1011 = vst [vmem:[%s2140_s9 + $0x38] sm:$0xff] %v995_v12  ;;  %918 = vmatmul.f32.gmra.mxu3 %v128_v11  ;;  %v244_v13 = vpop.f32.mrf.mxu0  ;;  %v285_v14 = vpop.f32.mrf.mxu1 }
  0xc3   :  { %v286_v15 = vadd.f32 %v285_v14, %v244_v13 }
  0xc4   :  { %v326_v16 = vpop.f32.mrf.mxu2 }
  0xc5   :  { %v367_v17 = vpop.f32.mrf.mxu3  ;;  %v996_v19 = vadd.f32 %v1881_v35, %v286_v15  ;;  %795 = vmatmul.f32.gmra.mxu0 %v127_v10  ;;  %836 = vmatmul.f32.gmra.mxu1 %v128_v11 }
  0xc6   :  { %v368_v18 = vadd.f32 %v367_v17, %v326_v16 }
  0xc7   :  { %1012 = vst [vmem:[%s2140_s9 + $0x40] sm:$0xff] %v996_v19 }
  0xc8   :  { %v997_v22 = vadd.f32 %v1883_v38, %v368_v18 }
  0xc9   :  { %880 = vmatmul.f32.gmra.mxu2 %v129_v20 }
  0xca   :  { %1013 = vst [vmem:[%s2140_s9 + $0x48] sm:$0xff] %v997_v22  ;;  %921 = vmatmul.f32.gmra.mxu3 %v130_v21  ;;  %v247_v23 = vpop.f32.mrf.mxu0  ;;  %v288_v24 = vpop.f32.mrf.mxu1 }
  0xcb   :  { %v289_v25 = vadd.f32 %v288_v24, %v247_v23 }
  0xcc   :  { %v329_v26 = vpop.f32.mrf.mxu2 }
  0xcd   :  { %v370_v27 = vpop.f32.mrf.mxu3  ;;  %v998_v29 = vadd.f32 %v1881_v35, %v289_v25  ;;  %798 = vmatmul.f32.gmra.mxu0 %v129_v20  ;;  %839 = vmatmul.f32.gmra.mxu1 %v130_v21 }
  0xce   :  { %v371_v28 = vadd.f32 %v370_v27, %v329_v26 }
  0xcf   :  { %1014 = vst [vmem:[%s2140_s9 + $0x50] sm:$0xff] %v998_v29 }
  0xd0   :  { %v999_v32 = vadd.f32 %v1883_v38, %v371_v28 }
  0xd1   :  { %883 = vmatmul.f32.gmra.mxu2 %v131_v30 }
  0xd2   :  { %1015 = vst [vmem:[%s2140_s9 + $0x58] sm:$0xff] %v999_v32  ;;  %924 = vmatmul.f32.gmra.mxu3 %v132_v31  ;;  %v250_v33 = vpop.f32.mrf.mxu0  ;;  %v291_v34 = vpop.f32.mrf.mxu1 }
  0xd3   :  { %v292_v36 = vadd.f32 %v291_v34, %v250_v33 }
  0xd4   :  { %v332_v37 = vpop.f32.mrf.mxu2 }
  0xd5   :  { %v373_v39 = vpop.f32.mrf.mxu3  ;;  %v1000_v41 = vadd.f32 %v1881_v35, %v292_v36  ;;  %801 = vmatmul.f32.gmra.mxu0 %v131_v30  ;;  %842 = vmatmul.f32.gmra.mxu1 %v132_v31 }
  0xd6   :  { %v374_v40 = vadd.f32 %v373_v39, %v332_v37 }
  0xd7   :  { %1016 = vst [vmem:[%s2140_s9 + $0x60] sm:$0xff] %v1000_v41 }
  0xd8   :  { %v1001_v44 = vadd.f32 %v1883_v38, %v374_v40 }
  0xd9   :  { %886 = vmatmul.f32.gmra.mxu2 %v133_v42 }
  0xda   :  { %1017 = vst [vmem:[%s2140_s9 + $0x68] sm:$0xff] %v1001_v44  ;;  %927 = vmatmul.f32.gmra.mxu3 %v134_v43  ;;  %v253_v45 = vpop.f32.mrf.mxu0  ;;  %v294_v46 = vpop.f32.mrf.mxu1 }
  0xdb   :  { %v295_v47 = vadd.f32 %v294_v46, %v253_v45 }
  0xdc   :  { %v335_v48 = vpop.f32.mrf.mxu2 }
  0xdd   :  { %v376_v49 = vpop.f32.mrf.mxu3  ;;  %v1002_v51 = vadd.f32 %v1881_v35, %v295_v47  ;;  %804 = vmatmul.f32.gmra.mxu0 %v133_v42  ;;  %845 = vmatmul.f32.gmra.mxu1 %v134_v43 }
  0xde   :  { %v377_v50 = vadd.f32 %v376_v49, %v335_v48 }
  0xdf   :  { %1018 = vst [vmem:[%s2140_s9 + $0x70] sm:$0xff] %v1002_v51 }
  0xe0   :  { %v1003_v52 = vadd.f32 %v1883_v38, %v377_v50 }
  0xe2   :  { %1019 = vst [vmem:[%s2140_s9 + $0x78] sm:$0xff] %v1003_v52  ;;  %v508_v55 = vpop.f32.mrf.mxu0  ;;  %v549_v35 = vpop.f32.mrf.mxu1 }
  0xe3   :  { %v550_v57 = vadd.f32 %v549_v35, %v508_v55 }
  0xe4   :  { %v590_v38 = vpop.f32.mrf.mxu2 }
  0xe5   :  { %v631_v58 = vpop.f32.mrf.mxu3  ;;  %v1042_v60 = vadd.f32 %v1994_v54, %v550_v57  ;;  %v1090_v57 = vld [vmem:[%s2143_s8] sm:$0x3] }
  0xe6   :  { %v632_v59 = vadd.f32 %v631_v58, %v590_v38  ;;  %v2065_v38 = vperm.slane %v1090_v57, 0 }
  0xe7   :  { %1058 = vst [vmem:[%s2142_s10] sm:$0xff] %v1042_v60  ;;  %v2067_v60 = vperm.slane %v1090_v57, 1 }
  0xe8   :  { %v1043_v61 = vadd.f32 %v1996_v56, %v632_v59 }
  0xea   :  { %1059 = vst [vmem:[%s2142_s10 + $0x8] sm:$0xff] %v1043_v61  ;;  %v511_v62 = vpop.f32.mrf.mxu0  ;;  %v552_v63 = vpop.f32.mrf.mxu1 }
  0xeb   :  { %v553_v0 = vadd.f32 %v552_v63, %v511_v62 }
  0xec   :  { %v593_v1 = vpop.f32.mrf.mxu2 }
  0xed   :  { %v634_v2 = vpop.f32.mrf.mxu3  ;;  %v1044_v4 = vadd.f32 %v1994_v54, %v553_v0 }
  0xee   :  { %v635_v3 = vadd.f32 %v634_v2, %v593_v1 }
  0xef   :  { %1060 = vst [vmem:[%s2142_s10 + $0x10] sm:$0xff] %v1044_v4 }
  0xf0   :  { %v1045_v5 = vadd.f32 %v1996_v56, %v635_v3 }
  0xf2   :  { %1061 = vst [vmem:[%s2142_s10 + $0x18] sm:$0xff] %v1045_v5  ;;  %v514_v6 = vpop.f32.mrf.mxu0  ;;  %v555_v7 = vpop.f32.mrf.mxu1 }
  0xf3   :  { %v556_v8 = vadd.f32 %v555_v7, %v514_v6 }
  0xf4   :  { %v596_v9 = vpop.f32.mrf.mxu2 }
  0xf5   :  { %v637_v10 = vpop.f32.mrf.mxu3  ;;  %v1046_v12 = vadd.f32 %v1994_v54, %v556_v8 }
  0xf6   :  { %v638_v11 = vadd.f32 %v637_v10, %v596_v9 }
  0xf7   :  { %1062 = vst [vmem:[%s2142_s10 + $0x20] sm:$0xff] %v1046_v12 }
  0xf8   :  { %v1047_v13 = vadd.f32 %v1996_v56, %v638_v11 }
  0xfa   :  { %1063 = vst [vmem:[%s2142_s10 + $0x28] sm:$0xff] %v1047_v13  ;;  %v517_v14 = vpop.f32.mrf.mxu0  ;;  %v558_v15 = vpop.f32.mrf.mxu1 }
  0xfb   :  { %v559_v16 = vadd.f32 %v558_v15, %v517_v14 }
  0xfc   :  { %v599_v17 = vpop.f32.mrf.mxu2 }
  0xfd   :  { %v640_v18 = vpop.f32.mrf.mxu3  ;;  %v1048_v20 = vadd.f32 %v1994_v54, %v559_v16 }
  0xfe   :  { %v641_v19 = vadd.f32 %v640_v18, %v599_v17 }
  0xff   :  { %1064 = vst [vmem:[%s2142_s10 + $0x30] sm:$0xff] %v1048_v20 }
 0x100   :  { %v1049_v21 = vadd.f32 %v1996_v56, %v641_v19 }
 0x102   :  { %1065 = vst [vmem:[%s2142_s10 + $0x38] sm:$0xff] %v1049_v21  ;;  %v520_v22 = vpop.f32.mrf.mxu0  ;;  %v561_v23 = vpop.f32.mrf.mxu1 }
 0x103   :  { %v562_v24 = vadd.f32 %v561_v23, %v520_v22 }
 0x104   :  { %v602_v25 = vpop.f32.mrf.mxu2 }
 0x105   :  { %v643_v26 = vpop.f32.mrf.mxu3  ;;  %v1050_v28 = vadd.f32 %v1994_v54, %v562_v24 }
 0x106   :  { %v644_v27 = vadd.f32 %v643_v26, %v602_v25 }
 0x107   :  { %1066 = vst [vmem:[%s2142_s10 + $0x40] sm:$0xff] %v1050_v28 }
 0x108   :  { %v1051_v29 = vadd.f32 %v1996_v56, %v644_v27 }
 0x10a   :  { %1067 = vst [vmem:[%s2142_s10 + $0x48] sm:$0xff] %v1051_v29  ;;  %v523_v30 = vpop.f32.mrf.mxu0  ;;  %v564_v31 = vpop.f32.mrf.mxu1 }
 0x10b   :  { %v565_v32 = vadd.f32 %v564_v31, %v523_v30 }
 0x10c   :  { %v605_v33 = vpop.f32.mrf.mxu2 }
 0x10d   :  { %v646_v34 = vpop.f32.mrf.mxu3  ;;  %v1052_v37 = vadd.f32 %v1994_v54, %v565_v32 }
 0x10e   :  { %v647_v36 = vadd.f32 %v646_v34, %v605_v33 }
 0x10f   :  { %1068 = vst [vmem:[%s2142_s10 + $0x50] sm:$0xff] %v1052_v37 }
 0x110   :  { %v1053_v39 = vadd.f32 %v1996_v56, %v647_v36 }
 0x112   :  { %1069 = vst [vmem:[%s2142_s10 + $0x58] sm:$0xff] %v1053_v39  ;;  %v526_v40 = vpop.f32.mrf.mxu0  ;;  %v567_v41 = vpop.f32.mrf.mxu1 }
 0x113   :  { %v568_v42 = vadd.f32 %v567_v41, %v526_v40 }
 0x114   :  { %v608_v43 = vpop.f32.mrf.mxu2 }
 0x115   :  { %v649_v44 = vpop.f32.mrf.mxu3  ;;  %v1054_v46 = vadd.f32 %v1994_v54, %v568_v42 }
 0x116   :  { %v650_v45 = vadd.f32 %v649_v44, %v608_v43 }
 0x117   :  { %1070 = vst [vmem:[%s2142_s10 + $0x60] sm:$0xff] %v1054_v46 }
 0x118   :  { %v1055_v47 = vadd.f32 %v1996_v56, %v650_v45 }
 0x11a   :  { %1071 = vst [vmem:[%s2142_s10 + $0x68] sm:$0xff] %v1055_v47  ;;  %v529_v48 = vpop.f32.mrf.mxu0  ;;  %v570_v49 = vpop.f32.mrf.mxu1 }
 0x11b   :  { %v571_v50 = vadd.f32 %v570_v49, %v529_v48 }
 0x11c   :  { %v611_v51 = vpop.f32.mrf.mxu2 }
 0x11d   :  { %v652_v52 = vpop.f32.mrf.mxu3  ;;  %v1056_v55 = vadd.f32 %v1994_v54, %v571_v50 }
 0x11e   :  { %v653_v53 = vadd.f32 %v652_v52, %v611_v51 }
 0x11f   :  { %1072 = vst [vmem:[%s2142_s10 + $0x70] sm:$0xff] %v1056_v55 }
 0x120   :  { %v1057_v35 = vadd.f32 %v1996_v56, %v653_v53 }
 0x122   :  { %1073 = vst [vmem:[%s2142_s10 + $0x78] sm:$0xff] %v1057_v35  ;;  %v784_v58 = vpop.f32.mrf.mxu0  ;;  %v825_v59 = vpop.f32.mrf.mxu1 }
 0x123   :  { %v826_v54 = vadd.f32 %v825_v59, %v784_v58 }
 0x124   :  { %v866_v56 = vpop.f32.mrf.mxu2 }
 0x125   :  { %v907_v61 = vpop.f32.mrf.mxu3  ;;  %v1096_v63 = vadd.f32 %v2065_v38, %v826_v54 }
 0x126   :  { %v908_v62 = vadd.f32 %v907_v61, %v866_v56 }
 0x127   :  { %1112 = vst [vmem:[%s2144_s11] sm:$0xff] %v1096_v63 }
 0x128   :  { %v1097_v0 = vadd.f32 %v2067_v60, %v908_v62 }
 0x12a   :  { %1113 = vst [vmem:[%s2144_s11 + $0x8] sm:$0xff] %v1097_v0  ;;  %v787_v1 = vpop.f32.mrf.mxu0  ;;  %v828_v2 = vpop.f32.mrf.mxu1 }
 0x12b   :  { %v829_v3 = vadd.f32 %v828_v2, %v787_v1 }
 0x12c   :  { %v869_v4 = vpop.f32.mrf.mxu2 }
 0x12d   :  { %v910_v5 = vpop.f32.mrf.mxu3  ;;  %v1098_v7 = vadd.f32 %v2065_v38, %v829_v3 }
 0x12e   :  { %v911_v6 = vadd.f32 %v910_v5, %v869_v4 }
 0x12f   :  { %1114 = vst [vmem:[%s2144_s11 + $0x10] sm:$0xff] %v1098_v7 }
 0x130   :  { %v1099_v8 = vadd.f32 %v2067_v60, %v911_v6 }
 0x132   :  { %1115 = vst [vmem:[%s2144_s11 + $0x18] sm:$0xff] %v1099_v8  ;;  %v790_v9 = vpop.f32.mrf.mxu0  ;;  %v831_v10 = vpop.f32.mrf.mxu1 }
 0x133   :  { %v832_v11 = vadd.f32 %v831_v10, %v790_v9 }
 0x134   :  { %v872_v12 = vpop.f32.mrf.mxu2 }
 0x135   :  { %v913_v13 = vpop.f32.mrf.mxu3  ;;  %v1100_v15 = vadd.f32 %v2065_v38, %v832_v11 }
 0x136   :  { %v914_v14 = vadd.f32 %v913_v13, %v872_v12 }
 0x137   :  { %1116 = vst [vmem:[%s2144_s11 + $0x20] sm:$0xff] %v1100_v15 }
 0x138   :  { %v1101_v16 = vadd.f32 %v2067_v60, %v914_v14 }
 0x13a   :  { %1117 = vst [vmem:[%s2144_s11 + $0x28] sm:$0xff] %v1101_v16  ;;  %v793_v17 = vpop.f32.mrf.mxu0  ;;  %v834_v18 = vpop.f32.mrf.mxu1 }
 0x13b   :  { %v835_v19 = vadd.f32 %v834_v18, %v793_v17 }
 0x13c   :  { %v875_v20 = vpop.f32.mrf.mxu2 }
 0x13d   :  { %v916_v21 = vpop.f32.mrf.mxu3  ;;  %v1102_v23 = vadd.f32 %v2065_v38, %v835_v19 }
 0x13e   :  { %v917_v22 = vadd.f32 %v916_v21, %v875_v20 }
 0x13f   :  { %1118 = vst [vmem:[%s2144_s11 + $0x30] sm:$0xff] %v1102_v23 }
 0x140   :  { %v1103_v24 = vadd.f32 %v2067_v60, %v917_v22 }
 0x142   :  { %1119 = vst [vmem:[%s2144_s11 + $0x38] sm:$0xff] %v1103_v24  ;;  %v796_v25 = vpop.f32.mrf.mxu0  ;;  %v837_v26 = vpop.f32.mrf.mxu1 }
 0x143   :  { %v838_v27 = vadd.f32 %v837_v26, %v796_v25 }
 0x144   :  { %v878_v28 = vpop.f32.mrf.mxu2 }
 0x145   :  { %v919_v29 = vpop.f32.mrf.mxu3  ;;  %v1104_v31 = vadd.f32 %v2065_v38, %v838_v27 }
 0x146   :  { %v920_v30 = vadd.f32 %v919_v29, %v878_v28 }
 0x147   :  { %1120 = vst [vmem:[%s2144_s11 + $0x40] sm:$0xff] %v1104_v31 }
 0x148   :  { %v1105_v32 = vadd.f32 %v2067_v60, %v920_v30 }
 0x14a   :  { %1121 = vst [vmem:[%s2144_s11 + $0x48] sm:$0xff] %v1105_v32  ;;  %v799_v33 = vpop.f32.mrf.mxu0  ;;  %v840_v34 = vpop.f32.mrf.mxu1 }
 0x14b   :  { %v841_v36 = vadd.f32 %v840_v34, %v799_v33 }
 0x14c   :  { %v881_v37 = vpop.f32.mrf.mxu2 }
 0x14d   :  { %v922_v39 = vpop.f32.mrf.mxu3  ;;  %v1106_v41 = vadd.f32 %v2065_v38, %v841_v36 }
 0x14e   :  { %v923_v40 = vadd.f32 %v922_v39, %v881_v37 }
 0x14f   :  { %1122 = vst [vmem:[%s2144_s11 + $0x50] sm:$0xff] %v1106_v41 }
 0x150   :  { %v1107_v42 = vadd.f32 %v2067_v60, %v923_v40 }
 0x152   :  { %1123 = vst [vmem:[%s2144_s11 + $0x58] sm:$0xff] %v1107_v42  ;;  %v802_v43 = vpop.f32.mrf.mxu0  ;;  %v843_v44 = vpop.f32.mrf.mxu1 }
 0x153   :  { %v844_v45 = vadd.f32 %v843_v44, %v802_v43 }
 0x154   :  { %v884_v46 = vpop.f32.mrf.mxu2 }
 0x155   :  { %v925_v47 = vpop.f32.mrf.mxu3  ;;  %v1108_v49 = vadd.f32 %v2065_v38, %v844_v45 }
 0x156   :  { %v926_v48 = vadd.f32 %v925_v47, %v884_v46 }
 0x157   :  { %1124 = vst [vmem:[%s2144_s11 + $0x60] sm:$0xff] %v1108_v49 }
 0x158   :  { %v1109_v50 = vadd.f32 %v2067_v60, %v926_v48 }
 0x15a   :  { %1125 = vst [vmem:[%s2144_s11 + $0x68] sm:$0xff] %v1109_v50  ;;  %v805_v51 = vpop.f32.mrf.mxu0  ;;  %v846_v52 = vpop.f32.mrf.mxu1 }
 0x15b   :  { %v847_v53 = vadd.f32 %v846_v52, %v805_v51 }
 0x15c   :  { %v887_v55 = vpop.f32.mrf.mxu2 }
 0x15d   :  { %v928_v35 = vpop.f32.mrf.mxu3  ;;  %v1110_v58 = vadd.f32 %v2065_v38, %v847_v53 }
 0x15e   :  { %v929_v57 = vadd.f32 %v928_v35, %v887_v55 }
 0x15f   :  { %1126 = vst [vmem:[%s2144_s11 + $0x70] sm:$0xff] %v1110_v58 }
 0x160   :  { %v1111_v59 = vadd.f32 %v2067_v60, %v929_v57 }
 0x162   :  { %1127 = vst [vmem:[%s2144_s11 + $0x78] sm:$0xff] %v1111_v59 }

</bundles_post_ra>
